<compile_context>
chip_gen: v5e
topology: v5e:2x2
jax: 0.10.0
libtpu: 0.0.40
codegen_flags: <defaults>
</compile_context>

<pallas_src>
import functools

import jax
import jax.numpy as jnp
from jax.experimental import pallas as pl
from jax.experimental.pallas import tpu as pltpu


def _rcs_kernel(inp_ref, x_ref, mask_ref,
                w2_ref, b2_ref, w3_ref, b3_ref,
                wr1_ref, br1_ref, wr2_ref, br2_ref,
                out_ref, pad_ref, *,
                NB, HW, L, off, taps, res_scale):
    """Fused RCS forward for NB lane-stacked images.

    Per grid step:
      inp_ref : (C, NB*HW)        f32, halo columns / tail lanes are exactly 0
      x_ref   : (NB, F, L)        compute dtype, per-image padded-flat + tap slack
      mask_ref: (1, NB*HW)        f32, 1.0 on real pixels only
      out_ref : (C, NB*HW)        f32
      pad_ref : (NB, max(F,C), L) compute-dtype scratch re-padding rs / h
    """
    cdt = pad_ref.dtype
    rmax = pad_ref.shape[1]

    # Halo strips must be exactly zero for the padded-flat conv trick.  Scratch
    # VMEM is uninitialized and per-core, so zero the two tiny strips every step
    # (safe under "parallel" megacore sharding; ~2*rmax*off elements).
    for b in range(NB):
        pad_ref[b, :, 0:off] = jnp.zeros((rmax, off), cdt)
        pad_ref[b, :, off + HW:L] = jnp.zeros((rmax, off), cdt)

    def stash(s, nrows):
        # s: (nrows, NB*HW), compute dtype, zero on halo/tail lanes.
        # One shifted store per image re-creates the exact padded-flat layout.
        for b in range(NB):
            pad_ref[b, :nrows, off:off + HW] = s[:, b * HW:(b + 1) * HW]

    def im2col(window):
        # window(b, t) -> (cin, HW) lane-shifted load for image b, tap t.
        rows = []
        for t in taps:
            pieces = [window(b, t) for b in range(NB)]
            rows.append(pieces[0] if NB == 1
                        else jnp.concatenate(pieces, axis=1))
        return jnp.concatenate(rows, axis=0)        # (K*K*cin, NB*HW)

    def conv(slab, w_ref, b_ref):
        y = jnp.dot(w_ref[...], slab, preferred_element_type=jnp.float32)
        return y + b_ref[...]                        # (cout, 1) broadcasts over lanes

    # conv2 / conv3: one im2col slab over x (already compute dtype), two dots.
    xs = im2col(lambda b, t: x_ref[b, :, t:t + HW])
    x1 = conv(xs, w2_ref, b2_ref)                    # (C, NB*HW) f32
    x2 = conv(xs, w3_ref, b3_ref)

    inp = inp_ref[...]                               # (C, NB*HW) f32
    # rs = (input - x1) * (input > 0); inp halo/tail lanes are 0 => rs halo = 0.
    rs = jnp.where(inp > 0.0, inp - x1, 0.0)

    # Residual block: conv(C->F) -> ReLU -> conv(F->C).  Cast to the MXU dtype
    # BEFORE the im2col build (single cast at the stash write).
    C = rs.shape[0]
    stash(rs.astype(cdt), C)
    h = jnp.maximum(conv(im2col(lambda b, t: pad_ref[b, :C, t:t + HW]),
                         wr1_ref, br1_ref), 0.0)     # (F, NB*HW) f32
    # Kill garbage halo/tail lanes so the padded-flat re-pad stays exact.
    h = h * mask_ref[...]
    F = h.shape[0]
    stash(h.astype(cdt), F)
    rs1 = conv(im2col(lambda b, t: pad_ref[b, :F, t:t + HW]),
               wr2_ref, br2_ref)                     # (C, NB*HW) f32

    out_ref[...] = rs1 + rs * res_scale + x2


def rcs_forward(inp_nchw, x_nchw, params, *, kernel_size, res_scale,
                compute_dtype=jnp.bfloat16, grid_steps=None):
    """inp: (N, n_colors, H, W), x: (N, n_feats, H, W) -> (N, n_colors, H, W).

    params = (w2, b2, w3, b3, wr1, br1, wr2, br2), PyTorch layouts:
    weights OIHW (cout, cin, K, K), biases (cout,).

    compute_dtype: MXU input dtype (bf16 is full rate on v5e/v6e/v7x; all
    elementwise math and accumulation stay f32).  Pass jnp.float32 for exact.
    grid_steps: number of grid steps the batch is split into.  Default
    min(N, 2): >=2 "parallel" steps keep both v7x TensorCores busy; pass 1 on
    single-TC v5e/v6e to lane-stack the whole batch into one step.
    """
    w2, b2, w3, b3, wr1, br1, wr2, br2 = params
    N, C, H, W = inp_nchw.shape
    F = x_nchw.shape[1]
    K = kernel_size
    P = K // 2
    Hp, Wp = H + 2 * P, W + 2 * P
    HWp = H * Wp                               # flattened padded-row width (valid part)
    HW = ((HWp + 127) // 128) * 128            # lane-dense activation width
    off = P * (Wp + 1)                         # padded-flat offset of pixel (0, 0)
    L = HW + 2 * off                           # padded-flat length incl. tap slack
    taps = tuple(dy * Wp + dx for dy in range(K) for dx in range(K))

    if grid_steps is None:
        grid_steps = min(N, 2)
    G = max(1, min(int(grid_steps), N))
    NB = -(-N // G)                            # images per grid step
    Np = NB * G                                # batch padded to a multiple of G

    # ------- trace-time layout plumbing (cheap XLA ops, not the hot path) -------
    def flat_w(w):                             # OIHW -> (cout, K*K*cin), (ky,kx,ci)
        cout = w.shape[0]
        return jnp.transpose(w, (0, 2, 3, 1)).reshape(cout, -1).astype(compute_dtype)

    def col_b(b):
        return b.reshape(-1, 1).astype(jnp.float32)

    w2f, w3f, wr1f, wr2f = flat_w(w2), flat_w(w3), flat_w(wr1), flat_w(wr2)
    b2f, b3f, br1f, br2f = col_b(b2), col_b(b3), col_b(br1), col_b(br2)

    # x: pad batch, zero-pad spatially, flatten the padded rows, add tap/lane
    # slack, cast to the MXU dtype BEFORE the kernel -> (G, NB, F, L).
    x_p = jnp.pad(x_nchw, ((0, Np - N), (0, 0), (P, P), (P, P)))
    x_flat = jnp.pad(x_p.reshape(Np, F, Hp * Wp),
                     ((0, 0), (0, 0), (0, L - Hp * Wp)))
    x_flat = x_flat.astype(compute_dtype).reshape(G, NB, F, L)

    # inp: zero halo cols on the right (2P) + zero tail lanes; lane-stack the NB
    # images of each step -> (G, C, NB*HW).
    inp_p = jnp.pad(inp_nchw, ((0, Np - N), (0, 0), (0, 0), (0, Wp - W)))
    inp_flat = jnp.pad(inp_p.reshape(Np, C, HWp),
                       ((0, 0), (0, 0), (0, HW - HWp))).astype(jnp.float32)
    inp_flat = (inp_flat.reshape(G, NB, C, HW)
                .transpose(0, 2, 1, 3).reshape(G, C, NB * HW))

    # Valid-pixel mask: 1.0 on real pixels, 0.0 on halo columns and tail lanes.
    lane = jnp.arange(HW, dtype=jnp.int32)
    mask = ((lane % Wp < W) & (lane < HWp)).astype(jnp.float32).reshape(1, HW)
    mask = jnp.tile(mask, (1, NB))

    kernel = functools.partial(_rcs_kernel, NB=NB, HW=HW, L=L, off=off,
                               taps=taps, res_scale=float(res_scale))

    def full_spec(arr):
        nd = arr.ndim
        return pl.BlockSpec(arr.shape, lambda g, _nd=nd: (0,) * _nd)

    out_flat = pl.pallas_call(
        kernel,
        out_shape=jax.ShapeDtypeStruct((G, C, NB * HW), jnp.float32),
        grid_spec=pltpu.PrefetchScalarGridSpec(
            num_scalar_prefetch=0,
            grid=(G,),
            in_specs=[
                pl.BlockSpec((None, C, NB * HW), lambda g: (g, 0, 0)),
                pl.BlockSpec((None, NB, F, L), lambda g: (g, 0, 0, 0)),
                full_spec(mask),
                full_spec(w2f), full_spec(b2f),
                full_spec(w3f), full_spec(b3f),
                full_spec(wr1f), full_spec(br1f),
                full_spec(wr2f), full_spec(br2f),
            ],
            out_specs=pl.BlockSpec((None, C, NB * HW), lambda g: (g, 0, 0)),
            scratch_shapes=[pltpu.VMEM((NB, max(C, F), L), compute_dtype)],
        ),
        compiler_params=pltpu.CompilerParams(
            dimension_semantics=("parallel",)),
    )(inp_flat, x_flat, mask, w2f, b2f, w3f, b3f, wr1f, br1f, wr2f, br2f)

    # Undo the lane stacking, drop halo/tail lanes, restore NCHW.
    out = (out_flat.reshape(G, C, NB, HW).transpose(0, 2, 1, 3)
           .reshape(Np, C, HW)[:N, :, :HWp]
           .reshape(N, C, H, Wp)[:, :, :, :W])
    return out


# ----------------------- pure-JAX reference (for checking) ------------------
def _conv_ref(x, w, b, dtype=jnp.float32):
    y = jax.lax.conv_general_dilated(
        x.astype(dtype), w.astype(dtype), window_strides=(1, 1), padding="SAME",
        dimension_numbers=("NCHW", "OIHW", "NCHW"),
        preferred_element_type=jnp.float32)
    return y + b.reshape(1, -1, 1, 1)


def rcs_reference(inp, x, params, *, res_scale, dtype=jnp.float32):
    w2, b2, w3, b3, wr1, br1, wr2, br2 = params
    conv = functools.partial(_conv_ref, dtype=dtype)
    x1 = conv(x, w2, b2)
    rs = jnp.where(inp > 0.0, inp - x1, 0.0)
    h = jnp.maximum(conv(rs, wr1, br1), 0.0)
    rs1 = conv(h, wr2, br2) + rs * res_scale
    x2 = conv(x, w3, b3)
    return rs1 + x2


if __name__ == "__main__":
    # Shapes consistent with the module: n_colors=4, n_feats=32, kernel_size=3,
    # res_scale=0.1, batch=2, spatial=16x16 (NCHW, PyTorch-style).
    N, H, W = 2, 16, 16
    n_colors, n_feats, ksize = 4, 32, 3
    res_scale = 0.1

    key = jax.random.PRNGKey(0)
    keys = jax.random.split(key, 10)

    inp = jax.random.normal(keys[0], (N, n_colors, H, W), jnp.float32)
    x = jax.random.normal(keys[1], (N, n_feats, H, W), jnp.float32)

    def mk_w(k, cout, cin):
        return 0.1 * jax.random.normal(k, (cout, cin, ksize, ksize), jnp.float32)

    def mk_b(k, cout):
        return 0.1 * jax.random.normal(k, (cout,), jnp.float32)

    w2 = mk_w(keys[2], n_colors, n_feats);  b2 = mk_b(keys[3], n_colors)   # conv2
    w3 = mk_w(keys[4], n_colors, n_feats);  b3 = mk_b(keys[5], n_colors)   # conv3
    wr1 = mk_w(keys[6], n_feats, n_colors); br1 = mk_b(keys[7], n_feats)   # rb[0]
    wr2 = mk_w(keys[8], n_colors, n_feats); br2 = mk_b(keys[9], n_colors)  # rb[2]
    params = (w2, b2, w3, b3, wr1, br1, wr2, br2)

    ref = rcs_reference(inp, x, params, res_scale=res_scale)

    # f32 MXU path, 2 "parallel" grid steps (v7x layout: one image per TC).
    out_f32 = jax.block_until_ready(rcs_forward(
        inp, x, params, kernel_size=ksize, res_scale=res_scale,
        compute_dtype=jnp.float32, grid_steps=2))
    assert out_f32.shape == (N, n_colors, H, W)
    assert jnp.allclose(out_f32, ref, atol=2e-3, rtol=2e-3), (
        f"f32/2-step max abs diff = {jnp.max(jnp.abs(out_f32 - ref))}")

    # f32 MXU path, whole batch lane-stacked into one step (v5e/v6e layout).
    out_f32_1 = jax.block_until_ready(rcs_forward(
        inp, x, params, kernel_size=ksize, res_scale=res_scale,
        compute_dtype=jnp.float32, grid_steps=1))
    assert jnp.allclose(out_f32_1, ref, atol=2e-3, rtol=2e-3), (
        f"f32/1-step max abs diff = {jnp.max(jnp.abs(out_f32_1 - ref))}")

    # Default path: bf16 MXU inputs, f32 accumulation / elementwise.
    out_bf16 = jax.block_until_ready(rcs_forward(
        inp, x, params, kernel_size=ksize, res_scale=res_scale))
    # Tight check against a reference that quantizes conv inputs the same way.
    ref_bf = rcs_reference(inp, x, params, res_scale=res_scale, dtype=jnp.bfloat16)
    assert jnp.allclose(out_bf16, ref_bf, atol=1e-2, rtol=1e-2), (
        f"bf16 vs bf16-ref max abs diff = {jnp.max(jnp.abs(out_bf16 - ref_bf))}")
    # True bf16 error against the f32 reference (loose sanity bound).
    assert jnp.max(jnp.abs(out_bf16 - ref)) < 0.35, (
        f"bf16 vs f32-ref max abs diff = {jnp.max(jnp.abs(out_bf16 - ref))}")

    print("KERNEL_OK")
</pallas_src>

<mosaic_0001>
module attributes {stable_mosaic.version = 11 : i64} {
  func.func @_rcs_kernel(%arg0: i32, %arg1: memref<1x4x384xf32, #tpu.memory_space<vmem>>, %arg2: memref<1x1x32x422xf32, #tpu.memory_space<vmem>>, %arg3: memref<1x384xf32, #tpu.memory_space<vmem>>, %arg4: memref<4x288xf32, #tpu.memory_space<vmem>>, %arg5: memref<4x1xf32, #tpu.memory_space<vmem>>, %arg6: memref<4x288xf32, #tpu.memory_space<vmem>>, %arg7: memref<4x1xf32, #tpu.memory_space<vmem>>, %arg8: memref<32x36xf32, #tpu.memory_space<vmem>>, %arg9: memref<32x1xf32, #tpu.memory_space<vmem>>, %arg10: memref<4x288xf32, #tpu.memory_space<vmem>>, %arg11: memref<4x1xf32, #tpu.memory_space<vmem>>, %arg12: memref<1x4x384xf32, #tpu.memory_space<vmem>>, %arg13: memref<1x32x422xf32, #tpu.memory_space<vmem>>) attributes {dimension_semantics = [#tpu.dimension_semantics<parallel>], iteration_bounds = array<i64: 2>, scalar_prefetch = 0 : i64, scratch_operands = 1 : i64, tpu.core_type = #tpu.core_type<tc>, window_params = [{transform_indices = @transform_0, window_bounds = array<i64: 1, 4, 384>}, {transform_indices = @transform_1, window_bounds = array<i64: 1, 1, 32, 422>}, {pipeline_mode = #tpu.pipeline_mode<synchronous>, transform_indices = @transform_2, window_bounds = array<i64: 1, 384>}, {pipeline_mode = #tpu.pipeline_mode<synchronous>, transform_indices = @transform_3, window_bounds = array<i64: 4, 288>}, {pipeline_mode = #tpu.pipeline_mode<synchronous>, transform_indices = @transform_4, window_bounds = array<i64: 4, 1>}, {pipeline_mode = #tpu.pipeline_mode<synchronous>, transform_indices = @transform_5, window_bounds = array<i64: 4, 288>}, {pipeline_mode = #tpu.pipeline_mode<synchronous>, transform_indices = @transform_6, window_bounds = array<i64: 4, 1>}, {pipeline_mode = #tpu.pipeline_mode<synchronous>, transform_indices = @transform_7, window_bounds = array<i64: 32, 36>}, {pipeline_mode = #tpu.pipeline_mode<synchronous>, transform_indices = @transform_8, window_bounds = array<i64: 32, 1>}, {pipeline_mode = #tpu.pipeline_mode<synchronous>, transform_indices = @transform_9, window_bounds = array<i64: 4, 288>}, {pipeline_mode = #tpu.pipeline_mode<synchronous>, transform_indices = @transform_10, window_bounds = array<i64: 4, 1>}, {transform_indices = @transform_11, window_bounds = array<i64: 1, 4, 384>}]} {
    %cst = arith.constant 0.000000e+00 : f32
    %0 = vector.broadcast %cst : f32 to vector<32x19xf32>
    %c0 = arith.constant 0 : index
    %c0_0 = arith.constant 0 : index
    %c0_1 = arith.constant 0 : index
    %1 = vector.load %arg13[%c0, %c0_0, %c0_1] : memref<1x32x422xf32, #tpu.memory_space<vmem>>, vector<1x32x19xf32>
    %2 = vector.shape_cast %1 : vector<1x32x19xf32> to vector<32x19xf32>
    %3 = vector.shape_cast %0 : vector<32x19xf32> to vector<1x32x19xf32>
    tpu.vector_store %arg13[%c0, %c0_0, %c0_1], %3 {strides = array<i32>} : memref<1x32x422xf32, #tpu.memory_space<vmem>>, vector<1x32x19xf32>,
    %cst_2 = arith.constant 0.000000e+00 : f32
    %4 = vector.broadcast %cst_2 : f32 to vector<32x19xf32>
    %c0_3 = arith.constant 0 : index
    %c0_4 = arith.constant 0 : index
    %c403 = arith.constant 403 : index
    %5 = vector.load %arg13[%c0_3, %c0_4, %c403] : memref<1x32x422xf32, #tpu.memory_space<vmem>>, vector<1x32x19xf32>
    %6 = vector.shape_cast %5 : vector<1x32x19xf32> to vector<32x19xf32>
    %7 = vector.shape_cast %4 : vector<32x19xf32> to vector<1x32x19xf32>
    tpu.vector_store %arg13[%c0_3, %c0_4, %c403], %7 {strides = array<i32>} : memref<1x32x422xf32, #tpu.memory_space<vmem>>, vector<1x32x19xf32>,
    %c0_5 = arith.constant 0 : index
    %c0_6 = arith.constant 0 : index
    %c0_7 = arith.constant 0 : index
    %c0_8 = arith.constant 0 : index
    %8 = vector.load %arg2[%c0_5, %c0_6, %c0_7, %c0_8] : memref<1x1x32x422xf32, #tpu.memory_space<vmem>>, vector<1x1x32x384xf32>
    %9 = vector.shape_cast %8 : vector<1x1x32x384xf32> to vector<32x384xf32>
    %c0_9 = arith.constant 0 : index
    %c0_10 = arith.constant 0 : index
    %c0_11 = arith.constant 0 : index
    %c1 = arith.constant 1 : index
    %10 = vector.load %arg2[%c0_9, %c0_10, %c0_11, %c1] : memref<1x1x32x422xf32, #tpu.memory_space<vmem>>, vector<1x1x32x384xf32>
    %11 = vector.shape_cast %10 : vector<1x1x32x384xf32> to vector<32x384xf32>
    %c0_12 = arith.constant 0 : index
    %c0_13 = arith.constant 0 : index
    %c0_14 = arith.constant 0 : index
    %c2 = arith.constant 2 : index
    %12 = vector.load %arg2[%c0_12, %c0_13, %c0_14, %c2] : memref<1x1x32x422xf32, #tpu.memory_space<vmem>>, vector<1x1x32x384xf32>
    %13 = vector.shape_cast %12 : vector<1x1x32x384xf32> to vector<32x384xf32>
    %c0_15 = arith.constant 0 : index
    %c0_16 = arith.constant 0 : index
    %c0_17 = arith.constant 0 : index
    %c18 = arith.constant 18 : index
    %14 = vector.load %arg2[%c0_15, %c0_16, %c0_17, %c18] : memref<1x1x32x422xf32, #tpu.memory_space<vmem>>, vector<1x1x32x384xf32>
    %15 = vector.shape_cast %14 : vector<1x1x32x384xf32> to vector<32x384xf32>
    %c0_18 = arith.constant 0 : index
    %c0_19 = arith.constant 0 : index
    %c0_20 = arith.constant 0 : index
    %c19 = arith.constant 19 : index
    %16 = vector.load %arg2[%c0_18, %c0_19, %c0_20, %c19] : memref<1x1x32x422xf32, #tpu.memory_space<vmem>>, vector<1x1x32x384xf32>
    %17 = vector.shape_cast %16 : vector<1x1x32x384xf32> to vector<32x384xf32>
    %c0_21 = arith.constant 0 : index
    %c0_22 = arith.constant 0 : index
    %c0_23 = arith.constant 0 : index
    %c20 = arith.constant 20 : index
    %18 = vector.load %arg2[%c0_21, %c0_22, %c0_23, %c20] : memref<1x1x32x422xf32, #tpu.memory_space<vmem>>, vector<1x1x32x384xf32>
    %19 = vector.shape_cast %18 : vector<1x1x32x384xf32> to vector<32x384xf32>
    %c0_24 = arith.constant 0 : index
    %c0_25 = arith.constant 0 : index
    %c0_26 = arith.constant 0 : index
    %c36 = arith.constant 36 : index
    %20 = vector.load %arg2[%c0_24, %c0_25, %c0_26, %c36] : memref<1x1x32x422xf32, #tpu.memory_space<vmem>>, vector<1x1x32x384xf32>
    %21 = vector.shape_cast %20 : vector<1x1x32x384xf32> to vector<32x384xf32>
    %c0_27 = arith.constant 0 : index
    %c0_28 = arith.constant 0 : index
    %c0_29 = arith.constant 0 : index
    %c37 = arith.constant 37 : index
    %22 = vector.load %arg2[%c0_27, %c0_28, %c0_29, %c37] : memref<1x1x32x422xf32, #tpu.memory_space<vmem>>, vector<1x1x32x384xf32>
    %23 = vector.shape_cast %22 : vector<1x1x32x384xf32> to vector<32x384xf32>
    %c0_30 = arith.constant 0 : index
    %c0_31 = arith.constant 0 : index
    %c0_32 = arith.constant 0 : index
    %c38 = arith.constant 38 : index
    %24 = vector.load %arg2[%c0_30, %c0_31, %c0_32, %c38] : memref<1x1x32x422xf32, #tpu.memory_space<vmem>>, vector<1x1x32x384xf32>
    %25 = vector.shape_cast %24 : vector<1x1x32x384xf32> to vector<32x384xf32>
    %26 = tpu.concatenate %9, %11, %13, %15, %17, %19, %21, %23, %25 in 0 : vector<32x384xf32>, vector<32x384xf32>, vector<32x384xf32>, vector<32x384xf32>, vector<32x384xf32>, vector<32x384xf32>, vector<32x384xf32>, vector<32x384xf32>, vector<32x384xf32> -> vector<288x384xf32>
    %c0_33 = arith.constant 0 : index
    %c0_34 = arith.constant 0 : index
    %27 = vector.load %arg4[%c0_33, %c0_34] : memref<4x288xf32, #tpu.memory_space<vmem>>, vector<4x288xf32>
    %cst_35 = arith.constant dense<0.000000e+00> : vector<4x384xf32>
    %28 = tpu.matmul %27, %26, %cst_35 {dimension_numbers = #tpu.dot_dimension_numbers<[1], [0], [0], [1], [0, 0, 1, 1], [], []>} : vector<4x288xf32>, vector<288x384xf32>, vector<4x384xf32> -> vector<4x384xf32>
    %c0_36 = arith.constant 0 : index
    %c0_37 = arith.constant 0 : index
    %29 = vector.load %arg5[%c0_36, %c0_37] : memref<4x1xf32, #tpu.memory_space<vmem>>, vector<4x1xf32>
    %30 = vector.broadcast %29 : vector<4x1xf32> to vector<4x384xf32>
    %31 = arith.addf %28, %30 : vector<4x384xf32>
    %c0_38 = arith.constant 0 : index
    %c0_39 = arith.constant 0 : index
    %32 = vector.load %arg6[%c0_38, %c0_39] : memref<4x288xf32, #tpu.memory_space<vmem>>, vector<4x288xf32>
    %cst_40 = arith.constant dense<0.000000e+00> : vector<4x384xf32>
    %33 = tpu.matmul %32, %26, %cst_40 {dimension_numbers = #tpu.dot_dimension_numbers<[1], [0], [0], [1], [0, 0, 1, 1], [], []>} : vector<4x288xf32>, vector<288x384xf32>, vector<4x384xf32> -> vector<4x384xf32>
    %c0_41 = arith.constant 0 : index
    %c0_42 = arith.constant 0 : index
    %34 = vector.load %arg7[%c0_41, %c0_42] : memref<4x1xf32, #tpu.memory_space<vmem>>, vector<4x1xf32>
    %35 = vector.broadcast %34 : vector<4x1xf32> to vector<4x384xf32>
    %36 = arith.addf %33, %35 : vector<4x384xf32>
    %c0_43 = arith.constant 0 : index
    %c0_44 = arith.constant 0 : index
    %c0_45 = arith.constant 0 : index
    %37 = vector.load %arg1[%c0_43, %c0_44, %c0_45] : memref<1x4x384xf32, #tpu.memory_space<vmem>>, vector<1x4x384xf32>
    %38 = vector.shape_cast %37 : vector<1x4x384xf32> to vector<4x384xf32>
    %cst_46 = arith.constant 0.000000e+00 : f32
    %39 = vector.broadcast %cst_46 : f32 to vector<4x384xf32>
    %40 = arith.cmpf ogt, %38, %39 : vector<4x384xf32>
    %41 = arith.subf %38, %31 : vector<4x384xf32>
    %cst_47 = arith.constant 0.000000e+00 : f32
    %42 = vector.broadcast %cst_47 : f32 to vector<4x384xf32>
    %43 = arith.select %40, %41, %42 : vector<4x384xi1>, vector<4x384xf32>
    %c0_48 = arith.constant 0 : index
    %c0_49 = arith.constant 0 : index
    %c19_50 = arith.constant 19 : index
    %44 = vector.load %arg13[%c0_48, %c0_49, %c19_50] : memref<1x32x422xf32, #tpu.memory_space<vmem>>, vector<1x4x384xf32>
    %45 = vector.shape_cast %44 : vector<1x4x384xf32> to vector<4x384xf32>
    %46 = vector.shape_cast %43 : vector<4x384xf32> to vector<1x4x384xf32>
    tpu.vector_store %arg13[%c0_48, %c0_49, %c19_50], %46 {strides = array<i32>} : memref<1x32x422xf32, #tpu.memory_space<vmem>>, vector<1x4x384xf32>,
    %c0_51 = arith.constant 0 : index
    %c0_52 = arith.constant 0 : index
    %c0_53 = arith.constant 0 : index
    %47 = vector.load %arg13[%c0_51, %c0_52, %c0_53] : memref<1x32x422xf32, #tpu.memory_space<vmem>>, vector<1x4x384xf32>
    %48 = vector.shape_cast %47 : vector<1x4x384xf32> to vector<4x384xf32>
    %c0_54 = arith.constant 0 : index
    %c0_55 = arith.constant 0 : index
    %c1_56 = arith.constant 1 : index
    %49 = vector.load %arg13[%c0_54, %c0_55, %c1_56] : memref<1x32x422xf32, #tpu.memory_space<vmem>>, vector<1x4x384xf32>
    %50 = vector.shape_cast %49 : vector<1x4x384xf32> to vector<4x384xf32>
    %c0_57 = arith.constant 0 : index
    %c0_58 = arith.constant 0 : index
    %c2_59 = arith.constant 2 : index
    %51 = vector.load %arg13[%c0_57, %c0_58, %c2_59] : memref<1x32x422xf32, #tpu.memory_space<vmem>>, vector<1x4x384xf32>
    %52 = vector.shape_cast %51 : vector<1x4x384xf32> to vector<4x384xf32>
    %c0_60 = arith.constant 0 : index
    %c0_61 = arith.constant 0 : index
    %c18_62 = arith.constant 18 : index
    %53 = vector.load %arg13[%c0_60, %c0_61, %c18_62] : memref<1x32x422xf32, #tpu.memory_space<vmem>>, vector<1x4x384xf32>
    %54 = vector.shape_cast %53 : vector<1x4x384xf32> to vector<4x384xf32>
    %c0_63 = arith.constant 0 : index
    %c0_64 = arith.constant 0 : index
    %c19_65 = arith.constant 19 : index
    %55 = vector.load %arg13[%c0_63, %c0_64, %c19_65] : memref<1x32x422xf32, #tpu.memory_space<vmem>>, vector<1x4x384xf32>
    %56 = vector.shape_cast %55 : vector<1x4x384xf32> to vector<4x384xf32>
    %c0_66 = arith.constant 0 : index
    %c0_67 = arith.constant 0 : index
    %c20_68 = arith.constant 20 : index
    %57 = vector.load %arg13[%c0_66, %c0_67, %c20_68] : memref<1x32x422xf32, #tpu.memory_space<vmem>>, vector<1x4x384xf32>
    %58 = vector.shape_cast %57 : vector<1x4x384xf32> to vector<4x384xf32>
    %c0_69 = arith.constant 0 : index
    %c0_70 = arith.constant 0 : index
    %c36_71 = arith.constant 36 : index
    %59 = vector.load %arg13[%c0_69, %c0_70, %c36_71] : memref<1x32x422xf32, #tpu.memory_space<vmem>>, vector<1x4x384xf32>
    %60 = vector.shape_cast %59 : vector<1x4x384xf32> to vector<4x384xf32>
    %c0_72 = arith.constant 0 : index
    %c0_73 = arith.constant 0 : index
    %c37_74 = arith.constant 37 : index
    %61 = vector.load %arg13[%c0_72, %c0_73, %c37_74] : memref<1x32x422xf32, #tpu.memory_space<vmem>>, vector<1x4x384xf32>
    %62 = vector.shape_cast %61 : vector<1x4x384xf32> to vector<4x384xf32>
    %c0_75 = arith.constant 0 : index
    %c0_76 = arith.constant 0 : index
    %c38_77 = arith.constant 38 : index
    %63 = vector.load %arg13[%c0_75, %c0_76, %c38_77] : memref<1x32x422xf32, #tpu.memory_space<vmem>>, vector<1x4x384xf32>
    %64 = vector.shape_cast %63 : vector<1x4x384xf32> to vector<4x384xf32>
    %65 = tpu.concatenate %48, %50, %52, %54, %56, %58, %60, %62, %64 in 0 : vector<4x384xf32>, vector<4x384xf32>, vector<4x384xf32>, vector<4x384xf32>, vector<4x384xf32>, vector<4x384xf32>, vector<4x384xf32>, vector<4x384xf32>, vector<4x384xf32> -> vector<36x384xf32>
    %c0_78 = arith.constant 0 : index
    %c0_79 = arith.constant 0 : index
    %66 = vector.load %arg8[%c0_78, %c0_79] : memref<32x36xf32, #tpu.memory_space<vmem>>, vector<32x36xf32>
    %cst_80 = arith.constant dense<0.000000e+00> : vector<32x384xf32>
    %67 = tpu.matmul %66, %65, %cst_80 {dimension_numbers = #tpu.dot_dimension_numbers<[1], [0], [0], [1], [0, 0, 1, 1], [], []>} : vector<32x36xf32>, vector<36x384xf32>, vector<32x384xf32> -> vector<32x384xf32>
    %c0_81 = arith.constant 0 : index
    %c0_82 = arith.constant 0 : index
    %68 = vector.load %arg9[%c0_81, %c0_82] : memref<32x1xf32, #tpu.memory_space<vmem>>, vector<32x1xf32>
    %69 = vector.broadcast %68 : vector<32x1xf32> to vector<32x384xf32>
    %70 = arith.addf %67, %69 : vector<32x384xf32>
    %cst_83 = arith.constant 0.000000e+00 : f32
    %71 = vector.broadcast %cst_83 : f32 to vector<32x384xf32>
    %72 = arith.maximumf %70, %71 : vector<32x384xf32>
    %c0_84 = arith.constant 0 : index
    %c0_85 = arith.constant 0 : index
    %73 = vector.load %arg3[%c0_84, %c0_85] : memref<1x384xf32, #tpu.memory_space<vmem>>, vector<1x384xf32>
    %74 = vector.broadcast %73 : vector<1x384xf32> to vector<32x384xf32>
    %75 = arith.mulf %72, %74 : vector<32x384xf32>
    %c0_86 = arith.constant 0 : index
    %c0_87 = arith.constant 0 : index
    %c19_88 = arith.constant 19 : index
    %76 = vector.load %arg13[%c0_86, %c0_87, %c19_88] : memref<1x32x422xf32, #tpu.memory_space<vmem>>, vector<1x32x384xf32>
    %77 = vector.shape_cast %76 : vector<1x32x384xf32> to vector<32x384xf32>
    %78 = vector.shape_cast %75 : vector<32x384xf32> to vector<1x32x384xf32>
    tpu.vector_store %arg13[%c0_86, %c0_87, %c19_88], %78 {strides = array<i32>} : memref<1x32x422xf32, #tpu.memory_space<vmem>>, vector<1x32x384xf32>,
    %c0_89 = arith.constant 0 : index
    %c0_90 = arith.constant 0 : index
    %c0_91 = arith.constant 0 : index
    %79 = vector.load %arg13[%c0_89, %c0_90, %c0_91] : memref<1x32x422xf32, #tpu.memory_space<vmem>>, vector<1x32x384xf32>
    %80 = vector.shape_cast %79 : vector<1x32x384xf32> to vector<32x384xf32>
    %c0_92 = arith.constant 0 : index
    %c0_93 = arith.constant 0 : index
    %c1_94 = arith.constant 1 : index
    %81 = vector.load %arg13[%c0_92, %c0_93, %c1_94] : memref<1x32x422xf32, #tpu.memory_space<vmem>>, vector<1x32x384xf32>
    %82 = vector.shape_cast %81 : vector<1x32x384xf32> to vector<32x384xf32>
    %c0_95 = arith.constant 0 : index
    %c0_96 = arith.constant 0 : index
    %c2_97 = arith.constant 2 : index
    %83 = vector.load %arg13[%c0_95, %c0_96, %c2_97] : memref<1x32x422xf32, #tpu.memory_space<vmem>>, vector<1x32x384xf32>
    %84 = vector.shape_cast %83 : vector<1x32x384xf32> to vector<32x384xf32>
    %c0_98 = arith.constant 0 : index
    %c0_99 = arith.constant 0 : index
    %c18_100 = arith.constant 18 : index
    %85 = vector.load %arg13[%c0_98, %c0_99, %c18_100] : memref<1x32x422xf32, #tpu.memory_space<vmem>>, vector<1x32x384xf32>
    %86 = vector.shape_cast %85 : vector<1x32x384xf32> to vector<32x384xf32>
    %c0_101 = arith.constant 0 : index
    %c0_102 = arith.constant 0 : index
    %c19_103 = arith.constant 19 : index
    %87 = vector.load %arg13[%c0_101, %c0_102, %c19_103] : memref<1x32x422xf32, #tpu.memory_space<vmem>>, vector<1x32x384xf32>
    %88 = vector.shape_cast %87 : vector<1x32x384xf32> to vector<32x384xf32>
    %c0_104 = arith.constant 0 : index
    %c0_105 = arith.constant 0 : index
    %c20_106 = arith.constant 20 : index
    %89 = vector.load %arg13[%c0_104, %c0_105, %c20_106] : memref<1x32x422xf32, #tpu.memory_space<vmem>>, vector<1x32x384xf32>
    %90 = vector.shape_cast %89 : vector<1x32x384xf32> to vector<32x384xf32>
    %c0_107 = arith.constant 0 : index
    %c0_108 = arith.constant 0 : index
    %c36_109 = arith.constant 36 : index
    %91 = vector.load %arg13[%c0_107, %c0_108, %c36_109] : memref<1x32x422xf32, #tpu.memory_space<vmem>>, vector<1x32x384xf32>
    %92 = vector.shape_cast %91 : vector<1x32x384xf32> to vector<32x384xf32>
    %c0_110 = arith.constant 0 : index
    %c0_111 = arith.constant 0 : index
    %c37_112 = arith.constant 37 : index
    %93 = vector.load %arg13[%c0_110, %c0_111, %c37_112] : memref<1x32x422xf32, #tpu.memory_space<vmem>>, vector<1x32x384xf32>
    %94 = vector.shape_cast %93 : vector<1x32x384xf32> to vector<32x384xf32>
    %c0_113 = arith.constant 0 : index
    %c0_114 = arith.constant 0 : index
    %c38_115 = arith.constant 38 : index
    %95 = vector.load %arg13[%c0_113, %c0_114, %c38_115] : memref<1x32x422xf32, #tpu.memory_space<vmem>>, vector<1x32x384xf32>
    %96 = vector.shape_cast %95 : vector<1x32x384xf32> to vector<32x384xf32>
    %97 = tpu.concatenate %80, %82, %84, %86, %88, %90, %92, %94, %96 in 0 : vector<32x384xf32>, vector<32x384xf32>, vector<32x384xf32>, vector<32x384xf32>, vector<32x384xf32>, vector<32x384xf32>, vector<32x384xf32>, vector<32x384xf32>, vector<32x384xf32> -> vector<288x384xf32>
    %c0_116 = arith.constant 0 : index
    %c0_117 = arith.constant 0 : index
    %98 = vector.load %arg10[%c0_116, %c0_117] : memref<4x288xf32, #tpu.memory_space<vmem>>, vector<4x288xf32>
    %cst_118 = arith.constant dense<0.000000e+00> : vector<4x384xf32>
    %99 = tpu.matmul %98, %97, %cst_118 {dimension_numbers = #tpu.dot_dimension_numbers<[1], [0], [0], [1], [0, 0, 1, 1], [], []>} : vector<4x288xf32>, vector<288x384xf32>, vector<4x384xf32> -> vector<4x384xf32>
    %c0_119 = arith.constant 0 : index
    %c0_120 = arith.constant 0 : index
    %100 = vector.load %arg11[%c0_119, %c0_120] : memref<4x1xf32, #tpu.memory_space<vmem>>, vector<4x1xf32>
    %101 = vector.broadcast %100 : vector<4x1xf32> to vector<4x384xf32>
    %102 = arith.addf %99, %101 : vector<4x384xf32>
    %cst_121 = arith.constant 1.000000e-01 : f32
    %103 = vector.broadcast %cst_121 : f32 to vector<4x384xf32>
    %104 = arith.mulf %43, %103 : vector<4x384xf32>
    %105 = arith.addf %102, %104 : vector<4x384xf32>
    %106 = arith.addf %105, %36 : vector<4x384xf32>
    %c0_122 = arith.constant 0 : index
    %c0_123 = arith.constant 0 : index
    %c0_124 = arith.constant 0 : index
    %107 = vector.load %arg12[%c0_122, %c0_123, %c0_124] : memref<1x4x384xf32, #tpu.memory_space<vmem>>, vector<1x4x384xf32>
    %108 = vector.shape_cast %107 : vector<1x4x384xf32> to vector<4x384xf32>
    %109 = vector.shape_cast %106 : vector<4x384xf32> to vector<1x4x384xf32>
    tpu.vector_store %arg12[%c0_122, %c0_123, %c0_124], %109 {strides = array<i32>} : memref<1x4x384xf32, #tpu.memory_space<vmem>>, vector<1x4x384xf32>,
    return
  }
  func.func @transform_0(%arg0: i32) -> (i32, i32, i32) {
    %c0_i32 = arith.constant 0 : i32
    %c0_i32_0 = arith.constant 0 : i32
    %c0_i32_1 = arith.constant 0 : i32
    return %arg0, %c0_i32, %c0_i32_0 : i32, i32, i32
  }
  func.func @transform_1(%arg0: i32) -> (i32, i32, i32, i32) {
    %c0_i32 = arith.constant 0 : i32
    %c0_i32_0 = arith.constant 0 : i32
    %c0_i32_1 = arith.constant 0 : i32
    %c0_i32_2 = arith.constant 0 : i32
    return %arg0, %c0_i32, %c0_i32_0, %c0_i32_1 : i32, i32, i32, i32
  }
  func.func @transform_2(%arg0: i32) -> (i32, i32) {
    %c0_i32 = arith.constant 0 : i32
    %c0_i32_0 = arith.constant 0 : i32
    %c0_i32_1 = arith.constant 0 : i32
    return %c0_i32, %c0_i32_0 : i32, i32
  }
  func.func @transform_3(%arg0: i32) -> (i32, i32) {
    %c0_i32 = arith.constant 0 : i32
    %c0_i32_0 = arith.constant 0 : i32
    %c0_i32_1 = arith.constant 0 : i32
    return %c0_i32, %c0_i32_0 : i32, i32
  }
  func.func @transform_4(%arg0: i32) -> (i32, i32) {
    %c0_i32 = arith.constant 0 : i32
    %c0_i32_0 = arith.constant 0 : i32
    %c0_i32_1 = arith.constant 0 : i32
    return %c0_i32, %c0_i32_0 : i32, i32
  }
  func.func @transform_5(%arg0: i32) -> (i32, i32) {
    %c0_i32 = arith.constant 0 : i32
    %c0_i32_0 = arith.constant 0 : i32
    %c0_i32_1 = arith.constant 0 : i32
    return %c0_i32, %c0_i32_0 : i32, i32
  }
  func.func @transform_6(%arg0: i32) -> (i32, i32) {
    %c0_i32 = arith.constant 0 : i32
    %c0_i32_0 = arith.constant 0 : i32
    %c0_i32_1 = arith.constant 0 : i32
    return %c0_i32, %c0_i32_0 : i32, i32
  }
  func.func @transform_7(%arg0: i32) -> (i32, i32) {
    %c0_i32 = arith.constant 0 : i32
    %c0_i32_0 = arith.constant 0 : i32
    %c0_i32_1 = arith.constant 0 : i32
    return %c0_i32, %c0_i32_0 : i32, i32
  }
  func.func @transform_8(%arg0: i32) -> (i32, i32) {
    %c0_i32 = arith.constant 0 : i32
    %c0_i32_0 = arith.constant 0 : i32
    %c0_i32_1 = arith.constant 0 : i32
    return %c0_i32, %c0_i32_0 : i32, i32
  }
  func.func @transform_9(%arg0: i32) -> (i32, i32) {
    %c0_i32 = arith.constant 0 : i32
    %c0_i32_0 = arith.constant 0 : i32
    %c0_i32_1 = arith.constant 0 : i32
    return %c0_i32, %c0_i32_0 : i32, i32
  }
  func.func @transform_10(%arg0: i32) -> (i32, i32) {
    %c0_i32 = arith.constant 0 : i32
    %c0_i32_0 = arith.constant 0 : i32
    %c0_i32_1 = arith.constant 0 : i32
    return %c0_i32, %c0_i32_0 : i32, i32
  }
  func.func @transform_11(%arg0: i32) -> (i32, i32, i32) {
    %c0_i32 = arith.constant 0 : i32
    %c0_i32_0 = arith.constant 0 : i32
    %c0_i32_1 = arith.constant 0 : i32
    return %arg0, %c0_i32, %c0_i32_0 : i32, i32, i32
  }
}

</mosaic_0001>

<bundles_post_ra>
// kernel: tpu_custom_call.1
= control target key start
LH: loop header
LB: loop body
LE: loop exit
PB: predicated region body
PF: predicated region fallthrough
CT: control target
= control target key end

     0   :  { %s6077_s0 = inlined_call_operand.hbm [shape: f32[2,4,384], index: 0, kind: input, shape index: {}]   ;;  %s6078_s1 = inlined_call_operand.hbm [shape: f32[2,1,32,422], index: 1, kind: input, shape index: {}]   ;;  %s6079_s2 = inlined_call_operand.vmem [shape: f32[1,384], index: 2, kind: input, shape index: {}]   ;;  %s6080_s3 = inlined_call_operand.hbm [shape: f32[4,288], index: 3, kind: input, shape index: {}]   ;;  %s6081_s4 = inlined_call_operand.vmem [shape: f32[4,1], index: 4, kind: input, shape index: {}]   ;;  %s6082_s5 = inlined_call_operand.hbm [shape: f32[4,288], index: 5, kind: input, shape index: {}]   ;;  %s6083_s6 = inlined_call_operand.vmem [shape: f32[4,1], index: 6, kind: input, shape index: {}]   ;;  %s6084_s7 = inlined_call_operand.vmem [shape: f32[32,36], index: 7, kind: input, shape index: {}]   ;;  %s6085_s8 = inlined_call_operand.vmem [shape: f32[32,1], index: 8, kind: input, shape index: {}]   ;;  %s6086_s9 = inlined_call_operand.hbm [shape: f32[4,288], index: 9, kind: input, shape index: {}]   ;;  %s6087_s10 = inlined_call_operand.vmem [shape: f32[4,1], index: 10, kind: input, shape index: {}]   ;;  %s6088_s11 = inlined_call_operand.hbm [shape: f32[2,4,384], index: 11, kind: output, shape index: {}]  }
   0x1   :  { %6242 = sst [smem:[#allocation76_spill]] %s6080_s3 }
   0x2   :  { %6243 = sst [smem:[#allocation77_spill]] %s6082_s5 }
   0x3   :  { %6244 = sst [smem:[#allocation78_spill]] %s6086_s9 }
   0x4   :  { %16 = vsyncpa [#allocation4], 0 }
   0x5   :  { %18 = vsyncpa [#allocation4 + $0x1], 0 }
   0x6   :  { %19 = vsyncpa [#allocation7], 0 }
   0x7   :  { %21 = vsyncpa [#allocation7 + $0x1], 0 }
   0x8   :  { %22 = vsyncpa [#allocation10], 0 }
   0x9   :  { %23 = vsyncpa [#allocation5], 0 }
   0xa   :  { %25 = vsyncpa [#allocation5 + $0x1], 0  ;;  %s3823_s17 = smov 0   ;;  %s3825_s18 = smov 0  }
   0xb   :  { %s3827_s19 = smov 0   ;;  %s3829_s20 = smov 0  }
   0xc LB: > { %6245 = sst [smem:[#allocation18_spill]] %s3733_s17  ;;  %s3844_s21 = sadd.s32 4294967295, %s3745_s20   ;;  %s3745_s20 = sphi %s3829_s20, %s6507_s20   ;;  %s3741_s19 = sphi %s3827_s19, %s6509_s19   ;;  %s3737_s18 = sphi %s3825_s18, %s6511_s18   ;;  %s3733_s17 = sphi %s3823_s17, %s6510_s17  }
   0xd   : > { %6246 = sst [smem:[#allocation19_spill]] %s3741_s19  ;;  %s2649_s22 = sadd.s32 4294967294, %s3745_s20  }
   0xe   : > { %p51_p0 = scmp.ne.s32.totalorder %s3737_s18, %s3733_s17  ;;  %p52_p1 = scmp.eq.s32.totalorder %s3844_s21, 0 }
   0xf   : > { %p290_p2 = scmp.eq.s32.totalorder %s3844_s21, 1  ;;  %p296_p3 = scmp.eq.s32.totalorder %s2649_s22, 1 }
  0x10   : > { %p3853_p4 = por %p52_p1, %p51_p0  ;;  %p2650_p5 = scmp.ge.s32.totalorder %s3745_s20, 1 }
  0x11   : > { %p3858_p6 = por %p296_p3, %p51_p0  ;;  %p303_p7 = scmp.lt.s32.totalorder %s3745_s20, 3 }
  0x12   : > { %s6250_s3 = sld [smem:[#allocation76_spill]]  ;;  %s3747_s29 = smov [#allocation8]  }
  0x13   : > { %s6248_s24 = scalar_select %p3858_p6, 1, 0 }
  0x14   : > { %p3866_p8 = pnand %p2650_p5, %p303_p7  ;;  %s320_s30 = sshll.u32 %s3747_s29, 4  ;;  %s321_s30 = int_to_ptr.vmem [resolvable:$true] %s320_s30 }
  0x15   : > { %6249 = sst [smem:[#allocation20_spill]] %s6248_s24  ;;  %s3748_s25 = smov [#allocation9]  }
  0x16   : > { %p2714_p10 = pneg %p3866_p8  ;;  %s6252_s5 = sld [smem:[#allocation77_spill]] }
  0x17   : > { %s6253_s9 = sld [smem:[#allocation78_spill]]  ;;  %s335_s26 = sshll.u32 %s3748_s25, 4  ;;  %s336_s26 = int_to_ptr.vmem [resolvable:$true] %s335_s26 }
  0x18   : > { %s318_s27 = sshll.u32 %s6250_s3, 4  ;;  %p2715_p11 = pnand %p2714_p10, %p52_p1  ;;  %s319_s27 = int_to_ptr.hbm [resolvable:$true] %s318_s27 }
  0x19   : > { %s3749_s29 = smov [#allocation11]   ;;  %s3882_s13 = sadd.s32 1, %s3745_s20  }
  0x1a   : > { %2717 = dma.hbm_to_vmem [thread:$0]  (!%p2715_p11), %s319_s27, 192, %s321_s30, [#allocation7]  }
  0x1b   : > { %s356_s12 = sshll.u32 %s3749_s29, 4  ;;  %6254 = sst [smem:[#allocation21_spill]] %s3882_s13  ;;  %s357_s12 = int_to_ptr.vmem [resolvable:$true] %s356_s12 }
  0x1c   : > { %s333_s14 = sshll.u32 %s6252_s5, 4  ;;  %s35_s15 = ssub.s32 %s3745_s20, %s3882_s13  ;;  %s334_s14 = int_to_ptr.hbm [resolvable:$true] %s333_s14 }
  0x1d   : > { %s354_s22 = sshll.u32 %s6253_s9, 4  ;;  %s38_s16 = sadd.s32 1, %s3741_s19  ;;  %s355_s22 = int_to_ptr.hbm [resolvable:$true] %s354_s22 }
  0x1e   : > { %2720 = dma.hbm_to_vmem [thread:$0]  (!%p2715_p11), %s334_s14, 192, %s336_s26, [#allocation10]  }
  0x1f   : > { %2723 = dma.hbm_to_vmem [thread:$0]  (!%p2715_p11), %s355_s22, 192, %s357_s12, [#allocation10]  }
  0x20   : > { %p36_p12 = scmp.eq.s32.totalorder %s35_s15, 0  ;;  %p45_p13 = scmp.ne.s32.totalorder %s3741_s19, %s3737_s18 }
  0x21   : > { %p46_p0 = scmp.eq.s32.totalorder %s3745_s20, 0  ;;  %p2738_p3 = scmp.lt.s32.totalorder %s3745_s20, 2 }
  0x22   : > { %s3892_s27 = scalar_select %p36_p12, %s3741_s19, %s38_s16  }
  0x23   : > { %p47_p5 = por %p46_p0, %p45_p13  ;;  %p3896_p7 = por %p290_p2, %p45_p13 }
  0x24   : > { %6255 = sst [smem:[#allocation22_spill]] %s3892_s27  ;;  %s370_s14 = sand.u32 1, %s3741_s19  }
  0x25   : > { %s6256_s30 = scalar_select %p3896_p7, 1, 0 }
  0x26   : > { %s2693_s25 = smul.u32 12, %s3745_s20  ;;  %p3905_p10 = pnand %p2738_p3, %p47_p5 }
  0x27   : > { %6257 = sst [smem:[#allocation23_spill]] %s6256_s30  ;;  %s2692_s26 = smul.u32 12, %s370_s14 }
  0x28   : > { %s379_s22 = scalar_lea.hbm %s6077_s0, %s2693_s25  ;;  %s371_s9 = scalar_lea.sflag [#allocation4], %s370_s14 }
  0x29   : > { %s381_s15 = sshll.u32 %s379_s22, 4  ;;  %s374_s16 = scalar_lea.vmem [#allocation3], %s2692_s26  ;;  %s382_s15 = int_to_ptr.hbm [resolvable:$true] %s381_s15 }
  0x2a   : > { %s383_s5 = sshll.u32 %s374_s16, 4  ;;  %s3607_s27 = sshra.s32 %s382_s15, 4  ;;  %s384_s5 = int_to_ptr.vmem [resolvable:$true] %s383_s5  ;;  %s3608_s27 = int_to_ptr.hbm [resolvable:$true] %s3607_s27 }
  0x2b   : > { %s3609_s19 = scalar_lea.hbm %s3608_s27, 12  ;;  %p3611_p11 = pneg %p3905_p10 }
  0x2c   : > { %p3610_p2 = scmp.ne.s32.totalorder %s3608_s27, %s3609_s19  ;;  %s3614_s29 = scalar_lea.hbm %s6077_s0, 24 }
  0x2d   : > { %p3615_p0 = scmp.lt.s32.totalorder %s3608_s27, %s6077_s0  ;;  %p3616_p3 = scmp.lt.s32.totalorder %s3614_s29, %s3609_s19 }
  0x2e   : > { %p3612_p12 = pnand %p3611_p11, %p3610_p2 }
  0x2f   : > { %p3617_p5 = por %p3616_p3, %p3615_p0 }
  0x30   : > { %p3613_p13 = pneg %p3612_p12 }
  0x32   : > { %p3618_p9 = pnand %p3617_p5, %p3613_p13 }
  0x34   : > { %3621 = shalt.err (!%p3618_p9)
}
  0x35   : > { %2727 = dma.hbm_to_vmem [thread:$0]  (!%p3905_p10), %s382_s15, 192, %s384_s5, %s371_s9  }
  0x36   : > { %s2656_s26 = sshll.u32 %s370_s14, 7  ;;  %s390_s16 = sand.u32 1, %s3745_s20  }
  0x37   : > { %s394_s24 = scalar_lea.vmem [#allocation6], %s2656_s26  ;;  %s2691_s3 = sshll.u32 %s3745_s20, 7 }
  0x38   : > { %s402_s17 = sshll.u32 %s394_s24, 4  ;;  %s399_s13 = scalar_lea.hbm %s6078_s1, %s2691_s3  ;;  %s403_s17 = int_to_ptr.vmem [resolvable:$true] %s402_s17 }
  0x39   : > { %s400_s19 = sshll.u32 %s399_s13, 4  ;;  %s391_s27 = scalar_lea.sflag [#allocation7], %s390_s16  ;;  %s401_s19 = int_to_ptr.hbm [resolvable:$true] %s400_s19 }
  0x3a   : > { %s3637_s29 = sshra.s32 %s401_s19, 4  ;;  %s3644_s24 = scalar_lea.hbm %s6078_s1, 256  ;;  %s3638_s29 = int_to_ptr.hbm [resolvable:$true] %s3637_s29 }
  0x3b   : > { %s3639_s22 = scalar_lea.hbm %s3638_s29, 128  ;;  %p3645_p13 = scmp.lt.s32.totalorder %s3638_s29, %s6078_s1 }
  0x3c   : > { %p3640_p9 = scmp.ne.s32.totalorder %s3638_s29, %s3639_s22  ;;  %p3646_p0 = scmp.lt.s32.totalorder %s3644_s24, %s3639_s22 }
  0x3e   : > { %p3642_p2 = pnand %p3640_p9, %p3611_p11  ;;  %p3647_p3 = por %p3646_p0, %p3645_p13 }
  0x40   : > { %p3643_p12 = pneg %p3642_p2 }
  0x42   : > { %p3648_p5 = pnand %p3647_p3, %p3643_p12 }
  0x44   : > { %3651 = shalt.err (!%p3648_p5)
}
  0x45   : > { %s3750_s30 = smov 512   ;;  %s3751_s26 = smov 32  }
  0x46   : > { %2730 = dma.hbm_to_vmem [thread:$0]  (!%p3905_p10), %s401_s19, 2048, %s403_s17, %s391_s27, %s3750_s30, %s3750_s30, %s3751_s26  }
  0x47   : > { %414 = sbr.rel (%p3866_p8) target bundleno = 1541 (0x605), region = 64 }
  0x4c   : > { %s3941_s16 = sand.u32 1, %s3737_s18  }
  0x4d   : > { %s2694_s3 = smul.u32 12, %s3941_s16  ;;  %s417_s25 = scalar_lea.sflag [#allocation4], %s3941_s16 }
  0x4f   : > { %s3947_s13 = scalar_lea.vmem [#allocation3], %s2694_s3 }
  0x50   : > { %3712 = dma.done.wait (%p3853_p4), %s417_s25, 192  }
  0x51   : > { %3714 = vsyncadd (%p3853_p4), %s417_s25, 4294967104  ;;  %s426_s17 = sand.u32 1, %s3844_s21   ;;  %s2660_s28 = sshll.u32 %s3941_s16, 7 }
  0x52   : > { %s427_s12 = scalar_lea.sflag [#allocation7], %s426_s17  ;;  %s3955_s19 = scalar_lea.vmem [#allocation6], %s2660_s28 }
  0x53   : > { %3716 = dma.done.wait (%p3853_p4), %s427_s12, 2048  }
  0x54   : > { %3718 = vsyncadd (%p3853_p4), %s427_s12, 4294965248 }
  0x55   : > { %3720 = dma.done.wait (%p52_p1), [#allocation7], 192  }
  0x56   : > { %3722 = vsyncadd (%p52_p1), [#allocation7], 4294967104 }
  0x57   : > { %3724 = dma.done.wait (%p52_p1), [#allocation10], 384  }
  0x58   : > { %3726 = vsyncadd (%p52_p1), [#allocation10], 4294966912  ;;  %v3970_v0 = vld [vmem:[%s3955_s19 + $0x40] sm:$0xff]  ;;  %v3973_v1 = vld [vmem:[%s3955_s19 + $0x48] sm:$0xff]  ;;  %s3752_s23 = smov 127   ;;  %s3753_s27 = smov 126  }
  0x59   : > { %v3976_v2 = vld [vmem:[%s3955_s19 + $0x20] sm:$0xff]  ;;  %v3980_v3 = vpack.i.bf16 %v3973_v1, %v3970_v0  ;;  %v3983_v4 = vld [vmem:[%s3955_s19 + $0x28] sm:$0xff]  ;;  %v4002_v9 = vld [vmem:[%s3955_s19 + $0x50] sm:$0xff]  ;;  %s3754_s29 = smov 110   ;;  %s3755_s22 = smov 109   ;;  %vm678_vm0 = vcmask 900096  }
  0x5a   : > { %v3986_v5 = vld [vmem:[%s3955_s19] sm:$0xff]  ;;  %v3989_v6 = vld [vmem:[%s3955_s19 + $0x8] sm:$0xff]  ;;  %v3993_v7 = vpack.i.bf16 %v3983_v4, %v3976_v2  ;;  %v4009_v10 = vld [vmem:[%s3955_s19 + $0x58] sm:$0xff]  ;;  %s3756_s5 = smov 91   ;;  %s3757_s9 = smov 92   ;;  %vm906_vm1 = vcmask 744448  }
  0x5b   : > { %v3997_v8 = vpack.i.bf16 %v3989_v6, %v3986_v5  ;;  %2812 = vrot.lane.b32.xlu2 %v3980_v3, %s3752_s23  ;;  %v4012_v11 = vld [vmem:[%s3955_s19 + $0x30] sm:$0xff]  ;;  %v4015_v12 = vld [vmem:[%s3955_s19 + $0x38] sm:$0xff]  ;;  %v2816_v15 = vpack.i.bf16 %v4009_v10, %v4002_v9  ;;  %v4037_v20 = vld [vmem:[%s3955_s19 + $0x60] sm:$0xff]  ;;  %s3758_s24 = smov 108   ;;  %s3759_s14 = smov 90   ;;  %vm621_vm2 = vcmask 1031168  }
  0x5c   : > { %2802 = vrot.lane.b32.xlu1 %v3993_v7, %s3752_s23  ;;  %v4018_v13 = vld [vmem:[%s3955_s19 + $0x10] sm:$0xff]  ;;  %v4021_v14 = vld [vmem:[%s3955_s19 + $0x18] sm:$0xff]  ;;  %v2806_v16 = vpack.i.bf16 %v4015_v12, %v4012_v11  ;;  %v4040_v21 = vld [vmem:[%s3955_s19 + $0x68] sm:$0xff]  ;;  %vm735_vm3 = vcmask 891904   ;;  %vm564_vm4 = vcmask 1039360   ;;  %vm849_vm5 = vcmask 752640  }
  0x5d   : > { %2792 = vrot.lane.b32.xlu0 %v3997_v8, %s3752_s23  ;;  %v2796_v17 = vpack.i.bf16 %v4021_v14, %v4018_v13  ;;  %v511_v18 = vld [vmem:[%s3955_s19 + $0x70] sm:$0xff]  ;;  %v4034_v19 = vld [vmem:[%s3955_s19 + $0x78] sm:$0xff]  ;;  %v4045_v23 = vpack.i.bf16 %v4040_v21, %v4037_v20  ;;  %v3011_v27 = vpack.i.bf16 %v4018_v13, %v4009_v10  ;;  %v3016_v33 = vpack.i.bf16 %v4021_v14, %v4015_v12  ;;  %s3761_s17 = smov 19   ;;  %s2512_s12 = scalar_lea.sflag [#allocation5], %s3941_s16 }
  0x5e   : > { %v2826_v22 = vpack.i.bf16 %v4034_v19, %v511_v18  ;;  %v3006_v28 = vpack.i.bf16 %v4012_v11, %v4034_v19  ;;  %v3001_v29 = vpack.i.bf16 %v4002_v9, %v511_v18  ;;  %v3101_v52 = vpack.i.bf16 %v4009_v10, %v4034_v19  ;;  %s3687_s26 = scalar_lea.hbm %s6088_s11, 24 }
  0x5f   : > { %v3096_v53 = vpack.i.bf16 %v4018_v13, %v4012_v11  ;;  %vm792_vm6 = vcmask 883712   ;;  %vm963_vm7 = vcmask 736256   ;;  %vm1006_vm8 = vcmask 261120  }
  0x60   : > { %vm1396_vm9 = vcmask 1043456   ;;  %vm495_vm12 = vcmask 310424   ;;  %vm490_vm13 = vcmask 154624   ;;  %vm1427_vm14 = vcmask 150528  }
  0x61   : > { %vm1423_vm15 = vcmask 1043608  }
  0x63   : > { %2817 = vrot.lane.b32.xlu2 %v2816_v15, %s3752_s23 }
  0x64   : > { %2807 = vrot.lane.b32.xlu1 %v2806_v16, %s3752_s23 }
  0x65   : > { %2797 = vrot.lane.b32.xlu0 %v2796_v17, %s3752_s23 }
  0x6b   : > { %2832 = vrot.lane.b32.xlu2 %v3997_v8, %s3753_s27 }
  0x6c   : > { %2827 = vrot.lane.b32.xlu1 %v2826_v22, %s3752_s23 }
  0x6d   : > { %2822 = vrot.lane.b32.xlu0 %v4045_v23, %s3752_s23 }
  0x73   : > { %2847 = vrot.lane.b32.xlu2 %v2806_v16, %s3753_s27 }
  0x74   : > { %2842 = vrot.lane.b32.xlu1 %v3993_v7, %s3753_s27 }
  0x75   : > { %2837 = vrot.lane.b32.xlu0 %v2796_v17, %s3753_s27 }
  0x7b   : > { %2862 = vrot.lane.b32.xlu2 %v4045_v23, %s3753_s27 }
  0x7c   : > { %2857 = vrot.lane.b32.xlu1 %v2816_v15, %s3753_s27 }
  0x7d   : > { %2852 = vrot.lane.b32.xlu0 %v3980_v3, %s3753_s27 }
  0x83   : > { %2877 = vrot.lane.b32.xlu2 %v2796_v17, %s3754_s29 }
  0x84   : > { %2872 = vrot.lane.b32.xlu1 %v3997_v8, %s3754_s29 }
  0x85   : > { %2867 = vrot.lane.b32.xlu0 %v2826_v22, %s3753_s27 }
  0x8b   : > { %2892 = vrot.lane.b32.xlu2 %v3980_v3, %s3754_s29 }
  0x8c   : > { %2887 = vrot.lane.b32.xlu1 %v2806_v16, %s3754_s29 }
  0x8d   : > { %2882 = vrot.lane.b32.xlu0 %v3993_v7, %s3754_s29 }
  0x93   : > { %2907 = vrot.lane.b32.xlu2 %v2826_v22, %s3754_s29 }
  0x94   : > { %2902 = vrot.lane.b32.xlu1 %v4045_v23, %s3754_s29 }
  0x95   : > { %2897 = vrot.lane.b32.xlu0 %v2816_v15, %s3754_s29 }
  0x9b   : > { %2922 = vrot.lane.b32.xlu2 %v3993_v7, %s3755_s22 }
  0x9c   : > { %2917 = vrot.lane.b32.xlu1 %v2796_v17, %s3755_s22 }
  0x9d   : > { %2912 = vrot.lane.b32.xlu0 %v3997_v8, %s3755_s22 }
  0xa3   : > { %2937 = vrot.lane.b32.xlu2 %v4045_v23, %s3756_s5 }
  0xa4   : > { %2932 = vrot.lane.b32.xlu1 %v3980_v3, %s3755_s22 }
  0xa5   : > { %2927 = vrot.lane.b32.xlu0 %v2806_v16, %s3755_s22 }
  0xab   : > { %2952 = vrot.lane.b32.xlu2 %v3997_v8, %s3756_s5 }
  0xac   : > { %2947 = vrot.lane.b32.xlu1 %v3993_v7, %s3756_s5 }
  0xad   : > { %2942 = vrot.lane.b32.xlu0 %v3980_v3, %s3756_s5 }
  0xb3   : > { %2967 = vrot.lane.b32.xlu2 %v3993_v7, %s3757_s9 }
  0xb4   : > { %2962 = vrot.lane.b32.xlu1 %v3980_v3, %s3757_s9 }
  0xb5   : > { %2957 = vrot.lane.b32.xlu0 %v4045_v23, %s3757_s9  ;;  %v4096_v24 = vpop.permute.xlu2 %2812 }
  0xbb   : > { %2982 = vrot.lane.b32.xlu2 %v3980_v3, %s3758_s24 }
  0xbc   : > { %2977 = vrot.lane.b32.xlu1 %v4045_v23, %s3758_s24 }
  0xbd   : > { %2972 = vrot.lane.b32.xlu0 %v3997_v8, %s3757_s9  ;;  %v4104_v25 = vpop.permute.xlu2 %2817 }
  0xc3   : > { %2997 = vrot.lane.b32.xlu2 %v4045_v23, %s3755_s22 }
  0xc4   : > { %2992 = vrot.lane.b32.xlu1 %v3997_v8, %s3758_s24 }
  0xc5   : > { %2987 = vrot.lane.b32.xlu0 %v3993_v7, %s3758_s24  ;;  %v4112_v26 = vpop.permute.xlu2 %2832 }
  0xcb   : > { %3012 = vrot.lane.b32.xlu2 %v3011_v27, %s3756_s5 }
  0xcc   : > { %3007 = vrot.lane.b32.xlu1 %v3006_v28, %s3756_s5 }
  0xcd   : > { %3002 = vrot.lane.b32.xlu0 %v3001_v29, %s3756_s5  ;;  %v4122_v30 = vpop.permute.xlu2 %2847 }
  0xce   : > { %v4124_v31 = vpop.permute.xlu1 %2802 }
  0xcf   : > { %v4126_v32 = vpop.permute.xlu0 %2792 }
  0xd3   : > { %3027 = vrot.lane.b32.xlu2 %v3006_v28, %s3757_s9 }
  0xd4   : > { %3022 = vrot.lane.b32.xlu1 %v3001_v29, %s3757_s9 }
  0xd5   : > { %3017 = vrot.lane.b32.xlu0 %v3016_v33, %s3756_s5  ;;  %v4133_v34 = vpop.permute.xlu2 %2862 }
  0xd6   : > { %v4135_v35 = vpop.permute.xlu1 %2807 }
  0xd7   : > { %v4137_v36 = vpop.permute.xlu0 %2797 }
  0xd8   : > { %6259 = vst [vmem:[#allocation24_spill] sm:$0xff] %v4137_v36 }
  0xdb   : > { %3042 = vrot.lane.b32.xlu2 %v3001_v29, %s3758_s24 }
  0xdc   : > { %3037 = vrot.lane.b32.xlu1 %v3016_v33, %s3757_s9 }
  0xdd   : > { %3032 = vrot.lane.b32.xlu0 %v3011_v27, %s3757_s9  ;;  %v4142_v37 = vpop.permute.xlu2 %2877 }
  0xde   : > { %v4144_v38 = vpop.permute.xlu1 %2827  ;;  %v6098_v17 = vunpack.i.l.bf16 %v4142_v37 }
  0xdf   : > { %v4146_v39 = vpop.permute.xlu0 %2822 }
  0xe3   : > { %3057 = vrot.lane.b32.xlu2 %v3006_v28, %s3758_s24  ;;  %v2864_v28 = vunpack.i.l.bf16 %v4133_v34 }
  0xe4   : > { %3052 = vrot.lane.b32.xlu1 %v3980_v3, %s3759_s14 }
  0xe5   : > { %3047 = vrot.lane.b32.xlu0 %v4045_v23, %s3759_s14  ;;  %v2893_v40 = vpop.permute.xlu2 %2892 }
  0xe6   : > { %v4153_v41 = vpop.permute.xlu1 %2842  ;;  %v2895_v61 = vunpack.i.h.bf16 %v2893_v40  ;;  %v2894_v62 = vunpack.i.l.bf16 %v2893_v40 }
  0xe7   : > { %v4155_v42 = vpop.permute.xlu0 %2837 }
  0xe8   : > { %v4212_v22 = vsel %vm678_vm0, %v2894_v62, %v2895_v61 }
  0xe9   : > { %6261 = vst [vmem:[#allocation26_spill] sm:$0xff] %v4212_v22 }
  0xeb   : > { %3072 = vrot.lane.b32.xlu2 %v3997_v8, %s3759_s14 }
  0xec   : > { %3067 = vrot.lane.b32.xlu1 %v3011_v27, %s3758_s24  ;;  %v2865_v27 = vunpack.i.h.bf16 %v4133_v34 }
  0xed   : > { %3062 = vrot.lane.b32.xlu0 %v3993_v7, %s3759_s14  ;;  %v2908_v43 = vpop.permute.xlu2 %2907 }
  0xee   : > { %v4162_v44 = vpop.permute.xlu1 %2857  ;;  %v2910_v45 = vunpack.i.h.bf16 %v2908_v43  ;;  %v2909_v46 = vunpack.i.l.bf16 %v2908_v43  ;;  %v4255_v62 = vsel %vm621_vm2, %v2864_v28, %v2865_v27 }
  0xef   : > { %v4164_v47 = vpop.permute.xlu0 %2852  ;;  %6264 = vst [vmem:[#allocation29_spill] sm:$0xff] %v4255_v62 }
  0xf0   : > { %v4167_v48 = vsel %vm678_vm0, %v2909_v46, %v2910_v45  ;;  %v6096_v45 = vunpack.i.l.bf16 %v4162_v44  ;;  %v2855_v34 = vunpack.i.h.bf16 %v4164_v47 }
  0xf3   : > { %3087 = vrot.lane.b32.xlu2 %v3001_v29, %s3755_s22 }
  0xf4   : > { %3082 = vrot.lane.b32.xlu1 %v3001_v29, %s3759_s14 }
  0xf5   : > { %3077 = vrot.lane.b32.xlu0 %v3016_v33, %s3758_s24  ;;  %v4172_v49 = vpop.permute.xlu2 %2922 }
  0xf6   : > { %v2873_v50 = vpop.permute.xlu1 %2872 }
  0xf7   : > { %v4174_v51 = vpop.permute.xlu0 %2867  ;;  %v2875_v18 = vunpack.i.h.bf16 %v2873_v50  ;;  %v2874_v19 = vunpack.i.l.bf16 %v2873_v50 }
  0xf8   : > { %v6097_v29 = vunpack.i.l.bf16 %v4174_v51 }
  0xfb   : > { %3102 = vrot.lane.b32.xlu2 %v3101_v52, %s3759_s14 }
  0xfc   : > { %3097 = vrot.lane.b32.xlu1 %v3096_v53, %s3759_s14 }
  0xfd   : > { %3092 = vrot.lane.b32.xlu0 %v3101_v52, %s3755_s22  ;;  %v4183_v54 = vpop.permute.xlu2 %2937 }
  0xfe   : > { %v4185_v55 = vpop.permute.xlu1 %2887  ;;  %v6102_v56 = vunpack.i.h.bf16 %v4183_v54  ;;  %v2939_v57 = vunpack.i.l.bf16 %v4183_v54 }
  0xff   : > { %v2883_v58 = vpop.permute.xlu0 %2882  ;;  %v6099_v11 = vunpack.i.l.bf16 %v4185_v55 }
 0x100   : > { %v4192_v59 = vsel %vm906_vm1, %v2939_v57, %v6102_v56  ;;  %v2885_v12 = vunpack.i.h.bf16 %v2883_v58  ;;  %v2884_v13 = vunpack.i.l.bf16 %v2883_v58  ;;  %v4244_v58 = vsel %vm678_vm0, %v2874_v19, %v2875_v18 }
 0x101   : > { %1029 = vmatpush.msra.mxu1 %v4192_v59  ;;  %6263 = vst [vmem:[#allocation28_spill] sm:$0xff] %v4244_v58  ;;  %v2825_v19 = vunpack.i.h.bf16 %v4146_v39  ;;  %v6112_v56 = vunpack.i.l.bf16 %v4137_v36 }
 0x102   : > { %v4225_v40 = vsel %vm678_vm0, %v2884_v13, %v2885_v12  ;;  %v4230_v43 = vsel %vm678_vm0, %v2885_v12, %v6099_v11  ;;  %v4282_v13 = vsel %vm621_vm2, %v2855_v34, %v6096_v45  ;;  %v2814_v45 = vunpack.i.l.bf16 %v4096_v24 }
 0x103   : > { %6262 = vst [vmem:[#allocation27_spill] sm:$0xff] %v4225_v40 }
 0x104   : > { %6266 = vst [vmem:[#allocation31_spill] sm:$0xff] %v4282_v13 }
 0x105   : > { %3107 = vrot.lane.b32.xlu0 %v3016_v33, %s3759_s14  ;;  %v4196_v60 = vpop.permute.xlu2 %2952 }
 0x106   : > { %v2903_v63 = vpop.permute.xlu1 %2902 }
 0x107   : > { %v2898_v3 = vpop.permute.xlu0 %2897  ;;  %v2905_v7 = vunpack.i.h.bf16 %v2903_v63  ;;  %v2904_v8 = vunpack.i.l.bf16 %v2903_v63  ;;  %v2845_v63 = vunpack.i.h.bf16 %v4153_v41 }
 0x108   : > { %v2900_v9 = vunpack.i.h.bf16 %v2898_v3  ;;  %v2899_v10 = vunpack.i.l.bf16 %v2898_v3  ;;  %v2844_v3 = vunpack.i.l.bf16 %v4153_v41  ;;  %v2834_v41 = vunpack.i.l.bf16 %v4112_v26 }
 0x109   : > { %v4200_v14 = vsel %vm678_vm0, %v2904_v8, %v2905_v7  ;;  %v4203_v15 = vsel %vm678_vm0, %v2905_v7, %v2909_v46  ;;  %v2854_v46 = vunpack.i.l.bf16 %v4164_v47  ;;  %v4249_v47 = vsel %vm678_vm0, %v2875_v18, %v6098_v17 }
 0x10a   : > { %6260 = vst [vmem:[#allocation25_spill] sm:$0xff] %v4200_v14  ;;  %v4206_v16 = vsel %vm678_vm0, %v2899_v10, %v2900_v9  ;;  %1009 = vmatpush.msra.mxu0 %v4200_v14  ;;  %1069 = vmatpush.msra.mxu3 %v4203_v15  ;;  %v4215_v23 = vsel %vm678_vm0, %v2895_v61, %v2899_v10  ;;  %v6100_v61 = vunpack.i.l.bf16 %v4122_v30  ;;  %v2835_v9 = vunpack.i.h.bf16 %v4112_v26 }
 0x10b   : > { %v4262_v7 = vsel %vm621_vm2, %v2865_v27, %v6097_v29  ;;  %v6104_v10 = vunpack.i.l.bf16 %v4155_v42  ;;  %v4277_v12 = vsel %vm621_vm2, %v2854_v46, %v2855_v34  ;;  %v6105_v18 = vunpack.i.l.bf16 %v4144_v38 }
 0x10c   : > { %1010 = vmatpush.msra.mxu0 %v4212_v22  ;;  %1070 = vmatpush.msra.mxu3 %v4215_v23  ;;  %6265 = vst [vmem:[#allocation30_spill] sm:$0xff] %v4277_v12  ;;  %v2824_v26 = vunpack.i.l.bf16 %v4146_v39  ;;  %v4292_v28 = vsel %vm621_vm2, %v2844_v3, %v2845_v63  ;;  %v4297_v34 = vsel %vm621_vm2, %v2845_v63, %v6100_v61  ;;  %v2815_v46 = vunpack.i.h.bf16 %v4096_v24 }
 0x10d   : > { %v4222_v33 = vpop.permute.xlu2 %2967  ;;  %6267 = vst [vmem:[#allocation32_spill] sm:$0xff] %v4292_v28  ;;  %v6108_v29 = vunpack.i.l.bf16 %v4104_v25  ;;  %v6107_v39 = vunpack.i.h.bf16 %v4172_v49  ;;  %v4311_v63 = vsel %vm621_vm2, %v2834_v41, %v2835_v9  ;;  %v4316_v24 = vsel %vm621_vm2, %v2835_v9, %v6104_v10 }
 0x10e   : > { %v4235_v50 = vpop.permute.xlu1 %2917  ;;  %1011 = vmatpush.msra.mxu0 %v4225_v40  ;;  %1071 = vmatpush.msra.mxu3 %v4230_v43  ;;  %6268 = vst [vmem:[#allocation33_spill] sm:$0xff] %v4297_v34  ;;  %v2805_v61 = vunpack.i.h.bf16 %v4124_v31  ;;  %v4329_v41 = vsel %vm564_vm4, %v2825_v19, %v6105_v18  ;;  %v2795_v9 = vunpack.i.h.bf16 %v4126_v32  ;;  %v2794_v10 = vunpack.i.l.bf16 %v4126_v32 }
 0x10f   : > { %v4237_v52 = vpop.permute.xlu0 %2912  ;;  %v6101_v53 = vunpack.i.l.bf16 %v4235_v50  ;;  %6269 = vst [vmem:[#allocation34_spill] sm:$0xff] %v4311_v63  ;;  %v6276_v18 = vunpack.i.l.bf16 %v4135_v35  ;;  %v6293_v40 = vunpack.i.h.bf16 %v4172_v49 }
 0x110   : > { %v6103_v57 = vunpack.i.h.bf16 %v4237_v52  ;;  %1012 = vmatpush.msra.mxu0 %v4244_v58  ;;  %1072 = vmatpush.msra.mxu3 %v4249_v47  ;;  %6270 = vst [vmem:[#allocation35_spill] sm:$0xff] %v4316_v24 }
 0x111   : > { %6272 = vst [vmem:[#allocation37_spill] sm:$0xff] %v4329_v41 }
 0x112   : > { %v4269_v8 = vsel %vm735_vm3, %v6103_v57, %v6101_v53  ;;  %1013 = vmatpush.msra.mxu0 %v4255_v62  ;;  %1073 = vmatpush.msra.mxu3 %v4262_v7  ;;  %v2804_v53 = vunpack.i.l.bf16 %v4124_v31  ;;  %v4324_v57 = vsel %vm564_vm4, %v2824_v26, %v2825_v19  ;;  %v4344_v19 = vsel %vm564_vm4, %v2814_v45, %v2815_v46 }
 0x113   : > { %6271 = vst [vmem:[#allocation36_spill] sm:$0xff] %v4324_v57  ;;  %v4349_v26 = vsel %vm564_vm4, %v2815_v46, %v6108_v29  ;;  %v4368_v46 = vsel %vm564_vm4, %v2794_v10, %v2795_v9  ;;  %v6114_v10 = vunpack.i.h.bf16 %v4196_v60 }
 0x114   : > { %1014 = vmatpush.msra.mxu0 %v4277_v12  ;;  %1074 = vmatpush.msra.mxu3 %v4282_v13  ;;  %6273 = vst [vmem:[#allocation38_spill] sm:$0xff] %v4344_v19  ;;  %v4354_v32 = vsel %vm564_vm4, %v2804_v53, %v2805_v61  ;;  %v4373_v53 = vsel %vm564_vm4, %v2795_v9, %v6112_v56 }
 0x115   : > { %v4289_v27 = vpop.permute.xlu2 %2982  ;;  %6274 = vst [vmem:[#allocation39_spill] sm:$0xff] %v4349_v26 }
 0x116   : > { %v4302_v17 = vpop.permute.xlu1 %2932  ;;  %1015 = vmatpush.msra.mxu0 %v4292_v28  ;;  %1075 = vmatpush.msra.mxu3 %v4297_v34  ;;  %6275 = vst [vmem:[#allocation40_spill] sm:$0xff] %v4354_v32  ;;  %v1189_v34 = vld [vmem:[#allocation9] sm:$0xff] }
 0x117   : > { %v4304_v11 = vpop.permute.xlu0 %2927  ;;  %6278 = vst [vmem:[#allocation42_spill] sm:$0xff] %v4368_v46 }
 0x118   : > { %v6106_v3 = vunpack.i.l.bf16 %v4304_v11  ;;  %1016 = vmatpush.msra.mxu0 %v4311_v63  ;;  %1076 = vmatpush.msra.mxu3 %v4316_v24  ;;  %6279 = vst [vmem:[#allocation43_spill] sm:$0xff] %v4373_v53  ;;  %v6130_v63 = vunpack.i.h.bf16 %v4289_v27 }
 0x11a   : > { %v4336_v31 = vsel %vm735_vm3, %v6107_v39, %v6106_v3  ;;  %1017 = vmatpush.msra.mxu0 %v4324_v57  ;;  %1077 = vmatpush.msra.mxu3 %v4329_v41  ;;  %v4359_v3 = vsel %vm564_vm4, %v2805_v61, %v6276_v18  ;;  %v2954_v57 = vunpack.i.l.bf16 %v4196_v60 }
 0x11b   : > { %6277 = vst [vmem:[#allocation41_spill] sm:$0xff] %v4359_v3 }
 0x11c   : > { %1018 = vmatpush.msra.mxu0 %v4344_v19  ;;  %1078 = vmatpush.msra.mxu3 %v4349_v26 }
 0x11d   : > { %v4377_v18 = vpop.permute.xlu2 %2997 }
 0x11e   : > { %v4361_v39 = vpop.permute.xlu1 %2947  ;;  %1019 = vmatpush.msra.mxu0 %v4354_v32  ;;  %1079 = vmatpush.msra.mxu3 %v4359_v3  ;;  %v2999_v26 = vunpack.i.l.bf16 %v4377_v18 }
 0x11f   : > { %v4363_v45 = vpop.permute.xlu0 %2942  ;;  %v6115_v29 = vunpack.i.h.bf16 %v4361_v39  ;;  %v2949_v61 = vunpack.i.l.bf16 %v4361_v39 }
 0x120   : > { %v6113_v19 = vunpack.i.h.bf16 %v4363_v45  ;;  %v2944_v32 = vunpack.i.l.bf16 %v4363_v45  ;;  %1020 = vmatpush.msra.mxu0 %v4368_v46  ;;  %1080 = vmatpush.msra.mxu3 %v4373_v53  ;;  %v6318_v13 = vunpack.i.h.bf16 %v4363_v45 }
 0x121   : > { %v4393_v56 = vsel %vm906_vm1, %v2949_v61, %v6115_v29 }
 0x122   : > { %v4388_v9 = vsel %vm906_vm1, %v2944_v32, %v6113_v19  ;;  %1081 = vmatpush.msra.mxu3 %v4040_v21  ;;  %1021 = vmatpush.msra.mxu0 %v4037_v20  ;;  %v4403_v32 = vsel %vm906_vm1, %v2954_v57, %v6114_v10  ;;  %v2969_v10 = vunpack.i.l.bf16 %v4222_v33 }
 0x123   : > { %1030 = vmatpush.msra.mxu1 %v4388_v9  ;;  %6280 = vst [vmem:[#allocation44_spill] sm:$0xff] %v4403_v32 }
 0x124   : > { %1082 = vmatpush.msra.mxu3 %v3973_v1  ;;  %1022 = vmatpush.msra.mxu0 %v3970_v0  ;;  %v6120_v0 = vunpack.i.h.bf16 %v4222_v33 }
 0x125   : > { %1031 = vmatpush.msra.mxu1 %v4393_v56  ;;  %v4420_v29 = vpop.permute.xlu2 %3012 }
 0x126   : > { %v4406_v19 = vpop.permute.xlu1 %2962  ;;  %1083 = vmatpush.msra.mxu3 %v3983_v4  ;;  %1023 = vmatpush.msra.mxu0 %v3976_v2  ;;  %v4438_v2 = vsel %vm849_vm5, %v2969_v10, %v6120_v0  ;;  %v2984_v10 = vunpack.i.l.bf16 %v4289_v27  ;;  %v3014_v41 = vunpack.i.l.bf16 %v4420_v29 }
 0x127   : > { %v4408_v61 = vpop.permute.xlu0 %2957  ;;  %1032 = vmatpush.msra.mxu1 %v4403_v32  ;;  %v6117_v20 = vunpack.i.h.bf16 %v4406_v19  ;;  %v2964_v1 = vunpack.i.l.bf16 %v4406_v19  ;;  %6283 = vst [vmem:[#allocation47_spill] sm:$0xff] %v4438_v2 }
 0x128   : > { %v6118_v21 = vunpack.i.h.bf16 %v4408_v61  ;;  %v2959_v57 = vunpack.i.l.bf16 %v4408_v61  ;;  %1084 = vmatpush.msra.mxu3 %v3989_v6  ;;  %1024 = vmatpush.msra.mxu0 %v3986_v5  ;;  %v4468_v12 = vsel %vm792_vm6, %v2984_v10, %v6130_v63 }
 0x129   : > { %v4430_v46 = vsel %vm849_vm5, %v2964_v1, %v6117_v20  ;;  %6286 = vst [vmem:[#allocation50_spill] sm:$0xff] %v4468_v12 }
 0x12a   : > { %v4425_v4 = vsel %vm849_vm5, %v2959_v57, %v6118_v21  ;;  %6282 = vst [vmem:[#allocation46_spill] sm:$0xff] %v4430_v46 }
 0x12b   : > { %6281 = vst [vmem:[#allocation45_spill] sm:$0xff] %v4425_v4  ;;  %1033 = vmatpush.msra.mxu1 %v4425_v4 }
 0x12d   : > { %1034 = vmatpush.msra.mxu1 %v4430_v46  ;;  %v4462_v53 = vpop.permute.xlu2 %3027 }
 0x12e   : > { %v4440_v6 = vpop.permute.xlu1 %2977 }
 0x12f   : > { %v4442_v57 = vpop.permute.xlu0 %2972  ;;  %1035 = vmatpush.msra.mxu1 %v4438_v2  ;;  %v6125_v1 = vunpack.i.h.bf16 %v4440_v6  ;;  %v2979_v5 = vunpack.i.l.bf16 %v4440_v6 }
 0x130   : > { %v6126_v20 = vunpack.i.h.bf16 %v4442_v57  ;;  %v2974_v21 = vunpack.i.l.bf16 %v4442_v57 }
 0x131   : > { %v4459_v28 = vsel %vm792_vm6, %v2979_v5, %v6125_v1 }
 0x132   : > { %v4454_v0 = vsel %vm849_vm5, %v2974_v21, %v6126_v20  ;;  %6285 = vst [vmem:[#allocation49_spill] sm:$0xff] %v4459_v28 }
 0x133   : > { %6284 = vst [vmem:[#allocation48_spill] sm:$0xff] %v4454_v0  ;;  %1036 = vmatpush.msra.mxu1 %v4454_v0  ;;  %v2934_v0 = vunpack.i.l.bf16 %v4302_v17 }
 0x135   : > { %1037 = vmatpush.msra.mxu1 %v4459_v28  ;;  %v2924_v28 = vunpack.i.l.bf16 %v4172_v49  ;;  %v4496_v58 = vpop.permute.xlu2 %3042 }
 0x136   : > { %v4470_v3 = vpop.permute.xlu1 %2992  ;;  %v6164_v46 = vunpack.i.l.bf16 %v4496_v58 }
 0x137   : > { %v4472_v21 = vpop.permute.xlu0 %2987  ;;  %1038 = vmatpush.msra.mxu1 %v4468_v12  ;;  %v6135_v5 = vunpack.i.h.bf16 %v4470_v3  ;;  %v2994_v1 = vunpack.i.l.bf16 %v4470_v3  ;;  %v4522_v24 = vsel %vm735_vm3, %v2924_v28, %v6293_v40 }
 0x138   : > { %v6134_v20 = vunpack.i.h.bf16 %v4472_v21  ;;  %v2989_v62 = vunpack.i.l.bf16 %v4472_v21  ;;  %6294 = vst [vmem:[#allocation55_spill] sm:$0xff] %v4522_v24 }
 0x139   : > { %v4489_v63 = vsel %vm792_vm6, %v2994_v1, %v6135_v5  ;;  %v2914_v1 = vunpack.i.l.bf16 %v4237_v52 }
 0x13a   : > { %v4484_v10 = vsel %vm792_vm6, %v2989_v62, %v6134_v20  ;;  %6288 = vst [vmem:[#allocation52_spill] sm:$0xff] %v4489_v63  ;;  %v6289_v62 = vunpack.i.h.bf16 %v4377_v18 }
 0x13b   : > { %6287 = vst [vmem:[#allocation51_spill] sm:$0xff] %v4484_v10  ;;  %1039 = vmatpush.msra.mxu1 %v4484_v10  ;;  %v6291_v10 = vunpack.i.h.bf16 %v4302_v17 }
 0x13c   : > { %v4501_v20 = vsel %vm735_vm3, %v2999_v26, %v6289_v62 }
 0x13d   : > { %1040 = vmatpush.msra.mxu1 %v4489_v63  ;;  %6290 = vst [vmem:[#allocation53_spill] sm:$0xff] %v4501_v20  ;;  %v4512_v63 = vsel %vm735_vm3, %v2934_v0, %v6291_v10  ;;  %v6296_v10 = vunpack.i.h.bf16 %v4237_v52 }
 0x13e   : > { %v4504_v5 = vpop.permute.xlu1 %3007  ;;  %6292 = vst [vmem:[#allocation54_spill] sm:$0xff] %v4512_v63 }
 0x13f   : > { %v4506_v12 = vpop.permute.xlu0 %3002  ;;  %1041 = vmatpush.msra.mxu1 %v4501_v20  ;;  %v3009_v2 = vunpack.i.l.bf16 %v4504_v5  ;;  %v4534_v26 = vsel %vm735_vm3, %v2914_v1, %v6296_v10  ;;  %v6150_v1 = vunpack.i.h.bf16 %v4420_v29  ;;  %v3029_v10 = vunpack.i.l.bf16 %v4462_v53 }
 0x140   : > { %v6143_v62 = vunpack.i.l.bf16 %v4506_v12  ;;  %6297 = vst [vmem:[#allocation57_spill] sm:$0xff] %v4534_v26 }
 0x141   : > { %1042 = vmatpush.msra.mxu1 %v4512_v63  ;;  %v6298_v63 = vunpack.i.h.bf16 %v4506_v12 }
 0x142   : > { %v4527_v0 = vsel %vm906_vm1, %v6143_v62, %v3009_v2  ;;  %v6148_v2 = vunpack.i.h.bf16 %v4504_v5  ;;  %v4546_v62 = vpop.permute.xlu2 %3057 }
 0x143   : > { %6295 = vst [vmem:[#allocation56_spill] sm:$0xff] %v4527_v0  ;;  %1043 = vmatpush.msra.mxu1 %v4522_v24  ;;  %1149 = vmatpush.msrb.mxu3 %v4527_v0  ;;  %v4539_v49 = vsel %vm906_vm1, %v6298_v63, %v3014_v41 }
 0x144   : > { %6299 = vst [vmem:[#allocation58_spill] sm:$0xff] %v4539_v49 }
 0x145   : > { %1044 = vmatpush.msra.mxu1 %v4534_v26  ;;  %1150 = vmatpush.msrb.mxu3 %v4539_v49  ;;  %v988_v26 = vld [vmem:[#allocation8] sm:$0xff] }
 0x146   : > { %v4543_v40 = vpop.permute.xlu1 %3022  ;;  %998 = vst [vmem:[#allocation1] ss:$2 sm:$0xff] %v988_v26 }
 0x147   : > { %v3018_v28 = vpop.permute.xlu0 %3017  ;;  %v6153_v41 = vunpack.i.l.bf16 %v4543_v40 }
 0x148   : > { %v3020_v52 = vunpack.i.h.bf16 %v3018_v28  ;;  %v3019_v0 = vunpack.i.l.bf16 %v3018_v28 }
 0x149   : > { %v4566_v28 = vsel %vm849_vm5, %v6153_v41, %v3029_v10 }
 0x14a   : > { %v4553_v63 = vsel %vm906_vm1, %v6148_v2, %v3019_v0  ;;  %v4560_v49 = vsel %vm906_vm1, %v6150_v1, %v3020_v52  ;;  %6302 = vst [vmem:[#allocation61_spill] sm:$0xff] %v4566_v28  ;;  %v6157_v2 = vunpack.i.h.bf16 %v4543_v40  ;;  %v6159_v1 = vunpack.i.h.bf16 %v4462_v53 }
 0x14b   : > { %6300 = vst [vmem:[#allocation59_spill] sm:$0xff] %v4553_v63  ;;  %1151 = vmatpush.msrb.mxu3 %v4553_v63 }
 0x14c   : > { %6301 = vst [vmem:[#allocation60_spill] sm:$0xff] %v4560_v49 }
 0x14d   : > { %1152 = vmatpush.msrb.mxu3 %v4560_v49  ;;  %v4574_v49 = vpop.permute.xlu2 %3072 }
 0x14e   : > { %v3038_v24 = vpop.permute.xlu1 %3037 }
 0x14f   : > { %v4568_v0 = vpop.permute.xlu0 %3032  ;;  %1153 = vmatpush.msrb.mxu3 %v4566_v28  ;;  %v3039_v63 = vunpack.i.l.bf16 %v3038_v24  ;;  %v3040_v20 = vunpack.i.h.bf16 %v3038_v24  ;;  %v3059_v28 = vunpack.i.l.bf16 %v4546_v62  ;;  %v989_v24 = vld [vmem:[#allocation8 + $0x8] sm:$0xf] }
 0x150   : > { %v3034_v52 = vunpack.i.l.bf16 %v4568_v0  ;;  %v6160_v10 = vunpack.i.h.bf16 %v4568_v0  ;;  %1000 = vst [vmem:[#allocation1 + $0x10] ss:$2 sm:$0xff] %v989_v24  ;;  %v4610_v24 = vld.sshfl [vmem:[#allocation1] sm:$0xff pattern:$0x75316420] }
 0x151   : > { %v4587_v26 = vsel %vm849_vm5, %v6159_v1, %v3039_v63  ;;  %v4604_v63 = vsel %vm792_vm6, %v6164_v46, %v3059_v28  ;;  %6308 = vst [vmem:[#allocation67_spill] sm:$0xff] %v4610_v24  ;;  %1085 = vmatmul.f32.vlgmr.msra.gmra.mxu3 %v4610_v24  ;;  %1025 = vmatmul.f32.vlgmr.msra.gmra.mxu0 %v4610_v24  ;;  %v1190_v46 = vld [vmem:[#allocation9 + $0x8] sm:$0xf] }
 0x152   : > { %v4580_v41 = vsel %vm849_vm5, %v6157_v2, %v3034_v52  ;;  %6304 = vst [vmem:[#allocation63_spill] sm:$0xff] %v4587_v26  ;;  %v4594_v22 = vsel %vm849_vm5, %v6160_v10, %v3040_v20  ;;  %v4596_v52 = vld.sshfl [vmem:[#allocation1 + $0x8] sm:$0xff pattern:$0x75316420] }
 0x153   : > { %6303 = vst [vmem:[#allocation62_spill] sm:$0xff] %v4580_v41  ;;  %1154 = vmatpush.msrb.mxu3 %v4580_v41  ;;  %1045 = vmatmul.f32.vlgmr.msra.gmra.mxu1 %v4596_v52 }
 0x154   : > { %6305 = vst [vmem:[#allocation64_spill] sm:$0xff] %v4594_v22 }
 0x155   : > { %1155 = vmatpush.msrb.mxu3 %v4587_v26  ;;  %6306 = vst [vmem:[#allocation65_spill] sm:$0xff] %v4596_v52 }
 0x156   : > { %v4598_v2 = vpop.permute.xlu1 %3052  ;;  %6307 = vst [vmem:[#allocation66_spill] sm:$0xff] %v4604_v63 }
 0x157   : > { %v3048_v41 = vpop.permute.xlu0 %3047  ;;  %1156 = vmatpush.msrb.mxu3 %v4594_v22  ;;  %v3055_v1 = vunpack.i.h.bf16 %v4598_v2  ;;  %v3054_v20 = vunpack.i.l.bf16 %v4598_v2  ;;  %1199 = vst [vmem:[#allocation1] ss:$2 sm:$0xff] %v1189_v34  ;;  %v4621_v2 = vpop.permute.xlu2 %3087  ;;  %v6176_v34 = vunpack.i.h.bf16 %v4496_v58 }
 0x158   : > { %v3050_v10 = vunpack.i.h.bf16 %v3048_v41  ;;  %v3049_v26 = vunpack.i.l.bf16 %v3048_v41  ;;  %v4624_v41 = vld.sshfl [vmem:[#allocation1 + $0x10] sm:$0xff pattern:$0x75316420] }
 0x159   : > { %1157 = vmatpush.msrb.mxu3 %v4604_v63  ;;  %v4616_v28 = vsel %vm963_vm7, %v3054_v20, %v3055_v1  ;;  %v3074_v63 = vunpack.i.l.bf16 %v4574_v49  ;;  %1201 = vst [vmem:[#allocation1 + $0x10] ss:$2 sm:$0xff] %v1190_v46 }
 0x15a   : > { %v4613_v22 = vsel %vm963_vm7, %v3049_v26, %v3050_v10  ;;  %6310 = vst [vmem:[#allocation69_spill] sm:$0xff] %v4616_v28  ;;  %v6177_v26 = vunpack.i.h.bf16 %v4574_v49 }
 0x15b   : > { %6309 = vst [vmem:[#allocation68_spill] sm:$0xff] %v4613_v22  ;;  %1061 = vmatpush.msra.mxu2 %v4613_v22 }
 0x15c   : > { %v4649_v36 = vsel %vm963_vm7, %v3074_v63, %v6177_v26  ;;  %v6319_v63 = vunpack.i.h.bf16 %v4504_v5  ;;  %v6326_v5 = vunpack.i.h.bf16 %v4196_v60  ;;  %v6327_v60 = vunpack.i.l.bf16 %v4543_v40 }
 0x15d   : > { %1062 = vmatpush.msra.mxu2 %v4616_v28  ;;  %6313 = vst [vmem:[#allocation72_spill] sm:$0xff] %v4649_v36 }
 0x15e   : > { %v4628_v20 = vpop.permute.xlu1 %3067 }
 0x15f   : > { %v4630_v4 = vpop.permute.xlu0 %3062  ;;  %v3069_v22 = vunpack.i.l.bf16 %v4628_v20  ;;  %v3103_v52 = vpop.permute.xlu2 %3102 }
 0x160   : > { %v6175_v24 = vunpack.i.h.bf16 %v4630_v4  ;;  %v3064_v28 = vunpack.i.l.bf16 %v4630_v4  ;;  %v3105_v32 = vunpack.i.h.bf16 %v3103_v52 }
 0x161   : > { %v4644_v46 = vsel %vm792_vm6, %v6176_v34, %v3069_v22 }
 0x162   : > { %v4639_v14 = vsel %vm963_vm7, %v3064_v28, %v6175_v24  ;;  %6312 = vst [vmem:[#allocation71_spill] sm:$0xff] %v4644_v46  ;;  %1158 = vmatpush.msrb.mxu3 %v4644_v46  ;;  %v6314_v28 = vunpack.i.l.bf16 %v4506_v12  ;;  %v6315_v24 = vunpack.i.h.bf16 %v4183_v54  ;;  %v6317_v46 = vunpack.i.h.bf16 %v4506_v12 }
 0x163   : > { %6311 = vst [vmem:[#allocation70_spill] sm:$0xff] %v4639_v14  ;;  %1063 = vmatpush.msra.mxu2 %v4639_v14  ;;  %v3104_v54 = vunpack.i.l.bf16 %v3103_v52  ;;  %v6320_v12 = vunpack.i.h.bf16 %v4361_v39  ;;  %v6321_v52 = vunpack.i.h.bf16 %v4546_v62  ;;  %v6325_v39 = vunpack.i.h.bf16 %v4420_v29 }
 0x164   : > { %v4659_v22 = vsel %vm906_vm1, %v6315_v24, %v6314_v28  ;;  %v6328_v29 = vunpack.i.h.bf16 %v4408_v61  ;;  %v6329_v61 = vunpack.i.h.bf16 %v4543_v40 }
 0x165   : > { %1064 = vmatpush.msra.mxu2 %v4649_v36  ;;  %6316 = vst [vmem:[#allocation73_spill] sm:$0xff] %v4659_v22  ;;  %v4669_v36 = vsel %vm906_vm1, %v6318_v13, %v6317_v46  ;;  %v4679_v45 = vsel %vm906_vm1, %v6320_v12, %v6319_v63 }
 0x166   : > { %v3083_v26 = vpop.permute.xlu1 %3082  ;;  %2664 = vmatmul.msk.f32.vlgmr.msra.gmra.mxu2 %vm1006_vm8, %v4624_v41  ;;  %v4721_v12 = vsel %vm849_vm5, %v6328_v29, %v6327_v60 }
 0x167   : > { %1089 = vmatpush.msrb.mxu2 %v4659_v22  ;;  %v3078_v14 = vpop.permute.xlu0 %3077  ;;  %v3085_v24 = vunpack.i.h.bf16 %v3083_v26  ;;  %v3084_v28 = vunpack.i.l.bf16 %v3083_v26 }
 0x168   : > { %v3080_v34 = vunpack.i.h.bf16 %v3078_v14  ;;  %v3079_v22 = vunpack.i.l.bf16 %v3078_v14  ;;  %v6323_v14 = vunpack.i.h.bf16 %v4628_v20 }
 0x169   : > { %1090 = vmatpush.msrb.mxu2 %v4669_v36  ;;  %v4683_v13 = vsel %vm963_vm7, %v3050_v10, %v3084_v28  ;;  %v4702_v10 = vsel %vm906_vm1, %v6326_v5, %v6325_v39  ;;  %v4705_v63 = vsel %vm963_vm7, %v3084_v28, %v3104_v54  ;;  %v3089_v54 = vunpack.i.l.bf16 %v4621_v2 }
 0x16a   : > { %v4688_v26 = vsel %vm792_vm6, %v6321_v52, %v3079_v22  ;;  %v4693_v46 = vsel %vm792_vm6, %v6323_v14, %v3080_v34  ;;  %1121 = vmatpush.msrb.mxu1 %v4683_v13  ;;  %v4708_v22 = vsel %vm963_vm7, %v3085_v24, %v3105_v32  ;;  %v4712_v34 = vsel %vm963_vm7, %v3055_v1, %v3085_v24  ;;  %v990_v32 = vld [vmem:[%s6081_s4] sm:$0xf] }
 0x16b   : > { %1091 = vmatpush.msrb.mxu2 %v4679_v45  ;;  %6322 = vst [vmem:[#allocation74_spill] sm:$0xff] %v4688_v26  ;;  %1159 = vmatpush.msrb.mxu3 %v4688_v26  ;;  %v6330_v52 = vunpack.i.h.bf16 %v4406_v19  ;;  %v3760_v39 = vmov 0   ;;  %v6331_v1 = vunpack.i.h.bf16 %v4462_v53  ;;  %v6332_v26 = vunpack.i.h.bf16 %v4222_v33 }
 0x16c   : > { %6324 = vst [vmem:[#allocation75_spill] sm:$0xff] %v4693_v46  ;;  %1181 = vmatpush.msrb.mxu0 %v4705_v63  ;;  %1122 = vmatpush.msrb.mxu1 %v4712_v34  ;;  %v2930_v19 = vunpack.i.h.bf16 %v4304_v11  ;;  %v6334_v53 = vunpack.i.h.bf16 %v4621_v2 }
 0x16d   : > { %1092 = vmatpush.msrb.mxu2 %v4702_v10  ;;  %1160 = vmatpush.msrb.mxu3 %v4693_v46  ;;  %v4736_v14 = vsel %vm849_vm5, %v6330_v52, %v6329_v61  ;;  %v4744_v40 = vsel %vm849_vm5, %v6332_v26, %v6331_v1  ;;  %v6333_v61 = vunpack.i.h.bf16 %v4630_v4  ;;  %v6335_v26 = vunpack.i.h.bf16 %v4568_v0 }
 0x16e   : > { %1182 = vmatpush.msrb.mxu0 %v4708_v22  ;;  %v3098_v24 = vpop.permute.xlu1 %3097  ;;  %3111 = vset.pattern.permute.xlu1 %v3760_v39  ;;  %v2920_v1 = vunpack.i.h.bf16 %v4235_v50  ;;  %v6339_v0 = vunpack.i.h.bf16 %v4440_v6  ;;  %v6342_v6 = vunpack.i.h.bf16 %v4289_v27  ;;  %v6344_v27 = vunpack.i.h.bf16 %v4546_v62 }
 0x16f   : > { %1093 = vmatpush.msrb.mxu2 %v4721_v12  ;;  %v3093_v28 = vpop.permute.xlu0 %3092  ;;  %3112 = vset.pattern.permute.xlu2 %v3760_v39  ;;  %v3100_v5 = vunpack.i.h.bf16 %v3098_v24  ;;  %v3099_v60 = vunpack.i.l.bf16 %v3098_v24  ;;  %v6348_v62 = vunpack.i.h.bf16 %v4470_v3  ;;  %v6350_v3 = vunpack.i.h.bf16 %v4377_v18 }
 0x170   : > { %v3095_v29 = vunpack.i.h.bf16 %v3093_v28  ;;  %v3094_v46 = vunpack.i.l.bf16 %v3093_v28  ;;  %993 = vperm.xlu1 %3111, %v990_v32   ;;  %3183 = vset.pattern.permute.xlu0 %v3760_v39  ;;  %v6336_v32 = vunpack.i.h.bf16 %v4442_v57  ;;  %v2890_v39 = vunpack.i.h.bf16 %v4185_v55 }
 0x171   : > { %1094 = vmatpush.msrb.mxu2 %v4736_v14  ;;  %v4751_v24 = vsel %vm963_vm7, %v6333_v61, %v3099_v60  ;;  %v6338_v57 = vunpack.i.l.bf16 %v4496_v58  ;;  %v6353_v18 = vunpack.i.h.bf16 %v4302_v17  ;;  %v6355_v17 = vunpack.i.l.bf16 %v4122_v30 }
 0x172   : > { %v4754_v28 = vsel %vm735_vm3, %v3089_v54, %v3094_v46  ;;  %v4759_v33 = vsel %vm735_vm3, %v6334_v53, %v3095_v29  ;;  %1123 = vmatpush.msrb.mxu1 %v4751_v24  ;;  %v4768_v4 = vsel %vm849_vm5, %v6336_v32, %v6335_v26  ;;  %v6337_v46 = vunpack.i.h.bf16 %v4574_v49 }
 0x173   : > { %1095 = vmatpush.msrb.mxu2 %v4744_v40  ;;  %1161 = vmatpush.msrb.mxu3 %v4754_v28  ;;  %v4785_v29 = vsel %vm792_vm6, %v6339_v0, %v6338_v57  ;;  %v6340_v49 = vunpack.i.l.bf16 %v4304_v11  ;;  %v2880_v53 = vunpack.i.h.bf16 %v4142_v37  ;;  %v6341_v32 = vunpack.i.h.bf16 %v4496_v58 }
 0x174   : > { %v4775_v52 = vsel %vm963_vm7, %v6337_v46, %v3100_v5  ;;  %v2870_v58 = vunpack.i.h.bf16 %v4174_v51 }
 0x175   : > { %1096 = vmatpush.msrb.mxu2 %v4768_v4  ;;  %1124 = vmatpush.msrb.mxu1 %v4775_v52  ;;  %v4792_v61 = vsel %vm735_vm3, %v6340_v49, %v2930_v19  ;;  %v4801_v46 = vsel %vm792_vm6, %v6342_v6, %v6341_v32  ;;  %v6343_v19 = vunpack.i.l.bf16 %v4235_v50  ;;  %v6345_v49 = vunpack.i.h.bf16 %v4472_v21 }
 0x176   : > { %1162 = vmatpush.msrb.mxu3 %v4759_v33  ;;  %2665 = vmatmul.msk.f32.vlgmr.msrb.gmra.mxu1 %vm1006_vm8, %v4624_v41  ;;  %v2860_v21 = vunpack.i.h.bf16 %v4162_v44 }
 0x177   : > { %1097 = vmatpush.msrb.mxu2 %v4785_v29  ;;  %1129 = vmatpush.msra.mxu1 %v4167_v48  ;;  %v3108_v26 = vpop.permute.xlu0 %3107  ;;  %v4810_v0 = vsel %vm735_vm3, %v6343_v19, %v2920_v1  ;;  %v4819_v32 = vsel %vm792_vm6, %v6345_v49, %v6344_v27  ;;  %v6349_v19 = vunpack.i.l.bf16 %v4142_v37  ;;  %v6351_v37 = vunpack.i.l.bf16 %v4174_v51  ;;  %v6362_v49 = vld [vmem:[#allocation25_spill] sm:$0xff] }
 0x178   : > { %1163 = vmatpush.msrb.mxu3 %v4792_v61  ;;  %v3110_v57 = vunpack.i.h.bf16 %v3108_v26  ;;  %v3109_v11 = vunpack.i.l.bf16 %v3108_v26  ;;  %v6346_v26 = vunpack.i.l.bf16 %v4185_v55  ;;  %v6347_v55 = vunpack.i.h.bf16 %v4628_v20 }
 0x179   : > { %1098 = vmatpush.msrb.mxu2 %v4801_v46  ;;  %1130 = vmatpush.msra.mxu1 %v4206_v16  ;;  %v4857_v20 = vsel %vm735_vm3, %v6350_v3, %v3089_v54  ;;  %v6354_v51 = vunpack.i.l.bf16 %v4162_v44  ;;  %v2820_v44 = vunpack.i.h.bf16 %v4104_v25 }
 0x17a   : > { %1164 = vmatpush.msrb.mxu3 %v4810_v0  ;;  %v4824_v6 = vsel %vm678_vm0, %v6346_v26, %v2890_v39  ;;  %v4829_v50 = vsel %vm963_vm7, %v3099_v60, %v3109_v11  ;;  %v4832_v1 = vsel %vm963_vm7, %v3100_v5, %v3110_v57  ;;  %v4842_v39 = vsel %vm792_vm6, %v6348_v62, %v6347_v55  ;;  %v6358_v11 = vld [vmem:[#allocation31_spill] sm:$0xff]  ;;  %v6363_v26 = vld [vmem:[#allocation45_spill] sm:$0xff] }
 0x17b   : > { %1099 = vmatpush.msrb.mxu2 %v4819_v32  ;;  %1131 = vmatpush.msra.mxu1 %v4824_v6  ;;  %v4847_v60 = vsel %vm678_vm0, %v6349_v19, %v2880_v53  ;;  %v4862_v5 = vsel %vm621_vm2, %v6351_v37, %v2870_v58  ;;  %v2840_v53 = vunpack.i.h.bf16 %v4155_v42  ;;  %v4879_v57 = vsel %vm621_vm2, %v6354_v51, %v2860_v21  ;;  %v6365_v62 = vld [vmem:[#allocation33_spill] sm:$0xff]  ;;  %v6367_v19 = vld [vmem:[#allocation46_spill] sm:$0xff]  ;;  %v6369_v37 = vld [vmem:[#allocation35_spill] sm:$0xff] }
 0x17c   : > { %1269 = vmatpush.msra.mxu3 %v4203_v15  ;;  %1183 = vmatpush.msrb.mxu0 %v4829_v50  ;;  %v2850_v15 = vunpack.i.h.bf16 %v4122_v30  ;;  %v2810_v30 = vunpack.i.h.bf16 %v4135_v35  ;;  %v6359_v58 = vunpack.i.l.bf16 %v4144_v38  ;;  %v6364_v21 = vunpack.i.l.bf16 %v4104_v25  ;;  %v6370_v25 = vld [vmem:[#allocation27_spill] sm:$0xff]  ;;  %v6373_v51 = vld [vmem:[#allocation37_spill] sm:$0xff] }
 0x17d   : > { %1100 = vmatpush.msrb.mxu2 %v4842_v39  ;;  %1132 = vmatpush.msra.mxu1 %v4847_v60 }
 0x17e   : > { %1270 = vmatpush.msra.mxu3 %v4215_v23  ;;  %1184 = vmatpush.msrb.mxu0 %v4832_v1  ;;  %v6352_v23 = vunpack.i.h.bf16 %v4621_v2  ;;  %v6356_v2 = vunpack.i.l.bf16 %v4155_v42  ;;  %v6361_v42 = vld [vmem:[#allocation24_spill] sm:$0xff]  ;;  %v4919_v55 = vsel %vm564_vm4, %v6364_v21, %v2820_v44  ;;  %v4945_v44 = vld [vmem:[%s3955_s19 + $0x70] sm:$0xff] }
 0x17f   : > { %1101 = vmatpush.msrb.mxu2 %v4857_v20  ;;  %1133 = vmatpush.msra.mxu1 %v4862_v5  ;;  %v2800_v27 = vunpack.i.h.bf16 %v6361_v42  ;;  %v6384_v21 = vld [vmem:[#allocation51_spill] sm:$0xff] }
 0x180   : > { %1229 = vmatpush.msra.mxu0 %v4192_v59  ;;  %1271 = vmatpush.msra.mxu3 %v4230_v43  ;;  %v4874_v54 = vsel %vm735_vm3, %v6353_v18, %v6352_v23  ;;  %v2830_v59 = vunpack.i.h.bf16 %v4144_v38  ;;  %v4889_v43 = vsel %vm621_vm2, %v6355_v17, %v2850_v15  ;;  %v6366_v38 = vld [vmem:[#allocation26_spill] sm:$0xff]  ;;  %v6368_v15 = vunpack.i.l.bf16 %v4135_v35  ;;  %v6374_v35 = vld [vmem:[#allocation28_spill] sm:$0xff]  ;;  %v6376_v17 = vld [vmem:[#allocation39_spill] sm:$0xff] }
 0x181   : > { %1102 = vmatpush.msrb.mxu2 %v4874_v54  ;;  %1134 = vmatpush.msra.mxu1 %v4879_v57  ;;  %v6372_v23 = vunpack.i.l.bf16 %v6361_v42  ;;  %v6381_v42 = vld [vmem:[#allocation50_spill] sm:$0xff] }
 0x182   : > { %1230 = vmatpush.msra.mxu0 %v4388_v9  ;;  %1272 = vmatpush.msra.mxu3 %v4249_v47  ;;  %v4899_v9 = vsel %vm621_vm2, %v6356_v2, %v2840_v53  ;;  %v6357_v47 = vld [vmem:[#allocation44_spill] sm:$0xff]  ;;  %v4928_v3 = vsel %vm564_vm4, %v6368_v15, %v2810_v30  ;;  %v6371_v53 = vld [vmem:[#allocation47_spill] sm:$0xff]  ;;  %v6377_v2 = vld [vmem:[#allocation29_spill] sm:$0xff] }
 0x183   : > { %1103 = vmatpush.msrb.mxu2 %v4336_v31  ;;  %1135 = vmatpush.msra.mxu1 %v4889_v43  ;;  %v4937_v18 = vsel %vm564_vm4, %v6372_v23, %v2800_v27  ;;  %v6378_v30 = vld [vmem:[#allocation49_spill] sm:$0xff]  ;;  %v6382_v27 = vld [vmem:[#allocation43_spill] sm:$0xff]  ;;  %v6386_v15 = vld [vmem:[#allocation52_spill] sm:$0xff] }
 0x184   : > { %1231 = vmatpush.msra.mxu0 %v4393_v56  ;;  %1273 = vmatpush.msra.mxu3 %v4262_v7  ;;  %v4909_v56 = vsel %vm564_vm4, %v6359_v58, %v2830_v59  ;;  %v6360_v7 = vld [vmem:[#allocation65_spill] sm:$0xff]  ;;  %v6375_v59 = vld [vmem:[#allocation48_spill] sm:$0xff]  ;;  %v6380_v58 = vld [vmem:[#allocation30_spill] sm:$0xff] }
 0x185   : > { %1104 = vmatpush.msrb.mxu2 %v4269_v8  ;;  %1136 = vmatpush.msra.mxu1 %v4899_v9  ;;  %v6390_v23 = vld [vmem:[#allocation53_spill] sm:$0xff] }
 0x186   : > { %1232 = vmatpush.msra.mxu0 %v6357_v47  ;;  %1274 = vmatpush.msra.mxu3 %v6358_v11  ;;  %v6379_v47 = vld [vmem:[#allocation41_spill] sm:$0xff]  ;;  %v4952_v11 = vld [vmem:[%s3955_s19 + $0x50] sm:$0xff] }
 0x187   : > { %1105 = vmatmul.f32.vlgmr.msrb.gmra.mxu2 %v6360_v7  ;;  %1137 = vmatpush.msra.mxu1 %v4909_v56 }
 0x188   : > { %1209 = vmatpush.msra.mxu2 %v6362_v49  ;;  %1233 = vmatpush.msra.mxu0 %v6363_v26  ;;  %v4959_v49 = vld [vmem:[%s3955_s19 + $0x30] sm:$0xff]  ;;  %v6383_v26 = vld [vmem:[#allocation32_spill] sm:$0xff] }
 0x189   : > { %1275 = vmatpush.msra.mxu3 %v6365_v62  ;;  %1138 = vmatpush.msra.mxu1 %v4919_v55  ;;  %v3507_v62 = vld [vmem:[%s3955_s19 + $0x68] sm:$0xff] }
 0x18a   : > { %1210 = vmatpush.msra.mxu2 %v6366_v38  ;;  %1234 = vmatpush.msra.mxu0 %v6367_v19  ;;  %v6385_v38 = vld [vmem:[#allocation34_spill] sm:$0xff] }
 0x18b   : > { %1276 = vmatpush.msra.mxu3 %v6369_v37  ;;  %1139 = vmatpush.msra.mxu1 %v4928_v3  ;;  %v4968_v19 = vld [vmem:[%s3955_s19 + $0x10] sm:$0xff]  ;;  %v3509_v37 = vld [vmem:[%s3955_s19 + $0x48] sm:$0xff] }
 0x18c   : > { %1211 = vmatpush.msra.mxu2 %v6370_v25  ;;  %1235 = vmatpush.msra.mxu0 %v6371_v53  ;;  %v6387_v25 = vld [vmem:[#allocation67_spill] sm:$0xff]  ;;  %v6389_v53 = vld [vmem:[#allocation68_spill] sm:$0xff] }
 0x18d   : > { %1277 = vmatpush.msra.mxu3 %v6373_v51  ;;  %1140 = vmatpush.msra.mxu1 %v4937_v18  ;;  %v3510_v51 = vld [vmem:[%s3955_s19 + $0x28] sm:$0xff] }
 0x18e   : > { %1212 = vmatpush.msra.mxu2 %v6374_v35  ;;  %1236 = vmatpush.msra.mxu0 %v6375_v59  ;;  %v6391_v35 = vld [vmem:[#allocation38_spill] sm:$0xff]  ;;  %v6392_v59 = vld [vmem:[#allocation69_spill] sm:$0xff] }
 0x18f   : > { %1278 = vmatpush.msra.mxu3 %v6376_v17  ;;  %1141 = vmatpush.msra.mxu1 %v4945_v44  ;;  %v6393_v17 = vld [vmem:[#allocation54_spill] sm:$0xff] }
 0x190   : > { %1213 = vmatpush.msra.mxu2 %v6377_v2  ;;  %1237 = vmatpush.msra.mxu0 %v6378_v30  ;;  %v3511_v2 = vld [vmem:[%s3955_s19 + $0x8] sm:$0xff]  ;;  %v6394_v30 = vld [vmem:[#allocation40_spill] sm:$0xff] }
 0x191   : > { %1279 = vmatpush.msra.mxu3 %v6379_v47  ;;  %1142 = vmatpush.msra.mxu1 %v4952_v11  ;;  %v6395_v47 = vld [vmem:[#allocation70_spill] sm:$0xff] }
 0x192   : > { %1214 = vmatpush.msra.mxu2 %v6380_v58  ;;  %1238 = vmatpush.msra.mxu0 %v6381_v42  ;;  %v6396_v58 = vld [vmem:[#allocation55_spill] sm:$0xff]  ;;  %v6397_v42 = vld [vmem:[#allocation42_spill] sm:$0xff] }
 0x193   : > { %1280 = vmatpush.msra.mxu3 %v6382_v27  ;;  %1143 = vmatpush.msra.mxu1 %v4959_v49  ;;  %v6398_v27 = vld [vmem:[#allocation72_spill] sm:$0xff] }
 0x194   : > { %1165 = vmatmul.f32.vlgmr.msrb.gmra.mxu3 %v6360_v7  ;;  %1215 = vmatpush.msra.mxu2 %v6383_v26  ;;  %v6388_v7 = vld [vmem:[#allocation36_spill] sm:$0xff]  ;;  %v6399_v26 = vld [vmem:[#allocation57_spill] sm:$0xff] }
 0x195   : > { %1239 = vmatpush.msra.mxu0 %v6384_v21  ;;  %1281 = vmatpush.msra.mxu3 %v3507_v62  ;;  %v6400_v21 = vld [vmem:[#allocation73_spill] sm:$0xff] }
 0x196   : > { %1216 = vmatpush.msra.mxu2 %v6385_v38  ;;  %1144 = vmatpush.msra.mxu1 %v4968_v19  ;;  %v1202_v62 = vld.sshfl [vmem:[#allocation1] sm:$0xff pattern:$0x75316420] }
 0x197   : > { %1240 = vmatpush.msra.mxu0 %v6386_v15  ;;  %1282 = vmatpush.msra.mxu3 %v3509_v37 }
 0x198   : > { %1145 = vmatmul.f32.vlgmr.msra.gmra.mxu1 %v6387_v25  ;;  %1217 = vmatpush.msra.mxu2 %v6388_v7 }
 0x199   : > { %1261 = vmatpush.msrb.mxu1 %v6389_v53  ;;  %1241 = vmatpush.msra.mxu0 %v6390_v23  ;;  %v2286_v23 = vld [vmem:[#allocation11 + $0x8] sm:$0xf] }
 0x19a   : > { %1283 = vmatpush.msra.mxu3 %v3510_v51  ;;  %1218 = vmatpush.msra.mxu2 %v6391_v35 }
 0x19b   : > { %1262 = vmatpush.msrb.mxu1 %v6392_v59  ;;  %1242 = vmatpush.msra.mxu0 %v6393_v17 }
 0x19c   : > { %1284 = vmatpush.msra.mxu3 %v3511_v2  ;;  %2666 = vmatmul.msk.f32.vlgmr.msrb.gmra.mxu0 %vm1006_vm8, %v4624_v41  ;;  %v3512_v41 = vld [vmem:[%s3955_s19 + $0x60] sm:$0xff] }
 0x19d   : > { %1219 = vmatpush.msra.mxu2 %v6394_v30  ;;  %1263 = vmatpush.msrb.mxu1 %v6395_v47  ;;  %v3762_v30 = vmov 0.0  }
 0x19e   : > { %1381 = vmatpush.msrb.mxu3 %v4705_v63  ;;  %1243 = vmatpush.msra.mxu0 %v6396_v58  ;;  %v3513_v63 = vld [vmem:[%s3955_s19 + $0x40] sm:$0xff]  ;;  %496 = vst.msk [vmem:[#allocation2 + $0x18] sm:$0xff] %vm495_vm12, %v3762_v30 }
 0x19f   : > { %1220 = vmatpush.msra.mxu2 %v6397_v42  ;;  %1264 = vmatpush.msrb.mxu1 %v6398_v27  ;;  %497 = vst.msk [vmem:[#allocation2 + $0x38] sm:$0xff] %vm495_vm12, %v3762_v30 }
 0x1a0   : > { %1382 = vmatpush.msrb.mxu3 %v4708_v22  ;;  %1244 = vmatpush.msra.mxu0 %v6399_v26  ;;  %v3514_v22 = vld [vmem:[%s3955_s19 + $0x20] sm:$0xff]  ;;  %498 = vst.msk [vmem:[#allocation2 + $0x58] sm:$0xff] %vm495_vm12, %v3762_v30 }
 0x1a1   : > { %1289 = vmatpush.msra.mxu1 %v6400_v21  ;;  %1221 = vmatpush.msra.mxu2 %v3512_v41  ;;  %499 = vst.msk [vmem:[#allocation2 + $0x78] sm:$0xff] %vm495_vm12, %v3762_v30 }
 0x1a2   : > { %1329 = vmatpush.msrb.mxu0 %v4167_v48  ;;  %1383 = vmatpush.msrb.mxu3 %v4829_v50  ;;  %v3515_v48 = vld [vmem:[%s3955_s19] sm:$0xff]  ;;  %491 = vst.msk [vmem:[#allocation2] sm:$0xff] %vm490_vm13, %v3762_v30 }
 0x1a3   : > { %1290 = vmatpush.msra.mxu1 %v4669_v36  ;;  %1222 = vmatpush.msra.mxu2 %v3513_v63  ;;  %v6401_v36 = vld [vmem:[#allocation56_spill] sm:$0xff]  ;;  %492 = vst.msk [vmem:[#allocation2 + $0x20] sm:$0xff] %vm490_vm13, %v3762_v30 }
 0x1a4   : > { %1330 = vmatpush.msrb.mxu0 %v4206_v16  ;;  %1384 = vmatpush.msrb.mxu3 %v4832_v1  ;;  %v6402_v16 = vld [vmem:[#allocation58_spill] sm:$0xff]  ;;  %493 = vst.msk [vmem:[#allocation2 + $0x40] sm:$0xff] %vm490_vm13, %v3762_v30 }
 0x1a5   : > { %1291 = vmatpush.msra.mxu1 %v4679_v45  ;;  %1223 = vmatpush.msra.mxu2 %v3514_v22  ;;  %v6403_v45 = vld [vmem:[#allocation59_spill] sm:$0xff]  ;;  %494 = vst.msk [vmem:[#allocation2 + $0x60] sm:$0xff] %vm490_vm13, %v3762_v30 }
 0x1a6   : > { %1331 = vmatpush.msrb.mxu0 %v4824_v6  ;;  %1285 = vmatmul.f32.vlgmr.msra.gmra.mxu3 %v1202_v62 }
 0x1a7   : > { %1292 = vmatpush.msra.mxu1 %v4702_v10  ;;  %1224 = vmatpush.msra.mxu2 %v3515_v48  ;;  %v6405_v10 = vld [vmem:[#allocation61_spill] sm:$0xff] }
 0x1a8   : > { %1332 = vmatpush.msrb.mxu0 %v4847_v60  ;;  %1225 = vmatmul.f32.vlgmr.msra.gmra.mxu2 %v1202_v62 }
 0x1a9   : > { %1321 = vmatpush.msrb.mxu2 %v4683_v13  ;;  %1293 = vmatpush.msra.mxu1 %v4721_v12  ;;  %v6404_v13 = vld [vmem:[#allocation60_spill] sm:$0xff]  ;;  %v6407_v12 = vld [vmem:[#allocation63_spill] sm:$0xff] }
 0x1aa   : > { %1333 = vmatpush.msrb.mxu0 %v4862_v5  ;;  %v1389_v5 = vld [vmem:[%s3947_s13] sm:$0xff] }
 0x1ab   : > { %1322 = vmatpush.msrb.mxu2 %v4712_v34  ;;  %1294 = vmatpush.msra.mxu1 %v4736_v14  ;;  %v6406_v34 = vld [vmem:[#allocation62_spill] sm:$0xff]  ;;  %v6408_v14 = vld [vmem:[#allocation64_spill] sm:$0xff]  ;;  %vm1391_vm10 = vcmp.gt.f32.partialorder %v1389_v5, 0.0 }
 0x1ac   : > { %1334 = vmatpush.msrb.mxu0 %v4879_v57 }
 0x1ad   : > { %1323 = vmatpush.msrb.mxu2 %v4751_v24  ;;  %1295 = vmatpush.msra.mxu1 %v4744_v40  ;;  %v6409_v40 = vld [vmem:[#allocation66_spill] sm:$0xff]  ;;  %v6410_v24 = vld [vmem:[#allocation71_spill] sm:$0xff] }
 0x1ae   : > { %1335 = vmatpush.msrb.mxu0 %v4889_v43 }
 0x1af   : > { %1324 = vmatpush.msrb.mxu2 %v4775_v52  ;;  %1296 = vmatpush.msra.mxu1 %v4768_v4  ;;  %v6411_v4 = vld [vmem:[#allocation74_spill] sm:$0xff]  ;;  %v6412_v52 = vld [vmem:[#allocation75_spill] sm:$0xff] }
 0x1b0   : > { %1336 = vmatpush.msrb.mxu0 %v4899_v9 }
 0x1b1   : > { %1349 = vmatpush.msra.mxu2 %v6401_v36  ;;  %1297 = vmatpush.msra.mxu1 %v4785_v29 }
 0x1b2   : > { %1337 = vmatpush.msrb.mxu0 %v4909_v56 }
 0x1b3   : > { %1350 = vmatpush.msra.mxu2 %v6402_v16  ;;  %1298 = vmatpush.msra.mxu1 %v4801_v46 }
 0x1b4   : > { %1338 = vmatpush.msrb.mxu0 %v4919_v55 }
 0x1b5   : > { %1351 = vmatpush.msra.mxu2 %v6403_v45  ;;  %1299 = vmatpush.msra.mxu1 %v4819_v32 }
 0x1b6   : > { %1339 = vmatpush.msrb.mxu0 %v4928_v3 }
 0x1b7   : > { %1352 = vmatpush.msra.mxu2 %v6404_v13  ;;  %1300 = vmatpush.msra.mxu1 %v4842_v39 }
 0x1b8   : > { %1340 = vmatpush.msrb.mxu0 %v4937_v18 }
 0x1b9   : > { %1353 = vmatpush.msra.mxu2 %v6405_v10  ;;  %1301 = vmatpush.msra.mxu1 %v4857_v20 }
 0x1ba   : > { %1341 = vmatpush.msrb.mxu0 %v4945_v44 }
 0x1bb   : > { %1354 = vmatpush.msra.mxu2 %v6406_v34  ;;  %1302 = vmatpush.msra.mxu1 %v4874_v54 }
 0x1bc   : > { %1342 = vmatpush.msrb.mxu0 %v4952_v11  ;;  %v1390_v11 = vld [vmem:[%s3947_s13 + $0x8] sm:$0xf] }
 0x1bd   : > { %1355 = vmatpush.msra.mxu2 %v6407_v12  ;;  %1303 = vmatpush.msra.mxu1 %v4336_v31  ;;  %v1204_v31 = vld.sshfl [vmem:[#allocation1 + $0x10] sm:$0xff pattern:$0x75316420]  ;;  %vm1392_vm11 = vcmp.gt.f32.partialorder %v1390_v11, 0.0 }
 0x1be   : > { %1343 = vmatpush.msrb.mxu0 %v4959_v49  ;;  %2668 = vmatmul.msk.f32.vlgmr.msrb.gmra.mxu2 %vm1006_vm8, %v1204_v31 }
 0x1bf   : > { %1356 = vmatpush.msra.mxu2 %v6408_v14  ;;  %1304 = vmatpush.msra.mxu1 %v4269_v8  ;;  %v1203_v8 = vld.sshfl [vmem:[#allocation1 + $0x8] sm:$0xff pattern:$0x75316420] }
 0x1c0   : > { %1344 = vmatpush.msrb.mxu0 %v4968_v19  ;;  %2667 = vmatmul.msk.f32.vlgmr.msrb.gmra.mxu1 %vm1006_vm8, %v1204_v31  ;;  %v2285_v19 = vld [vmem:[#allocation11] sm:$0xff] }
 0x1c1   : > { %1357 = vmatpush.msra.mxu2 %v6409_v40  ;;  %2669 = vmatmul.msk.f32.vlgmr.msrb.gmra.mxu3 %vm1006_vm8, %v1204_v31 }
 0x1c2   : > { %1245 = vmatmul.f32.vlgmr.msra.gmra.mxu0 %v1203_v8 }
 0x1c3   : > { %1358 = vmatpush.msra.mxu2 %v6410_v24 }
 0x1c5   : > { %1359 = vmatpush.msra.mxu2 %v6411_v4 }
 0x1c7   : > { %1360 = vmatpush.msra.mxu2 %v6412_v52 }
 0x1c8   : > { %1305 = vmatmul.f32.vlgmr.msra.gmra.mxu1 %v1203_v8 }
 0x1c9   : > { %1361 = vmatpush.msra.mxu2 %v4754_v28  ;;  %v1191_v28 = vld [vmem:[%s6083_s6] sm:$0xf] }
 0x1ca   : > { %1345 = vmatmul.f32.vlgmr.msrb.gmra.mxu0 %v1202_v62  ;;  %1194 = vperm.xlu2 %3112, %v1191_v28  }
 0x1cb   : > { %1362 = vmatpush.msra.mxu2 %v4759_v33 }
 0x1cd   : > { %1363 = vmatpush.msra.mxu2 %v4792_v61 }
 0x1ce   : > { %v1026_v61 = vpop.f32.mrf.mxu0 }
 0x1cf   : > { %1364 = vmatpush.msra.mxu2 %v4810_v0 }
 0x1d0   : > { %1365 = vmatmul.f32.vlgmr.msra.gmra.mxu2 %v1203_v8  ;;  %v1046_v29 = vpop.f32.mrf.mxu1 }
 0x1d4   : > { %v1086_v0 = vpop.f32.mrf.mxu3 }
 0x1e2   : > { %v994_v46 = vpop.permute.xlu1 %993 }
 0x1e3   : > { %v1027_v32 = vadd.f32 %v1026_v61, %v994_v46  ;;  %v1087_v6 = vadd.f32 %v1086_v0, %v994_v46  ;;  %v1567_v61 = vld [vmem:[%s6085_s8 + $0x8] sm:$0xff]  ;;  %v1569_v0 = vld [vmem:[%s6085_s8 + $0x18] sm:$0xff] }
 0x1e5   : > { %v1047_v39 = vadd.f32 %v1046_v29, %v1027_v32 }
 0x1e9   : > { %v1066_v33 = vpop.f32.mrf.mxu2 }
 0x1ea   : > { %v1067_v54 = vadd.f32 %v1066_v33, %v1047_v39 }
 0x1f3   : > { %v1126_v1 = vpop.f32.mrf.mxu1 }
 0x20a   : > { %v1106_v50 = vpop.f32.mrf.mxu2 }
 0x20b   : > { %v1107_v60 = vadd.f32 %v1106_v50, %v1087_v6 }
 0x20d   : > { %v1127_v20 = vadd.f32 %v1126_v1, %v1107_v60 }
 0x20f   : > { %v1395_v57 = vrot.slane %v1127_v20, 4 }
 0x211   : > { %v1397_v43 = vsel %vm1396_vm9, %v1067_v54, %v1395_v57 }
 0x212   : > { %v1399_v9 = vsub.f32 %v1389_v5, %v1397_v43 }
 0x214   : > { %v1401_v56 = vsel %vm1391_vm10, %v1399_v9, 0.0  ;;  %vm1590_vm10 = vcmask 293888  }
 0x215   : > { %1405 = vst [vmem:[#allocation1] ss:$2 sm:$0xff] %v1401_v56  ;;  %v1146_v55 = vpop.f32.mrf.mxu1  ;;  %v2485_v53 = vmul.f32 0.1, %v1401_v56 }
 0x216   : > { %v1147_v3 = vadd.f32 %v1146_v55, %v994_v46  ;;  %v1568_v46 = vld [vmem:[%s6085_s8 + $0x10] sm:$0xff] }
 0x217   : > { %v1166_v18 = vpop.f32.mrf.mxu3 }
 0x218   : > { %v1167_v44 = vadd.f32 %v1166_v18, %v1147_v3 }
 0x219   : > { %v1186_v49 = vpop.f32.mrf.mxu0 }
 0x21a   : > { %v1187_v38 = vadd.f32 %v1186_v49, %v1167_v44 }
 0x21c   : > { %v1400_v15 = vsub.f32 %v1390_v11, %v1187_v38  ;;  %v1409_v37 = vld.sshfl [vmem:[#allocation1 + $0x8] sm:$0xff pattern:$0x75316420]  ;;  %v1408_v25 = vld.sshfl [vmem:[#allocation1] sm:$0xff pattern:$0x75316420] }
 0x21d   : > { %1413 = vrot.lane.b32.xlu1 %v1409_v37, %s3761_s17  ;;  %1411 = vrot.lane.b32.xlu0 %v1408_v25, %s3761_s17  ;;  %2295 = vst [vmem:[#allocation1] ss:$2 sm:$0xff] %v2285_v19  ;;  %v1566_v19 = vld [vmem:[%s6085_s8] sm:$0xff] }
 0x21e   : > { %v1402_v7 = vsel %vm1392_vm11, %v1400_v15, 0.0  ;;  %vm1788_vm11 = vcmask 1047704  }
 0x21f   : > { %1407 = vst [vmem:[#allocation1 + $0x10] ss:$2 sm:$0xff] %v1402_v7  ;;  %v2486_v17 = vmul.f32 0.1, %v1402_v7 }
 0x224   : > { %v5061_v51 = vld.sshfl [vmem:[#allocation1] sm:$0xff pattern:$0x75316420]  ;;  %v5063_v35 = vld.sshfl [vmem:[#allocation1 + $0x8] sm:$0xff pattern:$0x75316420]  ;;  %v5072_v47 = vpop.permute.xlu2 %1194 }
 0x225   : > { %6413 = vst [vmem:[#allocation44_spill] sm:$0xff] %v5063_v35 }
 0x226   : > { %2489 = vst [vmem:[#allocation1] ss:$2 sm:$0xff] %v2485_v53  ;;  %v1410_v59 = vld.sshfl [vmem:[#allocation1 + $0x10] sm:$0xff pattern:$0x75316420] }
 0x227   : > { %1415 = vrot.lane.b32.xlu2 %v1410_v59, %s3761_s17  ;;  %2297 = vst [vmem:[#allocation1 + $0x10] ss:$2 sm:$0xff] %v2286_v23 }
 0x228   : > { %6415 = vst [vmem:[#allocation65_spill] sm:$0xff] %v5072_v47 }
 0x229   : > { %v1286_v21 = vpop.f32.mrf.mxu3 }
 0x22a   : > { %v5076_v63 = vadd.f32 %v1286_v21, %v5072_v47 }
 0x22b   : > { %v1226_v58 = vpop.f32.mrf.mxu2 }
 0x22c   : > { %v1227_v42 = vadd.f32 %v1226_v58, %v5072_v47  ;;  %6416 = vst [vmem:[#allocation24_spill] sm:$0xff] %v5076_v63 }
 0x22e   : > { %v5066_v2 = vld.sshfl [vmem:[#allocation1 + $0x10] sm:$0xff pattern:$0x75316420] }
 0x22f   : > { %6414 = vst [vmem:[#allocation31_spill] sm:$0xff] %v5066_v2 }
 0x230   : > { %2491 = vst [vmem:[#allocation1 + $0x10] ss:$2 sm:$0xff] %v2486_v17 }
 0x23d   : > { %v1266_v41 = vpop.f32.mrf.mxu1 }
 0x23f   : > { %v1246_v27 = vpop.f32.mrf.mxu0 }
 0x240   : > { %v1247_v26 = vadd.f32 %v1246_v27, %v1227_v42 }
 0x242   : > { %v5078_v22 = vadd.f32 %v1266_v41, %v1247_v26 }
 0x244   : > { %6417 = vst [vmem:[#allocation25_spill] sm:$0xff] %v5078_v22 }
 0x281   : > { %v1416_v62 = vpop.permute.xlu2 %1415 }
 0x282   : > { %1428 = vst.msk [vmem:[#allocation2 + $0x18] sm:$0xf] %vm1427_vm14, %v1416_v62 }
 0x289   : > { %v1432_v4 = vld [vmem:[#allocation2 + $0x18] sm:$0xf] }
 0x28a   : > { %v1440_v8 = vrot.slane %v1432_v4, 4 }
 0x28f   : > { %v1414_v48 = vpop.permute.xlu1 %1413  ;;  %v1412_v36 = vpop.permute.xlu0 %1411 }
 0x290   : > { %v1418_v16 = vsel %vm490_vm13, %v1414_v48, %v1416_v62  ;;  %v1417_v45 = vsel %vm490_vm13, %v1412_v36, %v1414_v48  ;;  %1424 = vst.msk [vmem:[#allocation2] sm:$0xf] %vm1423_vm15, %v1412_v36 }
 0x291   : > { %1426 = vst [vmem:[#allocation2 + $0x10] sm:$0xf] %v1418_v16 }
 0x292   : > { %1425 = vst [vmem:[#allocation2 + $0x8] sm:$0xf] %v1417_v45 }
 0x297   : > { %v5082_v13 = vld [vmem:[#allocation2] sm:$0xf] }
 0x298   : > { %v1437_v12 = vrot.slane %v5082_v13, 4  ;;  %v5097_v24 = vld [vmem:[#allocation2 + $0x10] sm:$0xf] }
 0x299   : > { %v5084_v10 = vld [vmem:[#allocation2 + $0x8] sm:$0xf]  ;;  %v3148_v52 = vpack.i.bf16 %v1432_v4, %v5097_v24  ;;  %v1439_v31 = vrot.slane %v5097_v24, 4 }
 0x29a   : > { %v3123_v34 = vpack.i.bf16 %v5084_v10, %v5082_v13  ;;  %v1438_v14 = vrot.slane %v5084_v10, 4  ;;  %v3178_v29 = vpack.i.bf16 %v1440_v8, %v1437_v12 }
 0x29b   : > { %v3163_v28 = vpack.i.bf16 %v1440_v8, %v1439_v31 }
 0x29c   : > { %3124 = vrot.lane.b32.xlu1 %v3123_v34, %s3757_s9  ;;  %3119 = vrot.lane.b32.xlu0 %v3123_v34, %s3755_s22  ;;  %v3133_v40 = vpack.i.bf16 %v1438_v14, %v1437_v12  ;;  %v3173_v33 = vpack.i.bf16 %v1439_v31, %v1438_v14 }
 0x29d   : > { %3114 = vrot.lane.b32.xlu2 %v3123_v34, %s3753_s27 }
 0x2a4   : > { %3134 = vrot.lane.b32.xlu1 %v3133_v40, %s3754_s29  ;;  %3129 = vrot.lane.b32.xlu0 %v3133_v40, %s3752_s23 }
 0x2a5   : > { %1541 = vrot.lane.b32.xlu2 %v5084_v10, %s3759_s14 }
 0x2ac   : > { %3149 = vrot.lane.b32.xlu1 %v3148_v52, %s3755_s22  ;;  %3144 = vrot.lane.b32.xlu0 %v3148_v52, %s3753_s27 }
 0x2ad   : > { %3139 = vrot.lane.b32.xlu2 %v3133_v40, %s3758_s24 }
 0x2b4   : > { %3154 = vrot.lane.b32.xlu1 %v3148_v52, %s3757_s9  ;;  %1543 = vrot.lane.b32.xlu0 %v5097_v24, %s3759_s14 }
 0x2b5   : > { %3164 = vrot.lane.b32.xlu2 %v3163_v28, %s3754_s29 }
 0x2bc   : > { %3159 = vrot.lane.b32.xlu1 %v3163_v28, %s3752_s23  ;;  %3169 = vrot.lane.b32.xlu0 %v3163_v28, %s3758_s24  ;;  %v1562_v28 = vld [vmem:[%s6084_s7] sm:$0xff] }
 0x2bd   : > { %3174 = vrot.lane.b32.xlu2 %v3173_v33, %s3756_s5 }
 0x2c4   : > { %3179 = vrot.lane.b32.xlu1 %v3178_v29, %s3756_s5  ;;  %1539 = vrot.lane.b32.xlu0 %v5082_v13, %s3759_s14 }
 0x2c5   : > { %1545 = vrot.lane.b32.xlu2 %v1432_v4, %s3759_s14 }
 0x2cc   : > { %1577 = vperm.xlu1 %3111, %v1567_v61   ;;  %1572 = vperm.xlu0 %3183, %v1566_v19  }
 0x2cd   : > { %1582 = vperm.xlu2 %3112, %v1568_v46  }
 0x2d4   : > { %1587 = vperm.xlu1 %3111, %v1569_v0  }
 0x2f7   : > { %v5124_v32 = vpop.permute.xlu2 %3114 }
 0x2f8   : > { %v3117_v23 = vunpack.i.h.bf16 %v5124_v32  ;;  %v3116_v52 = vunpack.i.l.bf16 %v5124_v32 }
 0x2fa   : > { %v1463_v19 = vsel %vm621_vm2, %v3116_v52, %v3117_v23 }
 0x2ff   : > { %v5126_v6 = vpop.permute.xlu2 %1541 }
 0x307   : > { %v5128_v50 = vpop.permute.xlu2 %3139 }
 0x308   : > { %v3142_v59 = vunpack.i.h.bf16 %v5128_v50  ;;  %v3141_v31 = vunpack.i.l.bf16 %v5128_v50 }
 0x30e   : > { %v5130_v1 = vpop.permute.xlu1 %3124  ;;  %v5132_v39 = vpop.permute.xlu0 %3119 }
 0x30f   : > { %v5134_v60 = vpop.permute.xlu2 %3164  ;;  %v3127_v44 = vunpack.i.h.bf16 %v5130_v1  ;;  %v3122_v58 = vunpack.i.h.bf16 %v5132_v39  ;;  %v3126_v12 = vunpack.i.l.bf16 %v5130_v1  ;;  %v3121_v14 = vunpack.i.l.bf16 %v5132_v39 }
 0x310   : > { %v3166_v21 = vunpack.i.l.bf16 %v5134_v60  ;;  %v3167_v33 = vunpack.i.h.bf16 %v5134_v60 }
 0x311   : > { %v1519_v60 = vsel %vm849_vm5, %v3126_v12, %v3127_v44 }
 0x316   : > { %v5136_v20 = vpop.permute.xlu1 %3134  ;;  %v5138_v5 = vpop.permute.xlu0 %3129 }
 0x317   : > { %v5140_v54 = vpop.permute.xlu2 %3174  ;;  %v3137_v42 = vunpack.i.h.bf16 %v5136_v20  ;;  %v3132_v41 = vunpack.i.h.bf16 %v5138_v5  ;;  %v3136_v29 = vunpack.i.l.bf16 %v5136_v20 }
 0x318   : > { %v3177_v9 = vunpack.i.h.bf16 %v5140_v54  ;;  %v3176_v56 = vunpack.i.l.bf16 %v5140_v54 }
 0x319   : > { %v1478_v45 = vsel %vm678_vm0, %v3137_v42, %v3166_v21 }
 0x31a   : > { %v1534_v37 = vsel %vm906_vm1, %v3176_v56, %v3177_v9 }
 0x31e   : > { %v5142_v57 = vpop.permute.xlu1 %3149  ;;  %v5144_v43 = vpop.permute.xlu0 %3144 }
 0x31f   : > { %v1546_v55 = vpop.permute.xlu2 %1545  ;;  %v3151_v7 = vunpack.i.l.bf16 %v5142_v57  ;;  %v3146_v53 = vunpack.i.l.bf16 %v5144_v43  ;;  %v3152_v61 = vunpack.i.h.bf16 %v5142_v57  ;;  %v3147_v50 = vunpack.i.h.bf16 %v5144_v43 }
 0x321   : > { %v1492_v62 = vsel %vm735_vm3, %v3122_v58, %v3151_v7  ;;  %v1464_v36 = vsel %vm621_vm2, %v3117_v23, %v3146_v53 }
 0x322   : > { %v1554_v4 = vsel %vm1396_vm9, %v1464_v36, %v1478_v45 }
 0x326   : > { %v3155_v3 = vpop.permute.xlu1 %3154  ;;  %v1544_v18 = vpop.permute.xlu0 %1543 }
 0x327   : > { %v3156_v11 = vunpack.i.l.bf16 %v3155_v3  ;;  %v1548_v49 = vsel %vm963_vm7, %v5126_v6, %v1544_v18  ;;  %v1549_v38 = vsel %vm963_vm7, %v1544_v18, %v1546_v55  ;;  %v3157_v40 = vunpack.i.h.bf16 %v3155_v3 }
 0x328   : > { %2675 = vmatpush.msk.msra.mxu3 %vm1396_vm9, %v1548_v49  ;;  %2680 = vmatpush.msk.msra.mxu0 %vm1396_vm9, %v1549_v38  ;;  %v3131_v3 = vunpack.i.l.bf16 %v5138_v5  ;;  %v1493_v49 = vsel %vm735_vm3, %v3151_v7, %v3152_v61  ;;  %v1477_v38 = vsel %vm678_vm0, %v3136_v29, %v3137_v42  ;;  %v5253_v42 = vpop.f32.mrf.mxu1 }
 0x329   : > { %v1520_v15 = vsel %vm849_vm5, %v3127_v44, %v3156_v11  ;;  %v1521_v20 = vsel %vm849_vm5, %v3156_v11, %v3157_v40  ;;  %v1505_v11 = vsel %vm792_vm6, %v3141_v31, %v3142_v59  ;;  %6420 = vst [vmem:[#allocation26_spill] sm:$0xff] %v5253_v42 }
 0x32a   : > { %v1560_v25 = vsel %vm1396_vm9, %v1520_v15, %v1534_v37  ;;  %v1479_v15 = vsel %vm678_vm0, %v3166_v21, %v3167_v33  ;;  %v1563_v37 = vld [vmem:[%s6084_s7 + $0x8] sm:$0xff] }
 0x32b   : > { %1650 = vmatpush.msra.mxu3 %v1560_v25  ;;  %v1449_v25 = vsel %vm564_vm4, %v3131_v3, %v3132_v41  ;;  %v1583_v3 = vpop.permute.xlu2 %1582 }
 0x32c   : > { %v1550_v23 = vsel %vm1396_vm9, %v5082_v13, %v1449_v25  ;;  %v1565_v13 = vld [vmem:[%s6084_s7 + $0x18] sm:$0xff] }
 0x32e   : > { %v5168_v17 = vpop.permute.xlu1 %3159  ;;  %v3170_v30 = vpop.permute.xlu0 %3169 }
 0x32f   : > { %v3161_v27 = vunpack.i.l.bf16 %v5168_v17  ;;  %v3171_v26 = vunpack.i.l.bf16 %v3170_v30  ;;  %v3172_v8 = vunpack.i.h.bf16 %v3170_v30  ;;  %v3162_v57 = vunpack.i.h.bf16 %v5168_v17  ;;  %v1564_v30 = vld [vmem:[%s6084_s7 + $0x10] sm:$0xff] }
 0x331   : > { %v1506_v48 = vsel %vm792_vm6, %v3142_v59, %v3171_v26  ;;  %v1450_v34 = vsel %vm564_vm4, %v3132_v41, %v3161_v27  ;;  %v1507_v5 = vsel %vm792_vm6, %v3171_v26, %v3172_v8  ;;  %v1451_v7 = vsel %vm564_vm4, %v3161_v27, %v3162_v57  ;;  %v1708_v26 = vld [vmem:[%s6079_s2] sm:$0x7] }
 0x332   : > { %v1557_v16 = vsel %vm1396_vm9, %v1492_v62, %v1506_v48  ;;  %v1551_v32 = vsel %vm1396_vm9, %v5084_v10, %v1450_v34  ;;  %v1491_v10 = vsel %vm735_vm3, %v3121_v14, %v3122_v58  ;;  %v1552_v17 = vsel %vm1396_vm9, %v5097_v24, %v1451_v7  ;;  %v5249_v24 = vpop.f32.mrf.mxu3  ;;  %v5251_v58 = vpop.f32.mrf.mxu0 }
 0x333   : > { %1651 = vmatpush.msra.mxu3 %v1557_v16  ;;  %v1556_v54 = vsel %vm1396_vm9, %v1491_v10, %v1505_v11  ;;  %6418 = vst [vmem:[#allocation45_spill] sm:$0xff] %v5249_v24  ;;  %v1711_v62 = vperm.slane %v1708_v26, 1  ;;  %v1710_v16 = vperm.slane %v1708_v26, 0  ;;  %v1712_v40 = vperm.slane %v1708_v26, 2 }
 0x334   : > { %6419 = vst [vmem:[#allocation33_spill] sm:$0xff] %v5251_v58 }
 0x335   : > { %1652 = vmatpush.msra.mxu3 %v1554_v4 }
 0x336   : > { %v3180_v46 = vpop.permute.xlu1 %3179  ;;  %v1540_v0 = vpop.permute.xlu0 %1539 }
 0x337   : > { %v3182_v1 = vunpack.i.h.bf16 %v3180_v46  ;;  %v3181_v39 = vunpack.i.l.bf16 %v3180_v46  ;;  %v1547_v55 = vsel %vm963_vm7, %v1540_v0, %v5126_v6  ;;  %1653 = vmatpush.msra.mxu3 %v1551_v32 }
 0x338   : > { %2670 = vmatpush.msk.msrb.mxu1 %vm1396_vm9, %v1547_v55  ;;  %2676 = vmatmul.msk.f32.vlgmr.msra.gmra.mxu3 %vm1590_vm10, %v1562_v28 }
 0x339   : > { %v1533_v43 = vsel %vm906_vm1, %v3181_v39, %v3176_v56  ;;  %v1535_v6 = vsel %vm906_vm1, %v3177_v9, %v3182_v1  ;;  %v1465_v56 = vsel %vm621_vm2, %v3146_v53, %v3147_v50  ;;  %v1558_v9 = vsel %vm1396_vm9, %v1493_v49, %v1507_v5 }
 0x33a   : > { %v1559_v18 = vsel %vm1396_vm9, %v1519_v60, %v1533_v43  ;;  %v1561_v44 = vsel %vm1396_vm9, %v1521_v20, %v1535_v6  ;;  %v1553_v53 = vsel %vm1396_vm9, %v1463_v19, %v1477_v38  ;;  %v1555_v59 = vsel %vm1396_vm9, %v1465_v56, %v1479_v15 }
 0x33b   : > { %1621 = vmatpush.msrb.mxu1 %v1559_v18  ;;  %1679 = vmatpush.msra.mxu0 %v1561_v44 }
 0x33d   : > { %1622 = vmatpush.msrb.mxu1 %v1556_v54  ;;  %1680 = vmatpush.msra.mxu0 %v1558_v9 }
 0x33e   : > { %v1573_v27 = vpop.permute.xlu0 %1572  ;;  %v1578_v31 = vpop.permute.xlu1 %1577 }
 0x33f   : > { %1623 = vmatpush.msrb.mxu1 %v1553_v53  ;;  %1681 = vmatpush.msra.mxu0 %v1555_v59 }
 0x340   : > { %2677 = vmatmul.msk.f32.gmra.mxu3 %vm1590_vm10, %v1563_v37 }
 0x341   : > { %1624 = vmatpush.msrb.mxu1 %v1550_v23  ;;  %1682 = vmatpush.msra.mxu0 %v1552_v17 }
 0x342   : > { %2671 = vmatmul.msk.f32.vlgmr.msrb.gmra.mxu1 %vm1590_vm10, %v1562_v28  ;;  %2681 = vmatmul.msk.f32.vlgmr.msra.gmra.mxu0 %vm1590_vm10, %v1562_v28 }
 0x346   : > { %v1588_v56 = vpop.permute.xlu1 %1587 }
 0x348   : > { %2678 = vmatmul.msk.f32.gmra.mxu3 %vm1590_vm10, %v1564_v30 }
 0x34a   : > { %2672 = vmatmul.msk.f32.gmra.mxu1 %vm1590_vm10, %v1563_v37  ;;  %2682 = vmatmul.msk.f32.gmra.mxu0 %vm1590_vm10, %v1563_v37 }
 0x350   : > { %2679 = vmatmul.msk.f32.gmra.mxu3 %vm1590_vm10, %v1565_v13 }
 0x352   : > { %2673 = vmatmul.msk.f32.gmra.mxu1 %vm1590_vm10, %v1564_v30  ;;  %2683 = vmatmul.msk.f32.gmra.mxu0 %vm1590_vm10, %v1564_v30 }
 0x35a   : > { %2674 = vmatmul.msk.f32.gmra.mxu1 %vm1590_vm10, %v1565_v13  ;;  %2684 = vmatmul.msk.f32.gmra.mxu0 %vm1590_vm10, %v1565_v13 }
 0x3bb   : > { %v1655_v21 = vpop.f32.mrf.mxu3 }
 0x3bc   : > { %v1656_v41 = vadd.f32 %v1655_v21, %v1573_v27 }
 0x3be   : > { %v1697_v48 = vmax.f32 %v1656_v41, 0.0 }
 0x3bf   : > { %v1626_v36 = vpop.f32.mrf.mxu1  ;;  %v1684_v45 = vpop.f32.mrf.mxu0 }
 0x3c0   : > { %v1717_v34 = vmul.f32 %v1711_v62, %v1697_v48  ;;  %v1627_v12 = vadd.f32 %v1626_v36, %v1573_v27  ;;  %v1685_v14 = vadd.f32 %v1684_v45, %v1573_v27 }
 0x3c2   : > { %v1696_v4 = vmax.f32 %v1627_v12, 0.0  ;;  %v1698_v52 = vmax.f32 %v1685_v14, 0.0  ;;  %1742 = vrot.lane.b32.xlu0 %v1717_v34, %s3761_s17 }
 0x3c3   : > { %v1658_v8 = vpop.f32.mrf.mxu3 }
 0x3c4   : > { %v1716_v28 = vmul.f32 %v1710_v16, %v1696_v4  ;;  %v1718_v33 = vmul.f32 %v1712_v40, %v1698_v52  ;;  %v1659_v29 = vadd.f32 %v1658_v8, %v1578_v31 }
 0x3c6   : > { %v1700_v61 = vmax.f32 %v1659_v29, 0.0  ;;  %1744 = vrot.lane.b32.xlu1 %v1718_v33, %s3761_s17  ;;  %1740 = vrot.lane.b32.xlu2 %v1716_v28, %s3761_s17 }
 0x3c7   : > { %v1629_v46 = vpop.f32.mrf.mxu1  ;;  %v1687_v0 = vpop.f32.mrf.mxu0 }
 0x3c8   : > { %v1720_v32 = vmul.f32 %v1711_v62, %v1700_v61  ;;  %v1630_v50 = vadd.f32 %v1629_v46, %v1578_v31  ;;  %v1688_v1 = vadd.f32 %v1687_v0, %v1578_v31 }
 0x3ca   : > { %v1699_v39 = vmax.f32 %v1630_v50, 0.0  ;;  %v1701_v55 = vmax.f32 %v1688_v1, 0.0  ;;  %1748 = vrot.lane.b32.xlu0 %v1720_v32, %s3761_s17 }
 0x3cb   : > { %v1661_v60 = vpop.f32.mrf.mxu3 }
 0x3cc   : > { %v1719_v20 = vmul.f32 %v1710_v16, %v1699_v39  ;;  %v1721_v10 = vmul.f32 %v1712_v40, %v1701_v55  ;;  %v1662_v57 = vadd.f32 %v1661_v60, %v1583_v3 }
 0x3ce   : > { %v1703_v43 = vmax.f32 %v1662_v57, 0.0  ;;  %1750 = vrot.lane.b32.xlu1 %v1721_v10, %s3761_s17  ;;  %1746 = vrot.lane.b32.xlu2 %v1719_v20, %s3761_s17 }
 0x3cf   : > { %v1632_v6 = vpop.f32.mrf.mxu1  ;;  %v1690_v5 = vpop.f32.mrf.mxu0 }
 0x3d0   : > { %v1723_v18 = vmul.f32 %v1711_v62, %v1703_v43  ;;  %v1633_v44 = vadd.f32 %v1632_v6, %v1583_v3  ;;  %v1691_v11 = vadd.f32 %v1690_v5, %v1583_v3 }
 0x3d2   : > { %v1702_v49 = vmax.f32 %v1633_v44, 0.0  ;;  %v1704_v38 = vmax.f32 %v1691_v11, 0.0  ;;  %1754 = vrot.lane.b32.xlu0 %v1723_v18, %s3761_s17 }
 0x3d3   : > { %v1664_v54 = vpop.f32.mrf.mxu3 }
 0x3d4   : > { %v1722_v9 = vmul.f32 %v1710_v16, %v1702_v49  ;;  %v1724_v19 = vmul.f32 %v1712_v40, %v1704_v38  ;;  %v1665_v15 = vadd.f32 %v1664_v54, %v1588_v56 }
 0x3d6   : > { %v1706_v37 = vmax.f32 %v1665_v15, 0.0  ;;  %1756 = vrot.lane.b32.xlu1 %v1724_v19, %s3761_s17  ;;  %1752 = vrot.lane.b32.xlu2 %v1722_v9, %s3761_s17 }
 0x3d7   : > { %v1635_v25 = vpop.f32.mrf.mxu1  ;;  %v1693_v7 = vpop.f32.mrf.mxu0 }
 0x3d8   : > { %v1726_v53 = vmul.f32 %v1711_v62, %v1706_v37  ;;  %v1636_v59 = vadd.f32 %v1635_v25, %v1588_v56  ;;  %v1694_v23 = vadd.f32 %v1693_v7, %v1588_v56 }
 0x3da   : > { %v1705_v17 = vmax.f32 %v1636_v59, 0.0  ;;  %v1707_v30 = vmax.f32 %v1694_v23, 0.0  ;;  %1760 = vrot.lane.b32.xlu0 %v1726_v53, %s3761_s17 }
 0x3dc   : > { %v1725_v13 = vmul.f32 %v1710_v16, %v1705_v17  ;;  %v1727_v27 = vmul.f32 %v1712_v40, %v1707_v30 }
 0x3de   : > { %1762 = vrot.lane.b32.xlu1 %v1727_v27, %s3761_s17  ;;  %1758 = vrot.lane.b32.xlu2 %v1725_v13, %s3761_s17 }
 0x420   : > { %v1741_v26 = vpop.permute.xlu2 %1740 }
 0x421   : > { %1789 = vst.msk [vmem:[#allocation2] sm:$0xff] %vm1788_vm11, %v1741_v26 }
 0x428   : > { %v1747_v21 = vpop.permute.xlu2 %1746  ;;  %v5276_v36 = vld [vmem:[#allocation2] sm:$0xff] }
 0x429   : > { %1793 = vst.msk [vmem:[#allocation2 + $0x20] sm:$0xff] %vm1788_vm11, %v1747_v21 }
 0x430   : > { %v1753_v41 = vpop.permute.xlu2 %1752  ;;  %v5333_v10 = vld [vmem:[#allocation2 + $0x20] sm:$0xff] }
 0x431   : > { %1797 = vst.msk [vmem:[#allocation2 + $0x40] sm:$0xff] %vm1788_vm11, %v1753_v41 }
 0x434   : > { %v1743_v62 = vpop.permute.xlu0 %1742 }
 0x435   : > { %v5274_v48 = vsel %vm490_vm13, %v1741_v26, %v1743_v62 }
 0x436   : > { %1790 = vst [vmem:[#allocation2 + $0x8] sm:$0xff] %v5274_v48  ;;  %v5281_v16 = vpack.i.bf16 %v5274_v48, %v5276_v36 }
 0x438   : > { %v1745_v45 = vpop.permute.xlu1 %1744  ;;  %v1759_v34 = vpop.permute.xlu2 %1758  ;;  %3200 = vrot.lane.b32.xlu1 %v5281_v16, %s3753_s27  ;;  %3190 = vrot.lane.b32.xlu2 %v5281_v16, %s3752_s23  ;;  %v5297_v28 = vld [vmem:[#allocation2 + $0x40] sm:$0xff] }
 0x439   : > { %v1765_v12 = vsel %vm490_vm13, %v1743_v62, %v1745_v45  ;;  %1792 = vst.msk [vmem:[#allocation2 + $0x18] sm:$0xff] %vm490_vm13, %v1745_v45 }
 0x43a   : > { %1791 = vst [vmem:[#allocation2 + $0x10] sm:$0xff] %v1765_v12 }
 0x43b   : > { %1801 = vst.msk [vmem:[#allocation2 + $0x60] sm:$0xff] %vm1788_vm11, %v1759_v34 }
 0x43c   : > { %v1749_v14 = vpop.permute.xlu0 %1748 }
 0x43d   : > { %v5291_v40 = vsel %vm490_vm13, %v1747_v21, %v1749_v14 }
 0x43e   : > { %v5337_v43 = vpack.i.bf16 %v5291_v40, %v5333_v10 }
 0x440   : > { %v1751_v4 = vpop.permute.xlu1 %1750  ;;  %v1817_v52 = vld [vmem:[#allocation2 + $0x18] sm:$0xff] }
 0x441   : > { %v5294_v31 = vsel %vm490_vm13, %v1749_v14, %v1751_v4  ;;  %1796 = vst.msk [vmem:[#allocation2 + $0x38] sm:$0xff] %vm490_vm13, %v1751_v4  ;;  %v3214_v8 = vpack.i.bf16 %v1817_v52, %v1765_v12 }
 0x442   : > { %6421 = vst [vmem:[#allocation46_spill] sm:$0xff] %v5294_v31  ;;  %v5299_v33 = vld [vmem:[#allocation2 + $0x60] sm:$0xff]  ;;  %v5351_v18 = vpack.i.bf16 %v1765_v12, %v5294_v31 }
 0x443   : > { %v3184_v29 = vpack.i.bf16 %v5299_v33, %v5297_v28  ;;  %3215 = vrot.lane.b32.xlu1 %v3214_v8, %s3754_s29  ;;  %3205 = vrot.lane.b32.xlu2 %v3214_v8, %s3753_s27 }
 0x444   : > { %v1755_v61 = vpop.permute.xlu0 %1754 }
 0x445   : > { %3185 = vrot.lane.b32.xlu0 %v3184_v29, %s3755_s22  ;;  %v5307_v46 = vsel %vm490_vm13, %v1753_v41, %v1755_v61 }
 0x446   : > { %v3319_v11 = vpack.i.bf16 %v5307_v46, %v5297_v28 }
 0x448   : > { %v1757_v0 = vpop.permute.xlu1 %1756  ;;  %v1818_v32 = vld [vmem:[#allocation2 + $0x38] sm:$0xff] }
 0x449   : > { %v5310_v50 = vsel %vm490_vm13, %v1755_v61, %v1757_v0  ;;  %1800 = vst.msk [vmem:[#allocation2 + $0x58] sm:$0xff] %vm490_vm13, %v1757_v0  ;;  %v5313_v1 = vpack.i.bf16 %v1817_v52, %v1818_v32  ;;  %v3244_v20 = vpack.i.bf16 %v1818_v32, %v5294_v31 }
 0x44a   : > { %6422 = vst [vmem:[#allocation35_spill] sm:$0xff] %v5310_v50  ;;  %v3364_v49 = vpack.i.bf16 %v5310_v50, %v5274_v48 }
 0x44b   : > { %3230 = vrot.lane.b32.xlu1 %v5313_v1, %s3756_s5  ;;  %3220 = vrot.lane.b32.xlu2 %v5281_v16, %s3755_s22 }
 0x44c   : > { %v1761_v39 = vpop.permute.xlu0 %1760 }
 0x44d   : > { %3195 = vrot.lane.b32.xlu0 %v3214_v8, %s3752_s23  ;;  %v5321_v55 = vsel %vm490_vm13, %v1759_v34, %v1761_v39 }
 0x44e   : > { %v5382_v38 = vpack.i.bf16 %v5321_v55, %v5299_v33  ;;  %v3464_v62 = vpack.i.bf16 %v5307_v46, %v5321_v55 }
 0x450   : > { %v1763_v3 = vpop.permute.xlu1 %1762  ;;  %v1819_v6 = vld [vmem:[#allocation2 + $0x58] sm:$0xff] }
 0x451   : > { %v5324_v60 = vsel %vm490_vm13, %v1761_v39, %v1763_v3  ;;  %1804 = vst.msk [vmem:[#allocation2 + $0x78] sm:$0xff] %vm490_vm13, %v1763_v3  ;;  %v3314_v44 = vpack.i.bf16 %v1819_v6, %v5310_v50 }
 0x452   : > { %6423 = vst [vmem:[#allocation27_spill] sm:$0xff] %v5324_v60  ;;  %v3434_v15 = vpack.i.bf16 %v5276_v36, %v5324_v60  ;;  %v3469_v39 = vpack.i.bf16 %v5310_v50, %v5324_v60 }
 0x453   : > { %3235 = vrot.lane.b32.xlu1 %v5313_v1, %s3757_s9  ;;  %3245 = vrot.lane.b32.xlu2 %v3244_v20, %s3752_s23 }
 0x455   : > { %3210 = vrot.lane.b32.xlu0 %v5281_v16, %s3754_s29 }
 0x458   : > { %v1820_v57 = vld [vmem:[#allocation2 + $0x78] sm:$0xff] }
 0x459   : > { %v5339_v5 = vpack.i.bf16 %v1819_v6, %v1820_v57  ;;  %v3424_v54 = vpack.i.bf16 %v1820_v57, %v5324_v60 }
 0x45b   : > { %3260 = vrot.lane.b32.xlu2 %v5337_v43, %s3754_s29  ;;  %3240 = vrot.lane.b32.xlu1 %v5337_v43, %s3752_s23 }
 0x45d   : > { %3225 = vrot.lane.b32.xlu0 %v3214_v8, %s3755_s22 }
 0x463   : > { %3275 = vrot.lane.b32.xlu2 %v3244_v20, %s3755_s22  ;;  %3255 = vrot.lane.b32.xlu1 %v3244_v20, %s3753_s27 }
 0x465   : > { %3250 = vrot.lane.b32.xlu0 %v5337_v43, %s3753_s27 }
 0x46b   : > { %3295 = vrot.lane.b32.xlu2 %v5351_v18, %s3757_s9  ;;  %3270 = vrot.lane.b32.xlu1 %v5337_v43, %s3755_s22 }
 0x46d   : > { %3265 = vrot.lane.b32.xlu0 %v3244_v20, %s3754_s29 }
 0x473   : > { %3300 = vrot.lane.b32.xlu2 %v5337_v43, %s3758_s24  ;;  %3285 = vrot.lane.b32.xlu1 %v5351_v18, %s3756_s5 }
 0x475   : > { %3280 = vrot.lane.b32.xlu0 %v5337_v43, %s3756_s5 }
 0x47b   : > { %3315 = vrot.lane.b32.xlu1 %v3314_v44, %s3752_s23  ;;  %3320 = vrot.lane.b32.xlu2 %v3319_v11, %s3753_s27 }
 0x47d   : > { %3290 = vrot.lane.b32.xlu0 %v5337_v43, %s3757_s9 }
 0x483   : > { %3330 = vrot.lane.b32.xlu1 %v3319_v11, %s3754_s29  ;;  %3335 = vrot.lane.b32.xlu2 %v3314_v44, %s3754_s29 }
 0x485   : > { %3305 = vrot.lane.b32.xlu0 %v5351_v18, %s3758_s24 }
 0x48b   : > { %3365 = vrot.lane.b32.xlu1 %v3364_v49, %s3758_s24  ;;  %3340 = vrot.lane.b32.xlu2 %v3319_v11, %s3756_s5 }
 0x48d   : > { %3310 = vrot.lane.b32.xlu0 %v3319_v11, %s3752_s23 }
 0x492   : > { %v5388_v56 = vpop.permute.xlu2 %3190 }
 0x493   : > { %3345 = vrot.lane.b32.xlu2 %v3364_v49, %s3756_s5  ;;  %3395 = vrot.lane.b32.xlu1 %v5382_v38, %s3753_s27  ;;  %v6194_v21 = vunpack.i.h.bf16 %v5388_v56 }
 0x495   : > { %3325 = vrot.lane.b32.xlu0 %v3314_v44, %s3753_s27 }
 0x49b   : > { %3350 = vrot.lane.b32.xlu2 %v3319_v11, %s3757_s9  ;;  %3425 = vrot.lane.b32.xlu1 %v3424_v54, %s3754_s29 }
 0x49d   : > { %3360 = vrot.lane.b32.xlu0 %v3319_v11, %s3758_s24  ;;  %v5394_v9 = vpop.permute.xlu2 %3205 }
 0x49e   : > { %6424 = vst [vmem:[#allocation47_spill] sm:$0xff] %v5394_v9  ;;  %v6189_v25 = vunpack.i.l.bf16 %v5394_v9 }
 0x4a3   : > { %3355 = vrot.lane.b32.xlu2 %v3364_v49, %s3757_s9  ;;  %3430 = vrot.lane.b32.xlu1 %v5382_v38, %s3756_s5 }
 0x4a5   : > { %3375 = vrot.lane.b32.xlu0 %v5339_v5, %s3756_s5  ;;  %v5401_v19 = vpop.permute.xlu2 %3220 }
 0x4a6   : > { %v6193_v49 = vunpack.i.h.bf16 %v5401_v19 }
 0x4aa   : > { %v5405_v37 = vpop.permute.xlu1 %3200 }
 0x4ab   : > { %3370 = vrot.lane.b32.xlu2 %v3319_v11, %s3759_s14  ;;  %3435 = vrot.lane.b32.xlu1 %v3434_v15, %s3756_s5  ;;  %v6198_v7 = vunpack.i.h.bf16 %v5405_v37 }
 0x4ad   : > { %3390 = vrot.lane.b32.xlu0 %v3424_v54, %s3752_s23  ;;  %v5412_v53 = vpop.permute.xlu2 %3245  ;;  %v5419_v59 = vsel %vm621_vm2, %v6198_v7, %v6189_v25 }
 0x4ae   : > { %6425 = vst [vmem:[#allocation37_spill] sm:$0xff] %v5412_v53  ;;  %v6188_v6 = vunpack.i.l.bf16 %v5412_v53 }
 0x4b3   : > { %3380 = vrot.lane.b32.xlu2 %v5339_v5, %s3757_s9  ;;  %3445 = vrot.lane.b32.xlu1 %v3434_v15, %s3757_s9 }
 0x4b5   : > { %3410 = vrot.lane.b32.xlu0 %v5382_v38, %s3754_s29  ;;  %v5426_v23 = vpop.permute.xlu1 %3215  ;;  %v5428_v17 = vpop.permute.xlu2 %3260  ;;  %s2695_s29 = smul.u32 12, %s3844_s21 }
 0x4b6   : > { %6426 = vst [vmem:[#allocation28_spill] sm:$0xff] %v5426_v23  ;;  %v6190_v29 = vunpack.i.l.bf16 %v5426_v23  ;;  %v3262_v2 = vunpack.i.l.bf16 %v5428_v17 }
 0x4b7   : > { %v5430_v30 = vpop.permute.xlu0 %3185 }
 0x4bb   : > { %3450 = vrot.lane.b32.xlu1 %v5382_v38, %s3758_s24  ;;  %3385 = vrot.lane.b32.xlu2 %v5382_v38, %s3752_s23 }
 0x4bd   : > { %3415 = vrot.lane.b32.xlu0 %v5281_v16, %s3759_s14  ;;  %v5438_v13 = vpop.permute.xlu1 %3230  ;;  %v5440_v27 = vpop.permute.xlu2 %3275 }
 0x4be   : > { %6427 = vst [vmem:[#allocation48_spill] sm:$0xff] %v5440_v27 }
 0x4bf   : > { %v5442_v26 = vpop.permute.xlu0 %3195 }
 0x4c0   : > { %6428 = vst [vmem:[#allocation39_spill] sm:$0xff] %v5442_v26  ;;  %v6187_v41 = vunpack.i.l.bf16 %v5442_v26 }
 0x4c2   : > { %v5453_v45 = vsel %vm564_vm4, %v6194_v21, %v6187_v41 }
 0x4c3   : > { %3465 = vrot.lane.b32.xlu1 %v3464_v62, %s3755_s22  ;;  %3400 = vrot.lane.b32.xlu2 %v3424_v54, %s3753_s27 }
 0x4c5   : > { %3440 = vrot.lane.b32.xlu0 %v5382_v38, %s3757_s9  ;;  %v3236_v16 = vpop.permute.xlu1 %3235  ;;  %v5459_v34 = vpop.permute.xlu2 %3295  ;;  %s2523_s9 = scalar_lea.hbm %s6088_s11, %s2695_s29 }
 0x4c6   : > { %6429 = vst [vmem:[#allocation29_spill] sm:$0xff] %v5459_v34  ;;  %v3238_v12 = vunpack.i.h.bf16 %v3236_v16  ;;  %v3237_v14 = vunpack.i.l.bf16 %v3236_v16  ;;  %v6191_v4 = vunpack.i.h.bf16 %v5459_v34  ;;  %v3297_v52 = vunpack.i.l.bf16 %v5459_v34  ;;  %s2527_s17 = sshll.u32 %s2523_s9, 4  ;;  %s2528_s17 = int_to_ptr.hbm [resolvable:$true] %s2527_s17 }
 0x4c7   : > { %v5463_v8 = vpop.permute.xlu0 %3210  ;;  %s3681_s19 = sshra.s32 %s2528_s17, 4  ;;  %s3682_s19 = int_to_ptr.hbm [resolvable:$true] %s3681_s19 }
 0x4c8   : > { %v6201_v61 = vunpack.i.h.bf16 %v5463_v8  ;;  %v5468_v0 = vsel %vm849_vm5, %v3297_v52, %v3237_v14  ;;  %v5473_v32 = vsel %vm849_vm5, %v6191_v4, %v3238_v12  ;;  %s3683_s15 = scalar_lea.hbm %s3682_s19, 12  ;;  %p3688_p10 = scmp.lt.s32.totalorder %s3682_s19, %s6088_s11 }
 0x4c9   : > { %6430 = vst [vmem:[#allocation49_spill] sm:$0xff] %v5468_v0  ;;  %p3684_p1 = scmp.ne.s32.totalorder %s3682_s19, %s3683_s15  ;;  %p3689_p11 = scmp.lt.s32.totalorder %s3687_s26, %s3683_s15 }
 0x4ca   : > { %6431 = vst [vmem:[#allocation41_spill] sm:$0xff] %v5473_v32  ;;  %v5482_v3 = vsel %vm678_vm0, %v6201_v61, %v6190_v29  ;;  %v6196_v29 = vunpack.i.l.bf16 %v5440_v27  ;;  %v2287_v61 = vld [vmem:[%s6087_s10] sm:$0xf] }
 0x4cb   : > { %3470 = vrot.lane.b32.xlu1 %v3469_v39, %s3755_s22  ;;  %3405 = vrot.lane.b32.xlu2 %v5337_v43, %s3759_s14  ;;  %p3685_p4 = pnand %p3684_p1, %p3896_p7  ;;  %p3690_p9 = por %p3689_p11, %p3688_p10 }
 0x4cd   : > { %3455 = vrot.lane.b32.xlu0 %v3434_v15, %s3758_s24  ;;  %v5488_v20 = vpop.permute.xlu1 %3240  ;;  %v5490_v57 = vpop.permute.xlu2 %3300  ;;  %p3686_p8 = pneg %p3685_p4 }
 0x4ce   : > { %v6195_v44 = vunpack.i.h.bf16 %v5488_v20 }
 0x4cf   : > { %v5494_v11 = vpop.permute.xlu0 %3225  ;;  %p3691_p2 = pnand %p3690_p9, %p3686_p8 }
 0x4d0   : > { %6432 = vst [vmem:[#allocation30_spill] sm:$0xff] %v5494_v11  ;;  %v6186_v54 = vunpack.i.l.bf16 %v5494_v11  ;;  %v5503_v43 = vsel %vm564_vm4, %v6195_v44, %v6188_v6 }
 0x4d2   : > { %v5510_v15 = vsel %vm735_vm3, %v6193_v49, %v6186_v54 }
 0x4d3   : > { %6433 = vst [vmem:[#allocation50_spill] sm:$0xff] %v5510_v15  ;;  %3475 = vrot.lane.b32.xlu1 %v5313_v1, %s3758_s24  ;;  %3420 = vrot.lane.b32.xlu2 %v5339_v5, %s3758_s24  ;;  %s489_s24 = scalar_lea.vmem [#allocation12], %s2694_s3 }
 0x4d5   : > { %3460 = vrot.lane.b32.xlu0 %v5382_v38, %s3759_s14  ;;  %v5518_v62 = vpop.permute.xlu1 %3255  ;;  %v5520_v16 = vpop.permute.xlu2 %3320 }
 0x4d6   : > { %6434 = vst [vmem:[#allocation43_spill] sm:$0xff] %v5518_v62  ;;  %v6192_v12 = vunpack.i.l.bf16 %v5518_v62 }
 0x4d7   : > { %v5523_v14 = vpop.permute.xlu0 %3250 }
 0x4d8   : > { %v6199_v54 = vunpack.i.h.bf16 %v5523_v14 }
 0x4da   : > { %v5531_v41 = vsel %vm621_vm2, %v6199_v54, %v6192_v12  ;;  %v6202_v12 = vunpack.i.h.bf16 %v5428_v17  ;;  %v3233_v54 = vunpack.i.h.bf16 %v5438_v13 }
 0x4db   : > { %3495 = vrot.lane.b32.xlu1 %v5339_v5, %s3759_s14  ;;  %3480 = vrot.lane.b32.xlu2 %v5351_v18, %s3759_s14 }
 0x4dd   : > { %3485 = vrot.lane.b32.xlu0 %v3469_v39, %s3759_s14  ;;  %v5538_v38 = vpop.permute.xlu1 %3270  ;;  %v5540_v6 = vpop.permute.xlu2 %3335 }
 0x4de   : > { %v6197_v25 = vunpack.i.h.bf16 %v5538_v38 }
 0x4df   : > { %v5544_v4 = vpop.permute.xlu0 %3265 }
 0x4e0   : > { %6435 = vst [vmem:[#allocation32_spill] sm:$0xff] %v5544_v4  ;;  %v6200_v49 = vunpack.i.l.bf16 %v5544_v4  ;;  %v5553_v18 = vsel %vm735_vm3, %v6197_v25, %v6196_v29  ;;  %v3232_v29 = vunpack.i.l.bf16 %v5438_v13  ;;  %v3337_v4 = vunpack.i.l.bf16 %v5540_v6 }
 0x4e1   : > { %6436 = vst [vmem:[#allocation51_spill] sm:$0xff] %v5553_v18 }
 0x4e2   : > { %v5560_v39 = vsel %vm678_vm0, %v6202_v12, %v6200_v49 }
 0x4e3   : > { %3500 = vrot.lane.b32.xlu2 %v5313_v1, %s3759_s14  ;;  %s2525_s14 = sshll.u32 %s489_s24, 4  ;;  %s2526_s14 = int_to_ptr.vmem [resolvable:$true] %s2525_s14 }
 0x4e5   : > { %3490 = vrot.lane.b32.xlu0 %v5339_v5, %s3755_s22  ;;  %v5566_v21 = vpop.permute.xlu1 %3285  ;;  %v5568_v44 = vpop.permute.xlu2 %3340 }
 0x4e6   : > { %v6203_v25 = vunpack.i.h.bf16 %v5566_v21  ;;  %v6204_v7 = vunpack.i.l.bf16 %v5566_v21  ;;  %v6232_v26 = vunpack.i.h.bf16 %v5568_v44  ;;  %v3342_v27 = vunpack.i.l.bf16 %v5568_v44 }
 0x4e7   : > { %v5574_v49 = vpop.permute.xlu0 %3280 }
 0x4e8   : > { %v5579_v1 = vsel %vm906_vm1, %v6204_v7, %v3232_v29  ;;  %v5584_v5 = vsel %vm906_vm1, %v6203_v25, %v3233_v54  ;;  %v6211_v7 = vunpack.i.h.bf16 %v5490_v57  ;;  %v2211_v62 = vsel %vm906_vm1, %v3342_v27, %v6232_v26 }
 0x4e9   : > { %6437 = vst [vmem:[#allocation34_spill] sm:$0xff] %v5584_v5 }
 0x4ed   : > { %2290 = vperm.xlu0 %3183, %v2287_v61   ;;  %v5589_v12 = vpop.permute.xlu1 %3315  ;;  %v5593_v24 = vpop.permute.xlu2 %3345 }
 0x4ee   : > { %v6238_v0 = vunpack.i.l.bf16 %v5593_v24 }
 0x4ef   : > { %v5591_v13 = vpop.permute.xlu0 %3290 }
 0x4f0   : > { %v6206_v22 = vunpack.i.h.bf16 %v5591_v13 }
 0x4f2   : > { %v5599_v29 = vsel %vm849_vm5, %v6206_v22, %v3297_v52 }
 0x4f3   : > { %6438 = vst [vmem:[#allocation52_spill] sm:$0xff] %v5599_v29 }
 0x4f5   : > { %v3331_v54 = vpop.permute.xlu1 %3330  ;;  %v5605_v58 = vpop.permute.xlu2 %3350 }
 0x4f7   : > { %v5601_v25 = vpop.permute.xlu0 %3305 }
 0x4f8   : > { %6439 = vst [vmem:[#allocation67_spill] sm:$0xff] %v5601_v25  ;;  %v6210_v61 = vunpack.i.l.bf16 %v5601_v25  ;;  %v6218_v22 = vunpack.i.h.bf16 %v5601_v25  ;;  %v6231_v25 = vunpack.i.h.bf16 %v5574_v49 }
 0x4fa   : > { %v5612_v47 = vsel %vm792_vm6, %v6211_v7, %v6210_v61 }
 0x4fb   : > { %6440 = vst [vmem:[#allocation36_spill] sm:$0xff] %v5612_v47  ;;  %v3282_v47 = vunpack.i.l.bf16 %v5574_v49 }
 0x4fd   : > { %v5614_v42 = vpop.permute.xlu1 %3365  ;;  %v5627_v50 = vpop.permute.xlu2 %3355  ;;  %v2208_v32 = vsel %vm906_vm1, %v3282_v47, %v6231_v25  ;;  %v3332_v25 = vunpack.i.l.bf16 %v3331_v54 }
 0x4fe   : > { %v6219_v52 = vunpack.i.l.bf16 %v5614_v42 }
 0x4ff   : > { %v5618_v63 = vpop.permute.xlu0 %3310 }
 0x500   : > { %v5625_v31 = vsel %vm792_vm6, %v6219_v52, %v6218_v22 }
 0x501   : > { %6441 = vst [vmem:[#allocation68_spill] sm:$0xff] %v5625_v31 }
 0x505   : > { %v5629_v60 = vpop.permute.xlu1 %3395  ;;  %v5633_v7 = vpop.permute.xlu2 %3370 }
 0x506   : > { %v3397_v5 = vunpack.i.l.bf16 %v5629_v60 }
 0x507   : > { %v5631_v61 = vpop.permute.xlu0 %3325 }
 0x50d   : > { %v5635_v15 = vpop.permute.xlu1 %3425  ;;  %v5645_v53 = vpop.permute.xlu2 %3380 }
 0x50e   : > { %6442 = vst [vmem:[#allocation53_spill] sm:$0xff] %v5645_v53 }
 0x50f   : > { %v5637_v18 = vpop.permute.xlu0 %3360 }
 0x515   : > { %v5639_v11 = vpop.permute.xlu1 %3430 }
 0x516   : > { %v6233_v22 = vunpack.i.h.bf16 %v5639_v11  ;;  %v3432_v52 = vunpack.i.l.bf16 %v5639_v11 }
 0x517   : > { %v5647_v31 = vpop.permute.xlu0 %3375 }
 0x518   : > { %v2214_v9 = vsel %vm906_vm1, %v3432_v52, %v6233_v22  ;;  %v5669_v52 = vpop.permute.xlu2 %3385 }
 0x519   : > { %2325 = vmatpush.msra.mxu1 %v2214_v9 }
 0x51b   : > { %2326 = vmatpush.msra.mxu1 %v2211_v62  ;;  %v3333_v62 = vunpack.i.h.bf16 %v3331_v54  ;;  %v3212_v54 = vunpack.i.l.bf16 %v5463_v8 }
 0x51d   : > { %v5660_v34 = vpop.permute.xlu1 %3435  ;;  %2327 = vmatpush.msra.mxu1 %v2208_v32  ;;  %v6239_v32 = vunpack.i.l.bf16 %v5635_v15 }
 0x51e   : > { %v3438_v29 = vunpack.i.h.bf16 %v5660_v34 }
 0x51f   : > { %v5664_v23 = vpop.permute.xlu0 %3390 }
 0x520   : > { %v2205_v9 = vsel %vm906_vm1, %v3438_v29, %v6238_v0  ;;  %v1987_v0 = vsel %vm678_vm0, %v3332_v25, %v3333_v62  ;;  %v3323_v25 = vunpack.i.h.bf16 %v5520_v16 }
 0x521   : > { %2328 = vmatpush.msra.mxu1 %v2205_v9  ;;  %v5680_v9 = vpop.permute.xlu2 %3400 }
 0x525   : > { %v5671_v27 = vpop.permute.xlu1 %3445 }
 0x527   : > { %v3411_v47 = vpop.permute.xlu0 %3410 }
 0x528   : > { %v3413_v26 = vunpack.i.h.bf16 %v3411_v47  ;;  %v3412_v22 = vunpack.i.l.bf16 %v3411_v47  ;;  %v1988_v47 = vsel %vm678_vm0, %v3333_v62, %v3337_v4  ;;  %v3327_v62 = vunpack.i.l.bf16 %v5631_v61 }
 0x52a   : > { %v1990_v35 = vsel %vm678_vm0, %v3412_v22, %v3413_v26  ;;  %v1991_v29 = vsel %vm678_vm0, %v3413_v26, %v6239_v32  ;;  %v3398_v22 = vunpack.i.h.bf16 %v5629_v60  ;;  %v3402_v26 = vunpack.i.l.bf16 %v5680_v9 }
 0x52b   : > { %2305 = vmatpush.msrb.mxu2 %v1990_v35  ;;  %2365 = vmatpush.msrb.mxu0 %v1991_v29  ;;  %v6443_v32 = vunpack.i.h.bf16 %v5428_v17  ;;  %v6444_v60 = vunpack.i.h.bf16 %v5463_v8  ;;  %v1932_v8 = vsel %vm621_vm2, %v3323_v25, %v3327_v62 }
 0x52c   : > { %v1934_v17 = vsel %vm621_vm2, %v3397_v5, %v3398_v22  ;;  %v3387_v5 = vunpack.i.l.bf16 %v5669_v52 }
 0x52d   : > { %2306 = vmatpush.msrb.mxu2 %v1987_v0  ;;  %2366 = vmatpush.msrb.mxu0 %v1988_v47  ;;  %v1984_v35 = vsel %vm678_vm0, %v3262_v2, %v6443_v32  ;;  %v5693_v29 = vpop.permute.xlu1 %3450  ;;  %v3322_v0 = vunpack.i.l.bf16 %v5520_v16  ;;  %v1981_v47 = vsel %vm678_vm0, %v3212_v54, %v6444_v60  ;;  %v3252_v2 = vunpack.i.l.bf16 %v5523_v14 }
 0x52e   : > { %v3202_v32 = vunpack.i.l.bf16 %v5405_v37  ;;  %v6445_v54 = vunpack.i.h.bf16 %v5523_v14  ;;  %v3352_v60 = vunpack.i.l.bf16 %v5605_v58  ;;  %v3312_v14 = vunpack.i.l.bf16 %v5618_v63 }
 0x52f   : > { %v5695_v53 = vpop.permute.xlu0 %3415  ;;  %2307 = vmatpush.msrb.mxu2 %v1984_v35  ;;  %2367 = vmatpush.msrb.mxu0 %v5560_v39  ;;  %v1935_v39 = vsel %vm621_vm2, %v3398_v22, %v3402_v26  ;;  %v1931_v16 = vsel %vm621_vm2, %v3322_v0, %v3323_v25  ;;  %v3353_v35 = vunpack.i.h.bf16 %v5605_v58  ;;  %v6241_v0 = vunpack.i.l.bf16 %v5664_v23 }
 0x530   : > { %v1928_v22 = vsel %vm621_vm2, %v3252_v2, %v6445_v54  ;;  %v6446_v25 = vunpack.i.h.bf16 %v5405_v37 }
 0x531   : > { %2308 = vmatpush.msrb.mxu2 %v1981_v47  ;;  %2368 = vmatpush.msrb.mxu0 %v5482_v3  ;;  %v3388_v3 = vunpack.i.h.bf16 %v5669_v52  ;;  %v3313_v52 = vunpack.i.h.bf16 %v5618_v63  ;;  %v3317_v63 = vunpack.i.l.bf16 %v5589_v12 }
 0x533   : > { %2309 = vmatpush.msrb.mxu2 %v1934_v17  ;;  %2369 = vmatpush.msrb.mxu0 %v1935_v39  ;;  %v1925_v17 = vsel %vm621_vm2, %v3202_v32, %v6446_v25  ;;  %v1878_v37 = vsel %vm564_vm4, %v3387_v5, %v3388_v3  ;;  %v1879_v54 = vsel %vm564_vm4, %v3388_v3, %v6241_v0  ;;  %v5748_v25 = vpop.permute.xlu2 %3405  ;;  %v6447_v3 = vunpack.i.h.bf16 %v5488_v20 }
 0x534   : > { %v1875_v5 = vsel %vm564_vm4, %v3312_v14, %v3313_v52  ;;  %v3452_v14 = vunpack.i.l.bf16 %v5693_v29  ;;  %v6448_v0 = vunpack.i.h.bf16 %v5591_v13 }
 0x535   : > { %2310 = vmatpush.msrb.mxu2 %v1931_v16  ;;  %2370 = vmatpush.msrb.mxu0 %v1932_v8  ;;  %v5733_v16 = vpop.permute.xlu1 %3465  ;;  %v3242_v8 = vunpack.i.l.bf16 %v5488_v20  ;;  %v3362_v20 = vunpack.i.l.bf16 %v5637_v18 }
 0x537   : > { %v5723_v47 = vpop.permute.xlu0 %3440  ;;  %2311 = vmatpush.msrb.mxu2 %v1928_v22  ;;  %2371 = vmatpush.msrb.mxu0 %v5531_v41  ;;  %v3292_v41 = vunpack.i.l.bf16 %v5591_v13  ;;  %v3192_v22 = vunpack.i.l.bf16 %v5388_v56 }
 0x538   : > { %v3443_v2 = vunpack.i.h.bf16 %v5723_v47  ;;  %v3442_v39 = vunpack.i.l.bf16 %v5723_v47 }
 0x539   : > { %2312 = vmatpush.msrb.mxu2 %v1925_v17  ;;  %2372 = vmatpush.msrb.mxu0 %v5419_v59  ;;  %v3448_v59 = vunpack.i.h.bf16 %v5671_v27  ;;  %v2155_v17 = vsel %vm849_vm5, %v3352_v60, %v3353_v35  ;;  %v2152_v60 = vsel %vm849_vm5, %v3292_v41, %v6448_v0  ;;  %v3302_v0 = vunpack.i.l.bf16 %v5490_v57 }
 0x53a   : > { %v2158_v32 = vsel %vm849_vm5, %v3442_v39, %v3443_v2  ;;  %v1876_v39 = vsel %vm564_vm4, %v3313_v52, %v3317_v63  ;;  %v3363_v52 = vunpack.i.h.bf16 %v5637_v18 }
 0x53b   : > { %2313 = vmatpush.msrb.mxu2 %v1878_v37  ;;  %2329 = vmatpush.msra.mxu1 %v2158_v32  ;;  %v1872_v37 = vsel %vm564_vm4, %v3242_v8, %v6447_v3  ;;  %v3357_v32 = vunpack.i.l.bf16 %v5627_v50  ;;  %v6449_v8 = vunpack.i.h.bf16 %v5388_v56  ;;  %v3467_v3 = vunpack.i.l.bf16 %v5733_v16 }
 0x53c   : > { %2373 = vmatpush.msrb.mxu0 %v1879_v54  ;;  %v3453_v54 = vunpack.i.h.bf16 %v5693_v29 }
 0x53d   : > { %2314 = vmatpush.msrb.mxu2 %v1875_v5  ;;  %2330 = vmatpush.msra.mxu1 %v2155_v17  ;;  %v1869_v17 = vsel %vm564_vm4, %v3192_v22, %v6449_v8  ;;  %v2149_v13 = vsel %vm849_vm5, %v3448_v59, %v3357_v32  ;;  %v5792_v22 = vpop.permute.xlu2 %3420  ;;  %v3373_v8 = vunpack.i.h.bf16 %v5633_v7 }
 0x53e   : > { %2374 = vmatpush.msrb.mxu0 %v1876_v39  ;;  %v2102_v41 = vsel %vm792_vm6, %v3452_v14, %v3453_v54  ;;  %v5782_v39 = vpop.permute.xlu1 %3470  ;;  %v3188_v14 = vunpack.i.h.bf16 %v5430_v30 }
 0x53f   : > { %v5766_v5 = vpop.permute.xlu0 %3455  ;;  %2315 = vmatpush.msrb.mxu2 %v1872_v37  ;;  %2331 = vmatpush.msra.mxu1 %v2152_v60  ;;  %v3378_v60 = vunpack.i.h.bf16 %v5647_v31 }
 0x540   : > { %2375 = vmatpush.msrb.mxu0 %v5503_v43  ;;  %v3458_v56 = vunpack.i.h.bf16 %v5766_v5  ;;  %v2099_v43 = vsel %vm792_vm6, %v3362_v20, %v3363_v52  ;;  %v3377_v20 = vunpack.i.l.bf16 %v5647_v31 }
 0x541   : > { %2316 = vmatpush.msrb.mxu2 %v1869_v17  ;;  %2332 = vmatpush.msra.mxu1 %v2149_v13  ;;  %v3372_v17 = vunpack.i.l.bf16 %v5633_v7 }
 0x542   : > { %2376 = vmatpush.msrb.mxu0 %v5453_v45  ;;  %v3437_v45 = vunpack.i.l.bf16 %v5660_v34 }
 0x543   : > { %2317 = vmatpush.msrb.mxu2 %v5299_v33  ;;  %2333 = vmatpush.msra.mxu1 %v2102_v41  ;;  %v6450_v33 = vunpack.i.h.bf16 %v5490_v57 }
 0x544   : > { %2377 = vmatpush.msrb.mxu0 %v5321_v55  ;;  %v2216_v41 = vsel %vm906_vm1, %v3437_v45, %v3377_v20  ;;  %v6455_v20 = vunpack.i.h.bf16 %v5574_v49  ;;  %v3447_v49 = vunpack.i.l.bf16 %v5671_v27  ;;  %v3338_v27 = vunpack.i.h.bf16 %v5540_v6  ;;  %v6467_v6 = vld [vmem:[#allocation52_spill] sm:$0xff] }
 0x545   : > { %2318 = vmatpush.msrb.mxu2 %v5297_v28  ;;  %2334 = vmatpush.msra.mxu1 %v2099_v43  ;;  %v2096_v59 = vsel %vm792_vm6, %v3302_v0, %v6450_v33  ;;  %v3348_v28 = vunpack.i.h.bf16 %v5593_v24  ;;  %v3187_v0 = vunpack.i.l.bf16 %v5430_v30  ;;  %v6453_v30 = vunpack.i.h.bf16 %v5568_v44 }
 0x546   : > { %2378 = vmatpush.msrb.mxu0 %v5307_v46  ;;  %v6451_v46 = vunpack.i.l.bf16 %v5614_v42  ;;  %v5833_v43 = vpop.permute.xlu1 %3475  ;;  %v2267_v44 = vsel %vm963_vm7, %v3372_v17, %v3373_v8 }
 0x547   : > { %v5799_v55 = vpop.permute.xlu0 %3460  ;;  %2319 = vmatpush.msrb.mxu2 %v5333_v10  ;;  %2335 = vmatpush.msra.mxu1 %v2096_v59  ;;  %v3468_v10 = vunpack.i.h.bf16 %v5733_v16  ;;  %v2212_v33 = vsel %vm906_vm1, %v6453_v30, %v3348_v28  ;;  %v3222_v59 = vunpack.i.l.bf16 %v5401_v19 }
 0x548   : > { %v3463_v37 = vunpack.i.h.bf16 %v5799_v55  ;;  %v3462_v34 = vunpack.i.l.bf16 %v5799_v55  ;;  %2379 = vmatpush.msrb.mxu0 %v5291_v40  ;;  %v2093_v57 = vsel %vm792_vm6, %v3458_v56, %v6451_v46  ;;  %v6452_v40 = vunpack.i.h.bf16 %v5639_v11 }
 0x549   : > { %2320 = vmatpush.msrb.mxu2 %v5276_v36  ;;  %2336 = vmatpush.msra.mxu1 %v2093_v57  ;;  %v3272_v36 = vunpack.i.l.bf16 %v5538_v38  ;;  %v3408_v11 = vunpack.i.h.bf16 %v5748_v25  ;;  %v3407_v56 = vunpack.i.l.bf16 %v5748_v25  ;;  %v3418_v46 = vunpack.i.h.bf16 %v5695_v53 }
 0x54a   : > { %2380 = vmatpush.msrb.mxu0 %v5274_v48  ;;  %2321 = vmatmul.f32.vlgmr.msrb.gmra.mxu2 %v5061_v51  ;;  %v2215_v13 = vsel %vm906_vm1, %v6452_v40, %v3437_v45  ;;  %v2270_v31 = vsel %vm963_vm7, %v3462_v34, %v3463_v37  ;;  %v2046_v48 = vsel %vm735_vm3, %v3188_v14, %v3467_v3  ;;  %v3417_v57 = vunpack.i.l.bf16 %v5695_v53 }
 0x54b   : > { %2381 = vmatmul.f32.vlgmr.msrb.gmra.mxu0 %v5061_v51  ;;  %2385 = vmatpush.msra.mxu2 %v2215_v13  ;;  %v2213_v45 = vsel %vm906_vm1, %v3348_v28, %v3378_v60  ;;  %v2043_v34 = vsel %vm735_vm3, %v3187_v0, %v3468_v10  ;;  %v6454_v14 = vunpack.i.l.bf16 %v5566_v21  ;;  %v6456_v40 = vunpack.i.h.bf16 %v5538_v38 }
 0x54c   : > { %2445 = vmatpush.msra.mxu0 %v2216_v41  ;;  %2337 = vmatpush.msra.mxu1 %v2046_v48  ;;  %v6458_v0 = vunpack.i.l.bf16 %v5593_v24  ;;  %v3428_v41 = vunpack.i.h.bf16 %v5635_v15  ;;  %v5865_v48 = vpop.permute.xlu2 %3480  ;;  %v2264_v38 = vsel %vm963_vm7, %v3407_v56, %v3408_v11  ;;  %v6459_v24 = vunpack.i.h.bf16 %v5401_v19 }
 0x54d   : > { %2357 = vmatpush.msrb.mxu3 %v2270_v31  ;;  %2386 = vmatpush.msra.mxu2 %v2212_v33  ;;  %v2209_v28 = vsel %vm906_vm1, %v6455_v20, %v6454_v14  ;;  %v2040_v13 = vsel %vm735_vm3, %v3272_v36, %v6456_v40  ;;  %v6457_v31 = vunpack.i.h.bf16 %v5566_v21  ;;  %v3358_v21 = vunpack.i.h.bf16 %v5627_v50  ;;  %v6460_v33 = vld [vmem:[#allocation53_spill] sm:$0xff]  ;;  %v6462_v14 = vld [vmem:[#allocation44_spill] sm:$0xff]  ;;  %v6464_v40 = vld [vmem:[#allocation31_spill] sm:$0xff] }
 0x54e   : > { %2446 = vmatpush.msra.mxu0 %v2213_v45  ;;  %2338 = vmatpush.msra.mxu1 %v2043_v34  ;;  %v2037_v36 = vsel %vm735_vm3, %v3222_v59, %v6459_v24  ;;  %v3383_v45 = vunpack.i.h.bf16 %v6460_v33  ;;  %v6461_v34 = vld [vmem:[#allocation34_spill] sm:$0xff]  ;;  %v2261_v56 = vsel %vm963_vm7, %v3417_v57, %v3418_v46  ;;  %v2159_v19 = vsel %vm849_vm5, %v3443_v2, %v3447_v49  ;;  %v6463_v20 = vld [vmem:[#allocation32_spill] sm:$0xff]  ;;  %v6473_v50 = vld [vmem:[#allocation41_spill] sm:$0xff] }
 0x54f   : > { %2358 = vmatpush.msrb.mxu3 %v2267_v44  ;;  %2387 = vmatpush.msra.mxu2 %v2209_v28  ;;  %v5853_v60 = vpop.permute.xlu0 %3485  ;;  %v2206_v17 = vsel %vm906_vm1, %v6458_v0, %v6457_v31  ;;  %v3268_v28 = vunpack.i.h.bf16 %v6463_v20  ;;  %v6465_v57 = vunpack.i.l.bf16 %v5635_v15  ;;  %v3482_v2 = vunpack.i.l.bf16 %v5865_v48  ;;  %v3496_v0 = vpop.permute.xlu1 %3495 }
 0x550   : > { %2447 = vmatpush.msra.mxu0 %v5579_v1  ;;  %v3487_v30 = vunpack.i.l.bf16 %v5853_v60  ;;  %2339 = vmatpush.msra.mxu1 %v2040_v13  ;;  %v3382_v1 = vunpack.i.l.bf16 %v6460_v33  ;;  %v3488_v44 = vunpack.i.h.bf16 %v5853_v60  ;;  %v2156_v55 = vsel %vm849_vm5, %v3353_v35, %v3358_v21 }
 0x551   : > { %2359 = vmatpush.msrb.mxu3 %v2264_v38  ;;  %2388 = vmatpush.msra.mxu2 %v2206_v17  ;;  %v1992_v13 = vsel %vm678_vm0, %v6465_v57, %v3428_v41  ;;  %v1989_v15 = vsel %vm678_vm0, %v3337_v4, %v3338_v27  ;;  %v2157_v17 = vsel %vm849_vm5, %v3358_v21, %v3383_v45  ;;  %v3483_v41 = vunpack.i.h.bf16 %v5865_v48 }
 0x552   : > { %2448 = vmatpush.msra.mxu0 %v6461_v34  ;;  %2340 = vmatpush.msra.mxu1 %v2037_v36  ;;  %v2271_v59 = vsel %vm963_vm7, %v3463_v37, %v3487_v30  ;;  %v2160_v47 = vsel %vm849_vm5, %v3447_v49, %v3382_v1  ;;  %v6466_v37 = vld [vmem:[#allocation28_spill] sm:$0xff]  ;;  %v3457_v49 = vunpack.i.l.bf16 %v5766_v5  ;;  %v2268_v58 = vsel %vm963_vm7, %v3373_v8, %v3488_v44  ;;  %v6469_v5 = vld [vmem:[#allocation49_spill] sm:$0xff] }
 0x553   : > { %2360 = vmatpush.msrb.mxu3 %v2261_v56  ;;  %2341 = vmatmul.f32.vlgmr.msra.gmra.mxu1 %v6462_v14  ;;  %v3218_v31 = vunpack.i.h.bf16 %v6466_v37  ;;  %v3403_v35 = vunpack.i.h.bf16 %v5680_v9  ;;  %v6468_v4 = vunpack.i.l.bf16 %v6463_v20  ;;  %v3497_v21 = vunpack.i.l.bf16 %v3496_v0  ;;  %v6470_v8 = vld [vmem:[#allocation29_spill] sm:$0xff] }
 0x554   : > { %2685 = vmatmul.msk.f32.vlgmr.msrb.gmra.mxu3 %vm1006_vm8, %v6464_v40  ;;  %2389 = vmatpush.msra.mxu2 %v2159_v19  ;;  %v2265_v7 = vsel %vm963_vm7, %v3408_v11, %v3482_v2  ;;  %v6471_v24 = vunpack.i.h.bf16 %v6470_v8  ;;  %v3328_v27 = vunpack.i.h.bf16 %v5631_v61  ;;  %v3423_v33 = vunpack.i.h.bf16 %v5792_v22  ;;  %v3501_v1 = vpop.permute.xlu2 %3500  ;;  %v6474_v19 = vld [vmem:[#allocation43_spill] sm:$0xff] }
 0x555   : > { %2425 = vmatpush.msra.mxu3 %v1992_v13  ;;  %2449 = vmatpush.msra.mxu0 %v2160_v47  ;;  %v1986_v38 = vsel %vm678_vm0, %v6468_v4, %v3268_v28  ;;  %v3422_v45 = vunpack.i.l.bf16 %v5792_v22  ;;  %v6472_v34 = vunpack.i.l.bf16 %v6466_v37  ;;  %v3368_v11 = vunpack.i.h.bf16 %v5614_v42 }
 0x556   : > { %2417 = vmatpush.msrb.mxu1 %v2271_v59  ;;  %2390 = vmatpush.msra.mxu2 %v2156_v55  ;;  %v2150_v36 = vsel %vm849_vm5, %v3357_v32, %v6471_v24  ;;  %v3498_v56 = vunpack.i.h.bf16 %v3496_v0  ;;  %v2262_v32 = vsel %vm963_vm7, %v3418_v46, %v3483_v41  ;;  %v2103_v22 = vsel %vm792_vm6, %v3453_v54, %v3457_v49  ;;  %v6475_v46 = vld [vmem:[#allocation47_spill] sm:$0xff] }
 0x557   : > { %2426 = vmatpush.msra.mxu3 %v1989_v15  ;;  %2450 = vmatpush.msra.mxu0 %v2157_v17  ;;  %v1983_v25 = vsel %vm678_vm0, %v6472_v34, %v3218_v31  ;;  %v3258_v59 = vunpack.i.h.bf16 %v6474_v19  ;;  %v3477_v20 = vunpack.i.l.bf16 %v5833_v43  ;;  %v1936_v42 = vsel %vm621_vm2, %v3402_v26, %v3403_v35  ;;  %v3491_v53 = vpop.permute.xlu0 %3490  ;;  %v6478_v31 = vld [vmem:[#allocation67_spill] sm:$0xff] }
 0x558   : > { %2418 = vmatpush.msrb.mxu1 %v2268_v58  ;;  %2391 = vmatpush.msra.mxu2 %v6467_v6  ;;  %v2104_v28 = vsel %vm792_vm6, %v3457_v49, %v3422_v45  ;;  %v3502_v57 = vunpack.i.l.bf16 %v3501_v1  ;;  %v2272_v29 = vsel %vm963_vm7, %v3487_v30, %v3497_v21  ;;  %v2100_v54 = vsel %vm792_vm6, %v3363_v52, %v3368_v11  ;;  %v6476_v30 = vld [vmem:[#allocation36_spill] sm:$0xff]  ;;  %v6483_v21 = vld [vmem:[#allocation37_spill] sm:$0xff]  ;;  %v6488_v34 = vld [vmem:[#allocation51_spill] sm:$0xff] }
 0x559   : > { %2427 = vmatpush.msra.mxu3 %v1986_v38  ;;  %2451 = vmatpush.msra.mxu0 %v6469_v5  ;;  %v3208_v13 = vunpack.i.h.bf16 %v6475_v46  ;;  %v3478_v9 = vunpack.i.h.bf16 %v5833_v43  ;;  %v1933_v26 = vsel %vm621_vm2, %v3327_v62, %v3328_v27  ;;  %v2101_v47 = vsel %vm792_vm6, %v3368_v11, %v3423_v33  ;;  %v6480_v58 = vld [vmem:[#allocation68_spill] sm:$0xff]  ;;  %v6487_v33 = vld [vmem:[#allocation30_spill] sm:$0xff] }
 0x55a   : > { %2419 = vmatpush.msrb.mxu1 %v2265_v7  ;;  %2392 = vmatpush.msra.mxu2 %v2150_v36  ;;  %v3472_v55 = vunpack.i.l.bf16 %v5782_v39  ;;  %v3503_v37 = vunpack.i.h.bf16 %v3501_v1  ;;  %v2269_v18 = vsel %vm963_vm7, %v3488_v44, %v3498_v56  ;;  %v3393_v52 = vunpack.i.h.bf16 %v5664_v23  ;;  %v6484_v7 = vld [vmem:[#allocation48_spill] sm:$0xff] }
 0x55b   : > { %2428 = vmatpush.msra.mxu3 %v1983_v25  ;;  %2452 = vmatpush.msra.mxu0 %v6473_v50  ;;  %v3492_v43 = vunpack.i.l.bf16 %v3491_v53  ;;  %v6477_v61 = vunpack.i.l.bf16 %v6474_v19  ;;  %v6479_v0 = vunpack.i.l.bf16 %v6478_v31  ;;  %v3473_v17 = vunpack.i.h.bf16 %v5782_v39  ;;  %v6495_v19 = vld [vmem:[#allocation35_spill] sm:$0xff] }
 0x55c   : > { %2420 = vmatpush.msrb.mxu1 %v2262_v32  ;;  %2393 = vmatpush.msra.mxu2 %v2103_v22  ;;  %v2266_v60 = vsel %vm963_vm7, %v3482_v2, %v3502_v57  ;;  %v3318_v44 = vunpack.i.h.bf16 %v5589_v12  ;;  %v3493_v49 = vunpack.i.h.bf16 %v3491_v53  ;;  %v6481_v35 = vunpack.i.l.bf16 %v6475_v46  ;;  %v6491_v12 = vld [vmem:[#allocation50_spill] sm:$0xff]  ;;  %v6494_v22 = vld [vmem:[#allocation27_spill] sm:$0xff] }
 0x55d   : > { %2429 = vmatpush.msra.mxu3 %v1936_v42  ;;  %2453 = vmatpush.msra.mxu0 %v2104_v28  ;;  %v1930_v62 = vsel %vm621_vm2, %v6477_v61, %v3258_v59  ;;  %v2098_v15 = vsel %vm792_vm6, %v6479_v0, %v3477_v20  ;;  %v6482_v4 = vunpack.i.h.bf16 %v6478_v31  ;;  %v2263_v2 = vsel %vm963_vm7, %v3483_v41, %v3503_v37  ;;  %v6486_v41 = vld [vmem:[#allocation39_spill] sm:$0xff]  ;;  %v6496_v59 = vld [vmem:[#allocation46_spill] sm:$0xff]  ;;  %v1326_v42 = vpop.f32.mrf.mxu2  ;;  %v6499_v0 = vld [vmem:[#allocation65_spill] sm:$0xff] }
 0x55e   : > { %2477 = vmatpush.msra.mxu1 %v2272_v29  ;;  %2394 = vmatpush.msra.mxu2 %v2100_v54  ;;  %v1927_v6 = vsel %vm621_vm2, %v6481_v35, %v3208_v13  ;;  %v2047_v38 = vsel %vm735_vm3, %v3467_v3, %v3472_v55  ;;  %v3248_v5 = vunpack.i.h.bf16 %v6483_v21  ;;  %v3278_v8 = vunpack.i.h.bf16 %v6484_v7  ;;  %v3516_v20 = vld [vmem:[#allocation2 + $0x10] sm:$0xff] }
 0x55f   : > { %2430 = vmatpush.msra.mxu3 %v1933_v26  ;;  %2454 = vmatpush.msra.mxu0 %v2101_v47  ;;  %v2095_v39 = vsel %vm792_vm6, %v6482_v4, %v3478_v9  ;;  %v6485_v24 = vunpack.i.l.bf16 %v5664_v23  ;;  %v2048_v27 = vsel %vm735_vm3, %v3472_v55, %v3492_v43  ;;  %v2044_v48 = vsel %vm735_vm3, %v3468_v10, %v3473_v17  ;;  %v2291_v29 = vpop.permute.xlu0 %2290  ;;  %v6497_v47 = vld [vmem:[#allocation24_spill] sm:$0xff]  ;;  %v6498_v55 = vld [vmem:[#allocation26_spill] sm:$0xff] }
 0x560   : > { %2478 = vmatpush.msra.mxu1 %v2269_v18  ;;  %2395 = vmatpush.msra.mxu2 %v6476_v30  ;;  %v3198_v3 = vunpack.i.h.bf16 %v6486_v41  ;;  %v3228_v45 = vunpack.i.h.bf16 %v6487_v33  ;;  %v1877_v1 = vsel %vm564_vm4, %v3317_v63, %v3318_v44  ;;  %v2045_v23 = vsel %vm735_vm3, %v3473_v17, %v3493_v49  ;;  %v2493_v30 = vld.sshfl [vmem:[#allocation1 + $0x8] sm:$0xff pattern:$0x75316420] }
 0x561   : > { %2431 = vmatpush.msra.mxu3 %v1930_v62  ;;  %2455 = vmatpush.msra.mxu0 %v2098_v15  ;;  %v1880_v36 = vsel %vm564_vm4, %v6485_v24, %v3393_v52  ;;  %v6489_v16 = vunpack.i.l.bf16 %v6483_v21  ;;  %v6490_v25 = vunpack.i.l.bf16 %v6484_v7  ;;  %v6492_v63 = vunpack.i.l.bf16 %v6486_v41  ;;  %v6500_v15 = vld [vmem:[#allocation33_spill] sm:$0xff]  ;;  %v2494_v7 = vld.sshfl [vmem:[#allocation1 + $0x10] sm:$0xff pattern:$0x75316420] }
 0x562   : > { %2479 = vmatpush.msra.mxu1 %v2266_v60  ;;  %2396 = vmatpush.msra.mxu2 %v6480_v58  ;;  %v6493_v50 = vunpack.i.l.bf16 %v6487_v33  ;;  %v1307_v37 = vadd.f32 %v6498_v55, %v6497_v47  ;;  %v1347_v17 = vadd.f32 %v6500_v15, %v6499_v0  ;;  %v6501_v58 = vld [vmem:[#allocation25_spill] sm:$0xff] }
 0x563   : > { %2432 = vmatpush.msra.mxu3 %v1927_v6  ;;  %2456 = vmatpush.msra.mxu0 %v2095_v39  ;;  %v1874_v10 = vsel %vm564_vm4, %v6489_v16, %v3248_v5  ;;  %v2042_v11 = vsel %vm735_vm3, %v6490_v25, %v3278_v8  ;;  %v1871_v56 = vsel %vm564_vm4, %v6492_v63, %v3198_v3  ;;  %v6503_v8 = vld [vmem:[#allocation45_spill] sm:$0xff] }
 0x564   : > { %2480 = vmatpush.msra.mxu1 %v2263_v2  ;;  %2397 = vmatpush.msra.mxu2 %v2047_v38  ;;  %v2039_v32 = vsel %vm735_vm3, %v6493_v50, %v3228_v45  ;;  %v1327_v61 = vadd.f32 %v1326_v42, %v1307_v37 }
 0x565   : > { %2433 = vmatpush.msra.mxu3 %v1880_v36  ;;  %2457 = vmatpush.msra.mxu0 %v2048_v27  ;;  %v1366_v28 = vpop.f32.mrf.mxu2 }
 0x566   : > { %2398 = vmatpush.msra.mxu2 %v2044_v48  ;;  %2686 = vmatmul.msk.f32.vlgmr.msrb.gmra.mxu1 %vm1006_vm8, %v6464_v40  ;;  %v1367_v2 = vadd.f32 %v1366_v28, %v1347_v17 }
 0x567   : > { %2434 = vmatpush.msra.mxu3 %v1877_v1  ;;  %2458 = vmatpush.msra.mxu0 %v2045_v23 }
 0x568   : > { %2399 = vmatpush.msra.mxu2 %v6488_v34  ;;  %v1387_v24 = vadd.f32 %v6503_v8, %v1367_v2 }
 0x569   : > { %2435 = vmatpush.msra.mxu3 %v1874_v10  ;;  %2459 = vmatpush.msra.mxu0 %v2042_v11 }
 0x56a   : > { %2400 = vmatpush.msra.mxu2 %v6491_v12 }
 0x56b   : > { %2436 = vmatpush.msra.mxu3 %v1871_v56  ;;  %2460 = vmatpush.msra.mxu0 %v2039_v32 }
 0x56c   : > { %2401 = vmatmul.f32.vlgmr.msra.gmra.mxu2 %v6462_v14  ;;  %2461 = vmatmul.f32.vlgmr.msra.gmra.mxu0 %v6462_v14 }
 0x56d   : > { %2437 = vmatpush.msra.mxu3 %v6494_v22 }
 0x56e   : > { %2687 = vmatmul.msk.f32.vlgmr.msra.gmra.mxu1 %vm1006_vm8, %v6464_v40 }
 0x56f   : > { %2438 = vmatpush.msra.mxu3 %v6495_v19 }
 0x571   : > { %2439 = vmatpush.msra.mxu3 %v6496_v59 }
 0x573   : > { %2440 = vmatpush.msra.mxu3 %v3516_v20 }
 0x574   : > { %2441 = vmatmul.f32.vlgmr.msra.gmra.mxu3 %v5061_v51  ;;  %v2492_v51 = vld.sshfl [vmem:[#allocation1] sm:$0xff pattern:$0x75316420] }
 0x5c8   : > { %v2382_v14 = vpop.f32.mrf.mxu0 }
 0x5c9   : > { %v2383_v13 = vadd.f32 %v2382_v14, %v2291_v29 }
 0x5cd   : > { %v2322_v57 = vpop.f32.mrf.mxu2 }
 0x5ce   : > { %v2323_v54 = vadd.f32 %v2322_v57, %v2291_v29 }
 0x5d0   : > { %v2342_v53 = vpop.f32.mrf.mxu1 }
 0x5d1   : > { %v2343_v9 = vadd.f32 %v2342_v53, %v2323_v54 }
 0x5d7   : > { %v2362_v46 = vpop.f32.mrf.mxu3 }
 0x5d8   : > { %v2363_v18 = vadd.f32 %v2362_v46, %v2343_v9 }
 0x5da   : > { %v2498_v62 = vadd.f32 %v2492_v51, %v2363_v18 }
 0x5dc   : > { %v2501_v35 = vadd.f32 %v2498_v62, %v6501_v58 }
 0x5e3   : > { %v2422_v26 = vpop.f32.mrf.mxu1 }
 0x5e9   : > { %v2462_v49 = vpop.f32.mrf.mxu0 }
 0x5eb   : > { %v2482_v39 = vpop.f32.mrf.mxu1 }
 0x5ef   : > { %v2402_v40 = vpop.f32.mrf.mxu2 }
 0x5f0   : > { %v2403_v52 = vadd.f32 %v2402_v40, %v2383_v13 }
 0x5f2   : > { %v2423_v43 = vadd.f32 %v2422_v26, %v2403_v52 }
 0x5f4   : > { %v2499_v31 = vadd.f32 %v2493_v30, %v2423_v43 }
 0x5f6   : > { %v2502_v60 = vadd.f32 %v2499_v31, %v1327_v61 }
 0x5f7   : > { %v2442_v44 = vpop.f32.mrf.mxu3 }
 0x5f8   : > { %v2506_v6 = vrot.slane %v2502_v60, 4  ;;  %v2443_v4 = vadd.f32 %v2442_v44, %v2291_v29 }
 0x5fa   : > { %v2507_v38 = vsel %vm1396_vm9, %v2501_v35, %v2506_v6  ;;  %v2463_v21 = vadd.f32 %v2462_v49, %v2443_v4 }
 0x5fb   : > { %2509 = vst [vmem:[%s489_s24] sm:$0xff] %v2507_v38 }
 0x5fc   : > { %v2483_v5 = vadd.f32 %v2482_v39, %v2463_v21 }
 0x5fe   : > { %v2500_v36 = vadd.f32 %v2494_v7, %v2483_v5 }
 0x600   : > { %v2503_v27 = vadd.f32 %v2500_v36, %v1387_v24 }
 0x602   : > { %2510 = vst [vmem:[%s489_s24 + $0x8] sm:$0xf] %v2503_v27 }
 0x603   : > { %3694 = shalt.err (!%p3691_p2)
}
 0x604   : > { %2712 = dma.vmem_to_hbm [thread:$0]  (%p3896_p7), %s2526_s14, 192, %s2528_s17, %s2512_s12  }
 0x605 PF: > { %s6504_s16 = sld [smem:[#allocation18_spill]]  ;;  %p6506_p12 = scmp.ge.s32.totalorder %s3745_s20, 2 }
 0x607   : > { %p2732_p13 = pnand %p6506_p12, %p3858_p6 }
 0x609   : > { %p2733_p0 = pneg %p2732_p13 }
 0x60b   : > { %s2539_s23 = sand.u32 1, %s6504_s16  }
 0x60c   : > { %s2540_s27 = scalar_lea.sflag [#allocation5], %s2539_s23 }
 0x60d   : > { %3728 = dma.done.wait (%p2733_p0), %s2540_s27, 192  }
 0x60e   : > { %3730 = vsyncadd (%p2733_p0), %s2540_s27, 4294967104  ;;  %s6507_s20 = sld [smem:[#allocation21_spill]]  ;;  %s6510_s17 = smov %s3737_s18 }
 0x60f   : > { %s6508_s29 = sld [smem:[#allocation19_spill]] }
 0x610   : > { %s6509_s19 = sld [smem:[#allocation22_spill]] }
 0x614   : > { %p28_p3 = scmp.ge.s32.totalorder %s6507_s20, 4  }
 0x615   : > { %s6511_s18 = smov %s6508_s29 }
 0x616   :  { %30 = sbr.rel (!%p28_p3) target bundleno = 12 (0xc), region = 139 }
 0x61b   :  { %2546 = vsyncpa [#allocation4], 1 }
 0x61c   :  { %2548 = vsyncpa [#allocation4 + $0x1], 1 }
 0x61d   :  { %2549 = vsyncpa [#allocation7], 1 }
 0x61e   :  { %2551 = vsyncpa [#allocation7 + $0x1], 1 }
 0x61f   :  { %2552 = vsyncpa [#allocation10], 1 }
 0x620   :  { %2553 = vsyncpa [#allocation5], 1 }
 0x621   :  { %2555 = vsyncpa [#allocation5 + $0x1], 1 }

</bundles_post_ra>
